<compile_context>
chip_gen: v6e
topology: v6e:2x2x1
jax: 0.10.0
libtpu: 0.0.40
codegen_flags: <defaults>
</compile_context>

<pallas_src>
import functools
import math

import jax
import jax.numpy as jnp
from jax.experimental import pallas as pl
from jax.experimental.pallas import tpu as pltpu

LANES = 128


def _round_up(x, m):
    return ((x + m - 1) // m) * m


# ----------------------------------------------------------------------------
# Pallas kernel 1: feature encoder (Linear + ReLU) over the whole batch
# ----------------------------------------------------------------------------

def _linear_relu_kernel(x_ref, w_ref, b_ref, o_ref):
    y = jnp.dot(x_ref[...], w_ref[...], preferred_element_type=jnp.float32)
    o_ref[...] = jnp.maximum(y + b_ref[...], 0.0)


def feature_encoder(points, w, b):
    # points: [B, N, Din] -> [B, N, Dout]; single un-gridded call, M = B*N.
    B, N, Din = points.shape
    Dout = w.shape[1]
    pad_in = 8  # pad the 3-d coordinate contraction up to one sublane tile
    x2d = jnp.zeros((B * N, pad_in), jnp.float32)
    x2d = x2d.at[:, :Din].set(points.reshape(B * N, Din).astype(jnp.float32))
    wp = jnp.zeros((pad_in, Dout), jnp.float32).at[:Din, :].set(w)
    out = pl.pallas_call(
        _linear_relu_kernel,
        out_shape=jax.ShapeDtypeStruct((B * N, Dout), jnp.float32),
    )(x2d, wp, b.reshape(1, Dout))
    return out.reshape(B, N, Dout)


# ----------------------------------------------------------------------------
# Pallas kernel 2: fused spiking stack (conv -> LIF) x n_layers -> rate
# ----------------------------------------------------------------------------

def _sgwcn_stack_kernel(spk_ref, L_ref, *refs, T, N, K, decay,
                        theta_pos, theta_neg):
    # spk_ref : [T*N, P0]   f32 Poisson spikes (0/1), feature-padded to 128
    # L_ref   : [T*N, T*N]  bf16 block-diagonal graph operator kron(I_T, L_s)
    # refs    : (w_1, b_1, ..., w_L, b_L, out_ref)
    #   w_l : [K * P_in_l, P_out_l] bf16 (Chebyshev orders stacked on rows)
    #   b_l : [1, P_out_l]          f32
    # out_ref : [1, 2 * P_out_last] f32 rate (mean over T and N)
    out_ref = refs[-1]
    wb_refs = refs[:-1]
    n_layers = len(wb_refs) // 2

    L = L_ref[...]          # bf16
    x = spk_ref[...]        # f32, zero in padded lanes

    for layer in range(n_layers):
        w = wb_refs[2 * layer][...]          # bf16 [K*P_in, P_out]
        bvec = wb_refs[2 * layer + 1][...]   # f32  [1, P_out]

        # --- Chebyshev basis, T folded into the row dim (M = T*N) ----------
        terms = [x]
        if K > 1:
            t_prev = x
            t_cur = jnp.dot(L, x.astype(jnp.bfloat16),
                            preferred_element_type=jnp.float32)
            terms.append(t_cur)
            for _ in range(2, K):
                t_next = (2.0 * jnp.dot(L, t_cur.astype(jnp.bfloat16),
                                        preferred_element_type=jnp.float32)
                          - t_prev)
                terms.append(t_next)
                t_prev, t_cur = t_cur, t_next
        # lane-aligned concat (each term is a multiple of 128 lanes wide)
        basis = jnp.concatenate(terms, axis=-1).astype(jnp.bfloat16)

        # --- single projection matmul over all K orders and all T steps ----
        conv = jnp.dot(basis, w, preferred_element_type=jnp.float32) + bvec
        p_out = conv.shape[-1]

        # --- bipolar LIF, sequential over time, f32 VPU work ---------------
        # Padded lanes carry exactly 0 current, so with theta_pos>0>theta_neg
        # they never spike -> padding is preserved without masking.
        # TODO(synk): for large T switch to lax.fori_loop(..., unroll=True).
        v = jnp.zeros((N, p_out), jnp.float32)
        pos_rows = []
        neg_rows = []
        for t in range(T):
            v = v * decay + conv[t * N:(t + 1) * N, :]
            pos = (v >= theta_pos).astype(jnp.float32)
            neg = (v <= theta_neg).astype(jnp.float32)
            v = v - theta_pos * pos - theta_neg * neg
            pos_rows.append(pos)
            neg_rows.append(neg)
        x = jnp.concatenate(
            [jnp.concatenate(pos_rows, axis=0),     # [T*N, P_out]
             jnp.concatenate(neg_rows, axis=0)],    # [T*N, P_out]
            axis=-1)                                # [T*N, 2*P_out]

    # rate readout accumulation (mean over T and N), lane-dense output
    out_ref[...] = jnp.mean(x, axis=0, keepdims=True)


def sgwcn_stack(spikes_pad, L_big, padded_wb, *, T, N, K, decay,
                theta_pos, theta_neg):
    B, TN, P0 = spikes_pad.shape
    f2_pad = 2 * padded_wb[-1][0].shape[-1]

    in_specs = [
        pl.BlockSpec((None, TN, P0), lambda b: (b, 0, 0)),
        pl.BlockSpec((None, TN, TN), lambda b: (b, 0, 0)),
    ]
    flat_wb = []
    for wp, bp in padded_wb:
        in_specs.append(pl.BlockSpec(wp.shape, lambda b: (0, 0)))
        in_specs.append(pl.BlockSpec(bp.shape, lambda b: (0, 0)))
        flat_wb.extend([wp, bp])

    kernel = functools.partial(_sgwcn_stack_kernel, T=T, N=N, K=K,
                               decay=decay, theta_pos=theta_pos,
                               theta_neg=theta_neg)
    out = pl.pallas_call(
        kernel,
        out_shape=jax.ShapeDtypeStruct((B, 1, f2_pad), jnp.float32),
        grid=(B,),
        in_specs=in_specs,
        out_specs=pl.BlockSpec((None, 1, f2_pad), lambda b: (b, 0, 0)),
        compiler_params=pltpu.CompilerParams(
            dimension_semantics=("parallel",)),
    )(spikes_pad, L_big, *flat_wb)
    return out.reshape(B, f2_pad)


# ----------------------------------------------------------------------------
# Plain-JAX glue: adaptive graph construction, Poisson encoding, params
# ----------------------------------------------------------------------------

def build_graph(points, *, k, beta, lambda_param, eps):
    """Local-density adaptive kNN graph -> dense node-adaptive operator."""
    B, N, _ = points.shape
    p = points.astype(jnp.float32)
    sq = jnp.sum(p * p, axis=-1)                                   # [B, N]
    d2 = sq[:, :, None] + sq[:, None, :] - 2.0 * jnp.einsum(
        "bnd,bmd->bnm", p, p)
    d2 = jnp.maximum(d2, 0.0)
    d2_noself = d2 + jnp.eye(N, dtype=jnp.float32) * 1e9
    neg_d2, idx = jax.lax.top_k(-d2_noself, k)                     # [B, N, k]
    knn_d2 = -neg_d2
    sigma = beta * jnp.mean(jnp.sqrt(knn_d2 + eps), axis=-1) + eps # [B, N]
    s_local = lambda_param * sigma
    sig_i = sigma[:, :, None]
    sig_j = jnp.take_along_axis(
        jnp.broadcast_to(sigma[:, None, :], (B, N, N)), idx, axis=-1)
    w = jnp.exp(-knn_d2 / (sig_i * sig_j + eps))                   # [B, N, k]
    A = jnp.sum(w[..., None] * jax.nn.one_hot(idx, N, dtype=jnp.float32),
                axis=2)                                            # [B, N, N]
    A = 0.5 * (A + jnp.swapaxes(A, 1, 2))
    deg = jnp.sum(A, axis=-1) + eps
    dinv = 1.0 / jnp.sqrt(deg)
    L_tilde = -dinv[:, :, None] * A * dinv[:, None, :]             # L_norm - I
    s_norm = s_local / (jnp.mean(s_local, axis=1, keepdims=True) + eps)
    L_s = s_norm[:, :, None] * L_tilde
    return L_s, s_local


def poisson_encoding(x, num_time_steps, key):
    B, N, F = x.shape
    rate = jax.nn.sigmoid(x)
    u = jax.random.uniform(key, (B, num_time_steps, N, F), dtype=jnp.float32)
    return (u < rate[:, None, :, :]).astype(jnp.float32)


def init_params(key, *, input_dim, hidden_dims, num_classes, K):
    params = {}
    keys = jax.random.split(key, 16)
    h0 = hidden_dims[0]
    params["enc_w"] = (jax.random.normal(keys[0], (input_dim, h0), jnp.float32)
                       / jnp.sqrt(input_dim))
    params["enc_b"] = jnp.zeros((h0,), jnp.float32)

    layer_dims = [h0] + list(hidden_dims)
    conv_params = []
    for i in range(len(layer_dims) - 1):
        f_in = layer_dims[i] * 2 if i > 0 else layer_dims[i]
        f_out = layer_dims[i + 1]
        w = (jax.random.normal(keys[1 + i], (K, f_in, f_out), jnp.float32)
             / jnp.sqrt(K * f_in))
        b = jnp.zeros((f_out,), jnp.float32)
        conv_params.append((w, b))
    params["conv"] = conv_params

    final_dim = hidden_dims[-1] * 2
    params["ro_w"] = (jax.random.normal(keys[10], (final_dim, num_classes),
                                        jnp.float32) / jnp.sqrt(final_dim))
    params["ro_b"] = jnp.zeros((num_classes,), jnp.float32)
    return params


def _pad_layer_params(params_conv, K):
    """Zero-pad conv weights to 128-lane slots and stack Chebyshev orders."""
    padded = []
    prev_pout = None
    for i, (w, b) in enumerate(params_conv):
        _, fin, fout = w.shape
        if i == 0:
            n_slots, f_slot, slot_pad = 1, fin, _round_up(fin, LANES)
        else:
            n_slots, f_slot, slot_pad = 2, fin // 2, prev_pout
        p_out = _round_up(fout, LANES)
        w4 = w.reshape(K, n_slots, f_slot, fout)
        wp = jnp.zeros((K, n_slots, slot_pad, p_out), jnp.float32)
        wp = wp.at[:, :, :f_slot, :fout].set(w4)
        wp = wp.reshape(K * n_slots * slot_pad, p_out).astype(jnp.bfloat16)
        bp = jnp.zeros((1, p_out), jnp.float32).at[0, :fout].set(b)
        padded.append((wp, bp))
        prev_pout = p_out
    return padded, prev_pout


def sgwcn_forward(point_cloud, params, *, num_time_steps, k_neighbors, beta,
                  lambda_param, eps, tau_mem, theta_pos, theta_neg, enc_key):
    # TODO(synk): dropout layers are identity in eval mode and omitted.
    assert theta_pos > 0.0 and theta_neg < 0.0  # keeps zero-padded lanes silent
    B, N, _ = point_cloud.shape
    T = num_time_steps
    K = params["conv"][0][0].shape[0]
    decay = math.exp(-1.0 / tau_mem)            # pure-Python: jit-safe

    # Adaptive graph (plain JAX) and block-diagonal operator kron(I_T, L_s).
    L_s, _s_local = build_graph(point_cloud, k=k_neighbors, beta=beta,
                                lambda_param=lambda_param, eps=eps)
    eye_t = jnp.eye(T, dtype=jnp.float32)
    L_big = (eye_t[None, :, None, :, None] * L_s[:, None, :, None, :]
             ).reshape(B, T * N, T * N).astype(jnp.bfloat16)

    # Encoder (Pallas) + Poisson spike encoding (plain JAX RNG).
    x = feature_encoder(point_cloud, params["enc_w"], params["enc_b"])
    spikes = poisson_encoding(x, T, enc_key)              # [B, T, N, h0]
    h0 = x.shape[-1]
    p0 = _round_up(h0, LANES)
    spikes_p = jnp.zeros((B, T, N, p0), jnp.float32)
    spikes_p = spikes_p.at[..., :h0].set(spikes).reshape(B, T * N, p0)

    # Fused conv->LIF stack + rate accumulation (single Pallas kernel).
    padded_wb, last_pout = _pad_layer_params(params["conv"], K)
    rate = sgwcn_stack(spikes_p, L_big, padded_wb, T=T, N=N, K=K,
                       decay=decay, theta_pos=theta_pos, theta_neg=theta_neg)

    # Final classification projection, batched over B (plain XLA matmul).
    fout_last = params["conv"][-1][0].shape[-1]
    ro_w = params["ro_w"]
    ro_w_pad = jnp.zeros((2 * last_pout, ro_w.shape[1]), jnp.float32)
    ro_w_pad = ro_w_pad.at[:fout_last, :].set(ro_w[:fout_last])
    ro_w_pad = ro_w_pad.at[last_pout:last_pout + fout_last, :].set(
        ro_w[fout_last:])
    logits = rate @ ro_w_pad + params["ro_b"][None, :]
    return logits


# ----------------------------------------------------------------------------
# Main
# ----------------------------------------------------------------------------

if __name__ == "__main__":
    # Small configuration consistent with SGWCNClassifier(__init__):
    B, N = 2, 32
    input_dim = 3
    hidden_dims = [16, 32, 64]
    num_classes = 10
    num_time_steps = 4
    k_neighbors = 8
    chebyshev_order = 3
    beta, lambda_param, eps = 1.0, 1.0, 1e-6
    tau_mem, theta_pos, theta_neg = 20.0, 1.0, -1.0

    root = jax.random.PRNGKey(0)
    k_pts, k_params, k_enc = jax.random.split(root, 3)

    point_cloud = jax.random.normal(k_pts, (B, N, input_dim), jnp.float32)
    params = init_params(k_params, input_dim=input_dim,
                         hidden_dims=hidden_dims, num_classes=num_classes,
                         K=chebyshev_order)

    fwd = jax.jit(functools.partial(
        sgwcn_forward,
        num_time_steps=num_time_steps, k_neighbors=k_neighbors, beta=beta,
        lambda_param=lambda_param, eps=eps, tau_mem=tau_mem,
        theta_pos=theta_pos, theta_neg=theta_neg, enc_key=k_enc))

    logits = fwd(point_cloud, params)
    jax.block_until_ready(logits)
    assert logits.shape == (B, num_classes), logits.shape
    assert bool(jnp.all(jnp.isfinite(logits)))
    print("KERNEL_OK")
</pallas_src>

<mosaic_0001>
module attributes {stable_mosaic.version = 11 : i64} {
  func.func @_linear_relu_kernel(%arg0: memref<64x8xf32, #tpu.memory_space<vmem>>, %arg1: memref<8x16xf32, #tpu.memory_space<vmem>>, %arg2: memref<1x16xf32, #tpu.memory_space<vmem>>, %arg3: memref<64x16xf32, #tpu.memory_space<vmem>>) attributes {dimension_semantics = [], scalar_prefetch = 0 : i64, scratch_operands = 0 : i64, tpu.core_type = #tpu.core_type<tc>} {
    %c0 = arith.constant 0 : index
    %c0_0 = arith.constant 0 : index
    %0 = vector.load %arg0[%c0, %c0_0] : memref<64x8xf32, #tpu.memory_space<vmem>>, vector<64x8xf32>
    %c0_1 = arith.constant 0 : index
    %c0_2 = arith.constant 0 : index
    %1 = vector.load %arg1[%c0_1, %c0_2] : memref<8x16xf32, #tpu.memory_space<vmem>>, vector<8x16xf32>
    %cst = arith.constant dense<0.000000e+00> : vector<64x16xf32>
    %2 = tpu.matmul %0, %1, %cst {dimension_numbers = #tpu.dot_dimension_numbers<[1], [0], [0], [1], [0, 0, 1, 1], [], []>} : vector<64x8xf32>, vector<8x16xf32>, vector<64x16xf32> -> vector<64x16xf32>
    %c0_3 = arith.constant 0 : index
    %c0_4 = arith.constant 0 : index
    %3 = vector.load %arg2[%c0_3, %c0_4] : memref<1x16xf32, #tpu.memory_space<vmem>>, vector<1x16xf32>
    %4 = vector.broadcast %3 : vector<1x16xf32> to vector<64x16xf32>
    %5 = arith.addf %2, %4 : vector<64x16xf32>
    %cst_5 = arith.constant 0.000000e+00 : f32
    %6 = vector.broadcast %cst_5 : f32 to vector<64x16xf32>
    %7 = arith.maximumf %5, %6 : vector<64x16xf32>
    %c0_6 = arith.constant 0 : index
    %c0_7 = arith.constant 0 : index
    %8 = vector.load %arg3[%c0_6, %c0_7] : memref<64x16xf32, #tpu.memory_space<vmem>>, vector<64x16xf32>
    tpu.vector_store %arg3[%c0_6, %c0_7], %7 {strides = array<i32>} : memref<64x16xf32, #tpu.memory_space<vmem>>, vector<64x16xf32>,
    return
  }
}

module attributes {stable_mosaic.version = 11 : i64} {
  func.func @_sgwcn_stack_kernel(%arg0: i32, %arg1: memref<1x128x128xf32, #tpu.memory_space<vmem>>, %arg2: memref<1x128x128xbf16, #tpu.memory_space<vmem>>, %arg3: memref<384x128xbf16, #tpu.memory_space<vmem>>, %arg4: memref<1x128xf32, #tpu.memory_space<vmem>>, %arg5: memref<768x128xbf16, #tpu.memory_space<vmem>>, %arg6: memref<1x128xf32, #tpu.memory_space<vmem>>, %arg7: memref<768x128xbf16, #tpu.memory_space<vmem>>, %arg8: memref<1x128xf32, #tpu.memory_space<vmem>>, %arg9: memref<1x1x256xf32, #tpu.memory_space<vmem>>) attributes {dimension_semantics = [#tpu.dimension_semantics<parallel>], iteration_bounds = array<i64: 2>, scalar_prefetch = 0 : i64, scratch_operands = 0 : i64, tpu.core_type = #tpu.core_type<tc>, window_params = [{transform_indices = @transform_0, window_bounds = array<i64: 1, 128, 128>}, {transform_indices = @transform_1, window_bounds = array<i64: 1, 128, 128>}, {pipeline_mode = #tpu.pipeline_mode<synchronous>, transform_indices = @transform_2, window_bounds = array<i64: 384, 128>}, {pipeline_mode = #tpu.pipeline_mode<synchronous>, transform_indices = @transform_3, window_bounds = array<i64: 1, 128>}, {pipeline_mode = #tpu.pipeline_mode<synchronous>, transform_indices = @transform_4, window_bounds = array<i64: 768, 128>}, {pipeline_mode = #tpu.pipeline_mode<synchronous>, transform_indices = @transform_5, window_bounds = array<i64: 1, 128>}, {pipeline_mode = #tpu.pipeline_mode<synchronous>, transform_indices = @transform_6, window_bounds = array<i64: 768, 128>}, {pipeline_mode = #tpu.pipeline_mode<synchronous>, transform_indices = @transform_7, window_bounds = array<i64: 1, 128>}, {transform_indices = @transform_8, window_bounds = array<i64: 1, 1, 256>}]} {
    %c0 = arith.constant 0 : index
    %c0_0 = arith.constant 0 : index
    %c0_1 = arith.constant 0 : index
    %0 = vector.load %arg2[%c0, %c0_0, %c0_1] : memref<1x128x128xbf16, #tpu.memory_space<vmem>>, vector<1x128x128xbf16>
    %1 = vector.shape_cast %0 : vector<1x128x128xbf16> to vector<128x128xbf16>
    %c0_2 = arith.constant 0 : index
    %c0_3 = arith.constant 0 : index
    %c0_4 = arith.constant 0 : index
    %2 = vector.load %arg1[%c0_2, %c0_3, %c0_4] : memref<1x128x128xf32, #tpu.memory_space<vmem>>, vector<1x128x128xf32>
    %3 = vector.shape_cast %2 : vector<1x128x128xf32> to vector<128x128xf32>
    %c0_5 = arith.constant 0 : index
    %c0_6 = arith.constant 0 : index
    %4 = vector.load %arg3[%c0_5, %c0_6] : memref<384x128xbf16, #tpu.memory_space<vmem>>, vector<384x128xbf16>
    %c0_7 = arith.constant 0 : index
    %c0_8 = arith.constant 0 : index
    %5 = vector.load %arg4[%c0_7, %c0_8] : memref<1x128xf32, #tpu.memory_space<vmem>>, vector<1x128xf32>
    %6 = arith.truncf %3 : vector<128x128xf32> to vector<128x128xbf16>
    %cst = arith.constant dense<0.000000e+00> : vector<128x128xf32>
    %7 = tpu.matmul %1, %6, %cst {dimension_numbers = #tpu.dot_dimension_numbers<[1], [0], [0], [1], [0, 0, 1, 1], [], []>} : vector<128x128xbf16>, vector<128x128xbf16>, vector<128x128xf32> -> vector<128x128xf32>
    %8 = arith.truncf %7 : vector<128x128xf32> to vector<128x128xbf16>
    %cst_9 = arith.constant dense<0.000000e+00> : vector<128x128xf32>
    %9 = tpu.matmul %1, %8, %cst_9 {dimension_numbers = #tpu.dot_dimension_numbers<[1], [0], [0], [1], [0, 0, 1, 1], [], []>} : vector<128x128xbf16>, vector<128x128xbf16>, vector<128x128xf32> -> vector<128x128xf32>
    %cst_10 = arith.constant 2.000000e+00 : f32
    %10 = vector.broadcast %cst_10 : f32 to vector<128x128xf32>
    %11 = arith.mulf %10, %9 : vector<128x128xf32>
    %12 = arith.subf %11, %3 : vector<128x128xf32>
    %13 = tpu.concatenate %3, %7, %12 in 1 : vector<128x128xf32>, vector<128x128xf32>, vector<128x128xf32> -> vector<128x384xf32>
    %14 = arith.truncf %13 : vector<128x384xf32> to vector<128x384xbf16>
    %cst_11 = arith.constant dense<0.000000e+00> : vector<128x128xf32>
    %15 = tpu.matmul %14, %4, %cst_11 {dimension_numbers = #tpu.dot_dimension_numbers<[1], [0], [0], [1], [0, 0, 1, 1], [], []>} : vector<128x384xbf16>, vector<384x128xbf16>, vector<128x128xf32> -> vector<128x128xf32>
    %16 = vector.broadcast %5 : vector<1x128xf32> to vector<128x128xf32>
    %17 = arith.addf %15, %16 : vector<128x128xf32>
    %cst_12 = arith.constant 0.000000e+00 : f32
    %18 = vector.broadcast %cst_12 : f32 to vector<32x128xf32>
    %cst_13 = arith.constant 0.951229453 : f32
    %19 = vector.broadcast %cst_13 : f32 to vector<32x128xf32>
    %20 = arith.mulf %18, %19 : vector<32x128xf32>
    %21 = vector.extract_strided_slice %17 {offsets = [0, 0], sizes = [32, 128], strides = [1, 1]} : vector<128x128xf32> to vector<32x128xf32>
    %22 = arith.addf %20, %21 : vector<32x128xf32>
    %cst_14 = arith.constant 1.000000e+00 : f32
    %23 = vector.broadcast %cst_14 : f32 to vector<32x128xf32>
    %24 = arith.cmpf oge, %22, %23 : vector<32x128xf32>
    %25 = arith.extui %24 : vector<32x128xi1> to vector<32x128xi32>
    %26 = arith.sitofp %25 : vector<32x128xi32> to vector<32x128xf32>
    %cst_15 = arith.constant -1.000000e+00 : f32
    %27 = vector.broadcast %cst_15 : f32 to vector<32x128xf32>
    %28 = arith.cmpf ole, %22, %27 : vector<32x128xf32>
    %29 = arith.extui %28 : vector<32x128xi1> to vector<32x128xi32>
    %30 = arith.sitofp %29 : vector<32x128xi32> to vector<32x128xf32>
    %cst_16 = arith.constant 1.000000e+00 : f32
    %31 = vector.broadcast %cst_16 : f32 to vector<32x128xf32>
    %32 = arith.mulf %31, %26 : vector<32x128xf32>
    %33 = arith.subf %22, %32 : vector<32x128xf32>
    %cst_17 = arith.constant -1.000000e+00 : f32
    %34 = vector.broadcast %cst_17 : f32 to vector<32x128xf32>
    %35 = arith.mulf %34, %30 : vector<32x128xf32>
    %36 = arith.subf %33, %35 : vector<32x128xf32>
    %cst_18 = arith.constant 0.951229453 : f32
    %37 = vector.broadcast %cst_18 : f32 to vector<32x128xf32>
    %38 = arith.mulf %36, %37 : vector<32x128xf32>
    %39 = vector.extract_strided_slice %17 {offsets = [32, 0], sizes = [32, 128], strides = [1, 1]} : vector<128x128xf32> to vector<32x128xf32>
    %40 = arith.addf %38, %39 : vector<32x128xf32>
    %cst_19 = arith.constant 1.000000e+00 : f32
    %41 = vector.broadcast %cst_19 : f32 to vector<32x128xf32>
    %42 = arith.cmpf oge, %40, %41 : vector<32x128xf32>
    %43 = arith.extui %42 : vector<32x128xi1> to vector<32x128xi32>
    %44 = arith.sitofp %43 : vector<32x128xi32> to vector<32x128xf32>
    %cst_20 = arith.constant -1.000000e+00 : f32
    %45 = vector.broadcast %cst_20 : f32 to vector<32x128xf32>
    %46 = arith.cmpf ole, %40, %45 : vector<32x128xf32>
    %47 = arith.extui %46 : vector<32x128xi1> to vector<32x128xi32>
    %48 = arith.sitofp %47 : vector<32x128xi32> to vector<32x128xf32>
    %cst_21 = arith.constant 1.000000e+00 : f32
    %49 = vector.broadcast %cst_21 : f32 to vector<32x128xf32>
    %50 = arith.mulf %49, %44 : vector<32x128xf32>
    %51 = arith.subf %40, %50 : vector<32x128xf32>
    %cst_22 = arith.constant -1.000000e+00 : f32
    %52 = vector.broadcast %cst_22 : f32 to vector<32x128xf32>
    %53 = arith.mulf %52, %48 : vector<32x128xf32>
    %54 = arith.subf %51, %53 : vector<32x128xf32>
    %cst_23 = arith.constant 0.951229453 : f32
    %55 = vector.broadcast %cst_23 : f32 to vector<32x128xf32>
    %56 = arith.mulf %54, %55 : vector<32x128xf32>
    %57 = vector.extract_strided_slice %17 {offsets = [64, 0], sizes = [32, 128], strides = [1, 1]} : vector<128x128xf32> to vector<32x128xf32>
    %58 = arith.addf %56, %57 : vector<32x128xf32>
    %cst_24 = arith.constant 1.000000e+00 : f32
    %59 = vector.broadcast %cst_24 : f32 to vector<32x128xf32>
    %60 = arith.cmpf oge, %58, %59 : vector<32x128xf32>
    %61 = arith.extui %60 : vector<32x128xi1> to vector<32x128xi32>
    %62 = arith.sitofp %61 : vector<32x128xi32> to vector<32x128xf32>
    %cst_25 = arith.constant -1.000000e+00 : f32
    %63 = vector.broadcast %cst_25 : f32 to vector<32x128xf32>
    %64 = arith.cmpf ole, %58, %63 : vector<32x128xf32>
    %65 = arith.extui %64 : vector<32x128xi1> to vector<32x128xi32>
    %66 = arith.sitofp %65 : vector<32x128xi32> to vector<32x128xf32>
    %cst_26 = arith.constant 1.000000e+00 : f32
    %67 = vector.broadcast %cst_26 : f32 to vector<32x128xf32>
    %68 = arith.mulf %67, %62 : vector<32x128xf32>
    %69 = arith.subf %58, %68 : vector<32x128xf32>
    %cst_27 = arith.constant -1.000000e+00 : f32
    %70 = vector.broadcast %cst_27 : f32 to vector<32x128xf32>
    %71 = arith.mulf %70, %66 : vector<32x128xf32>
    %72 = arith.subf %69, %71 : vector<32x128xf32>
    %cst_28 = arith.constant 0.951229453 : f32
    %73 = vector.broadcast %cst_28 : f32 to vector<32x128xf32>
    %74 = arith.mulf %72, %73 : vector<32x128xf32>
    %75 = vector.extract_strided_slice %17 {offsets = [96, 0], sizes = [32, 128], strides = [1, 1]} : vector<128x128xf32> to vector<32x128xf32>
    %76 = arith.addf %74, %75 : vector<32x128xf32>
    %cst_29 = arith.constant 1.000000e+00 : f32
    %77 = vector.broadcast %cst_29 : f32 to vector<32x128xf32>
    %78 = arith.cmpf oge, %76, %77 : vector<32x128xf32>
    %79 = arith.extui %78 : vector<32x128xi1> to vector<32x128xi32>
    %80 = arith.sitofp %79 : vector<32x128xi32> to vector<32x128xf32>
    %cst_30 = arith.constant -1.000000e+00 : f32
    %81 = vector.broadcast %cst_30 : f32 to vector<32x128xf32>
    %82 = arith.cmpf ole, %76, %81 : vector<32x128xf32>
    %83 = arith.extui %82 : vector<32x128xi1> to vector<32x128xi32>
    %84 = arith.sitofp %83 : vector<32x128xi32> to vector<32x128xf32>
    %85 = tpu.concatenate %26, %44, %62, %80 in 0 : vector<32x128xf32>, vector<32x128xf32>, vector<32x128xf32>, vector<32x128xf32> -> vector<128x128xf32>
    %86 = tpu.concatenate %30, %48, %66, %84 in 0 : vector<32x128xf32>, vector<32x128xf32>, vector<32x128xf32>, vector<32x128xf32> -> vector<128x128xf32>
    %87 = tpu.concatenate %85, %86 in 1 : vector<128x128xf32>, vector<128x128xf32> -> vector<128x256xf32>
    %c0_31 = arith.constant 0 : index
    %c0_32 = arith.constant 0 : index
    %88 = vector.load %arg5[%c0_31, %c0_32] : memref<768x128xbf16, #tpu.memory_space<vmem>>, vector<768x128xbf16>
    %c0_33 = arith.constant 0 : index
    %c0_34 = arith.constant 0 : index
    %89 = vector.load %arg6[%c0_33, %c0_34] : memref<1x128xf32, #tpu.memory_space<vmem>>, vector<1x128xf32>
    %90 = arith.truncf %87 : vector<128x256xf32> to vector<128x256xbf16>
    %cst_35 = arith.constant dense<0.000000e+00> : vector<128x256xf32>
    %91 = tpu.matmul %1, %90, %cst_35 {dimension_numbers = #tpu.dot_dimension_numbers<[1], [0], [0], [1], [0, 0, 1, 1], [], []>} : vector<128x128xbf16>, vector<128x256xbf16>, vector<128x256xf32> -> vector<128x256xf32>
    %92 = arith.truncf %91 : vector<128x256xf32> to vector<128x256xbf16>
    %cst_36 = arith.constant dense<0.000000e+00> : vector<128x256xf32>
    %93 = tpu.matmul %1, %92, %cst_36 {dimension_numbers = #tpu.dot_dimension_numbers<[1], [0], [0], [1], [0, 0, 1, 1], [], []>} : vector<128x128xbf16>, vector<128x256xbf16>, vector<128x256xf32> -> vector<128x256xf32>
    %cst_37 = arith.constant 2.000000e+00 : f32
    %94 = vector.broadcast %cst_37 : f32 to vector<128x256xf32>
    %95 = arith.mulf %94, %93 : vector<128x256xf32>
    %96 = arith.subf %95, %87 : vector<128x256xf32>
    %97 = tpu.concatenate %87, %91, %96 in 1 : vector<128x256xf32>, vector<128x256xf32>, vector<128x256xf32> -> vector<128x768xf32>
    %98 = arith.truncf %97 : vector<128x768xf32> to vector<128x768xbf16>
    %cst_38 = arith.constant dense<0.000000e+00> : vector<128x128xf32>
    %99 = tpu.matmul %98, %88, %cst_38 {dimension_numbers = #tpu.dot_dimension_numbers<[1], [0], [0], [1], [0, 0, 1, 1], [], []>} : vector<128x768xbf16>, vector<768x128xbf16>, vector<128x128xf32> -> vector<128x128xf32>
    %100 = vector.broadcast %89 : vector<1x128xf32> to vector<128x128xf32>
    %101 = arith.addf %99, %100 : vector<128x128xf32>
    %cst_39 = arith.constant 0.000000e+00 : f32
    %102 = vector.broadcast %cst_39 : f32 to vector<32x128xf32>
    %cst_40 = arith.constant 0.951229453 : f32
    %103 = vector.broadcast %cst_40 : f32 to vector<32x128xf32>
    %104 = arith.mulf %102, %103 : vector<32x128xf32>
    %105 = vector.extract_strided_slice %101 {offsets = [0, 0], sizes = [32, 128], strides = [1, 1]} : vector<128x128xf32> to vector<32x128xf32>
    %106 = arith.addf %104, %105 : vector<32x128xf32>
    %cst_41 = arith.constant 1.000000e+00 : f32
    %107 = vector.broadcast %cst_41 : f32 to vector<32x128xf32>
    %108 = arith.cmpf oge, %106, %107 : vector<32x128xf32>
    %109 = arith.extui %108 : vector<32x128xi1> to vector<32x128xi32>
    %110 = arith.sitofp %109 : vector<32x128xi32> to vector<32x128xf32>
    %cst_42 = arith.constant -1.000000e+00 : f32
    %111 = vector.broadcast %cst_42 : f32 to vector<32x128xf32>
    %112 = arith.cmpf ole, %106, %111 : vector<32x128xf32>
    %113 = arith.extui %112 : vector<32x128xi1> to vector<32x128xi32>
    %114 = arith.sitofp %113 : vector<32x128xi32> to vector<32x128xf32>
    %cst_43 = arith.constant 1.000000e+00 : f32
    %115 = vector.broadcast %cst_43 : f32 to vector<32x128xf32>
    %116 = arith.mulf %115, %110 : vector<32x128xf32>
    %117 = arith.subf %106, %116 : vector<32x128xf32>
    %cst_44 = arith.constant -1.000000e+00 : f32
    %118 = vector.broadcast %cst_44 : f32 to vector<32x128xf32>
    %119 = arith.mulf %118, %114 : vector<32x128xf32>
    %120 = arith.subf %117, %119 : vector<32x128xf32>
    %cst_45 = arith.constant 0.951229453 : f32
    %121 = vector.broadcast %cst_45 : f32 to vector<32x128xf32>
    %122 = arith.mulf %120, %121 : vector<32x128xf32>
    %123 = vector.extract_strided_slice %101 {offsets = [32, 0], sizes = [32, 128], strides = [1, 1]} : vector<128x128xf32> to vector<32x128xf32>
    %124 = arith.addf %122, %123 : vector<32x128xf32>
    %cst_46 = arith.constant 1.000000e+00 : f32
    %125 = vector.broadcast %cst_46 : f32 to vector<32x128xf32>
    %126 = arith.cmpf oge, %124, %125 : vector<32x128xf32>
    %127 = arith.extui %126 : vector<32x128xi1> to vector<32x128xi32>
    %128 = arith.sitofp %127 : vector<32x128xi32> to vector<32x128xf32>
    %cst_47 = arith.constant -1.000000e+00 : f32
    %129 = vector.broadcast %cst_47 : f32 to vector<32x128xf32>
    %130 = arith.cmpf ole, %124, %129 : vector<32x128xf32>
    %131 = arith.extui %130 : vector<32x128xi1> to vector<32x128xi32>
    %132 = arith.sitofp %131 : vector<32x128xi32> to vector<32x128xf32>
    %cst_48 = arith.constant 1.000000e+00 : f32
    %133 = vector.broadcast %cst_48 : f32 to vector<32x128xf32>
    %134 = arith.mulf %133, %128 : vector<32x128xf32>
    %135 = arith.subf %124, %134 : vector<32x128xf32>
    %cst_49 = arith.constant -1.000000e+00 : f32
    %136 = vector.broadcast %cst_49 : f32 to vector<32x128xf32>
    %137 = arith.mulf %136, %132 : vector<32x128xf32>
    %138 = arith.subf %135, %137 : vector<32x128xf32>
    %cst_50 = arith.constant 0.951229453 : f32
    %139 = vector.broadcast %cst_50 : f32 to vector<32x128xf32>
    %140 = arith.mulf %138, %139 : vector<32x128xf32>
    %141 = vector.extract_strided_slice %101 {offsets = [64, 0], sizes = [32, 128], strides = [1, 1]} : vector<128x128xf32> to vector<32x128xf32>
    %142 = arith.addf %140, %141 : vector<32x128xf32>
    %cst_51 = arith.constant 1.000000e+00 : f32
    %143 = vector.broadcast %cst_51 : f32 to vector<32x128xf32>
    %144 = arith.cmpf oge, %142, %143 : vector<32x128xf32>
    %145 = arith.extui %144 : vector<32x128xi1> to vector<32x128xi32>
    %146 = arith.sitofp %145 : vector<32x128xi32> to vector<32x128xf32>
    %cst_52 = arith.constant -1.000000e+00 : f32
    %147 = vector.broadcast %cst_52 : f32 to vector<32x128xf32>
    %148 = arith.cmpf ole, %142, %147 : vector<32x128xf32>
    %149 = arith.extui %148 : vector<32x128xi1> to vector<32x128xi32>
    %150 = arith.sitofp %149 : vector<32x128xi32> to vector<32x128xf32>
    %cst_53 = arith.constant 1.000000e+00 : f32
    %151 = vector.broadcast %cst_53 : f32 to vector<32x128xf32>
    %152 = arith.mulf %151, %146 : vector<32x128xf32>
    %153 = arith.subf %142, %152 : vector<32x128xf32>
    %cst_54 = arith.constant -1.000000e+00 : f32
    %154 = vector.broadcast %cst_54 : f32 to vector<32x128xf32>
    %155 = arith.mulf %154, %150 : vector<32x128xf32>
    %156 = arith.subf %153, %155 : vector<32x128xf32>
    %cst_55 = arith.constant 0.951229453 : f32
    %157 = vector.broadcast %cst_55 : f32 to vector<32x128xf32>
    %158 = arith.mulf %156, %157 : vector<32x128xf32>
    %159 = vector.extract_strided_slice %101 {offsets = [96, 0], sizes = [32, 128], strides = [1, 1]} : vector<128x128xf32> to vector<32x128xf32>
    %160 = arith.addf %158, %159 : vector<32x128xf32>
    %cst_56 = arith.constant 1.000000e+00 : f32
    %161 = vector.broadcast %cst_56 : f32 to vector<32x128xf32>
    %162 = arith.cmpf oge, %160, %161 : vector<32x128xf32>
    %163 = arith.extui %162 : vector<32x128xi1> to vector<32x128xi32>
    %164 = arith.sitofp %163 : vector<32x128xi32> to vector<32x128xf32>
    %cst_57 = arith.constant -1.000000e+00 : f32
    %165 = vector.broadcast %cst_57 : f32 to vector<32x128xf32>
    %166 = arith.cmpf ole, %160, %165 : vector<32x128xf32>
    %167 = arith.extui %166 : vector<32x128xi1> to vector<32x128xi32>
    %168 = arith.sitofp %167 : vector<32x128xi32> to vector<32x128xf32>
    %169 = tpu.concatenate %110, %128, %146, %164 in 0 : vector<32x128xf32>, vector<32x128xf32>, vector<32x128xf32>, vector<32x128xf32> -> vector<128x128xf32>
    %170 = tpu.concatenate %114, %132, %150, %168 in 0 : vector<32x128xf32>, vector<32x128xf32>, vector<32x128xf32>, vector<32x128xf32> -> vector<128x128xf32>
    %171 = tpu.concatenate %169, %170 in 1 : vector<128x128xf32>, vector<128x128xf32> -> vector<128x256xf32>
    %c0_58 = arith.constant 0 : index
    %c0_59 = arith.constant 0 : index
    %172 = vector.load %arg7[%c0_58, %c0_59] : memref<768x128xbf16, #tpu.memory_space<vmem>>, vector<768x128xbf16>
    %c0_60 = arith.constant 0 : index
    %c0_61 = arith.constant 0 : index
    %173 = vector.load %arg8[%c0_60, %c0_61] : memref<1x128xf32, #tpu.memory_space<vmem>>, vector<1x128xf32>
    %174 = arith.truncf %171 : vector<128x256xf32> to vector<128x256xbf16>
    %cst_62 = arith.constant dense<0.000000e+00> : vector<128x256xf32>
    %175 = tpu.matmul %1, %174, %cst_62 {dimension_numbers = #tpu.dot_dimension_numbers<[1], [0], [0], [1], [0, 0, 1, 1], [], []>} : vector<128x128xbf16>, vector<128x256xbf16>, vector<128x256xf32> -> vector<128x256xf32>
    %176 = arith.truncf %175 : vector<128x256xf32> to vector<128x256xbf16>
    %cst_63 = arith.constant dense<0.000000e+00> : vector<128x256xf32>
    %177 = tpu.matmul %1, %176, %cst_63 {dimension_numbers = #tpu.dot_dimension_numbers<[1], [0], [0], [1], [0, 0, 1, 1], [], []>} : vector<128x128xbf16>, vector<128x256xbf16>, vector<128x256xf32> -> vector<128x256xf32>
    %cst_64 = arith.constant 2.000000e+00 : f32
    %178 = vector.broadcast %cst_64 : f32 to vector<128x256xf32>
    %179 = arith.mulf %178, %177 : vector<128x256xf32>
    %180 = arith.subf %179, %171 : vector<128x256xf32>
    %181 = tpu.concatenate %171, %175, %180 in 1 : vector<128x256xf32>, vector<128x256xf32>, vector<128x256xf32> -> vector<128x768xf32>
    %182 = arith.truncf %181 : vector<128x768xf32> to vector<128x768xbf16>
    %cst_65 = arith.constant dense<0.000000e+00> : vector<128x128xf32>
    %183 = tpu.matmul %182, %172, %cst_65 {dimension_numbers = #tpu.dot_dimension_numbers<[1], [0], [0], [1], [0, 0, 1, 1], [], []>} : vector<128x768xbf16>, vector<768x128xbf16>, vector<128x128xf32> -> vector<128x128xf32>
    %184 = vector.broadcast %173 : vector<1x128xf32> to vector<128x128xf32>
    %185 = arith.addf %183, %184 : vector<128x128xf32>
    %cst_66 = arith.constant 0.000000e+00 : f32
    %186 = vector.broadcast %cst_66 : f32 to vector<32x128xf32>
    %cst_67 = arith.constant 0.951229453 : f32
    %187 = vector.broadcast %cst_67 : f32 to vector<32x128xf32>
    %188 = arith.mulf %186, %187 : vector<32x128xf32>
    %189 = vector.extract_strided_slice %185 {offsets = [0, 0], sizes = [32, 128], strides = [1, 1]} : vector<128x128xf32> to vector<32x128xf32>
    %190 = arith.addf %188, %189 : vector<32x128xf32>
    %cst_68 = arith.constant 1.000000e+00 : f32
    %191 = vector.broadcast %cst_68 : f32 to vector<32x128xf32>
    %192 = arith.cmpf oge, %190, %191 : vector<32x128xf32>
    %193 = arith.extui %192 : vector<32x128xi1> to vector<32x128xi32>
    %194 = arith.sitofp %193 : vector<32x128xi32> to vector<32x128xf32>
    %cst_69 = arith.constant -1.000000e+00 : f32
    %195 = vector.broadcast %cst_69 : f32 to vector<32x128xf32>
    %196 = arith.cmpf ole, %190, %195 : vector<32x128xf32>
    %197 = arith.extui %196 : vector<32x128xi1> to vector<32x128xi32>
    %198 = arith.sitofp %197 : vector<32x128xi32> to vector<32x128xf32>
    %cst_70 = arith.constant 1.000000e+00 : f32
    %199 = vector.broadcast %cst_70 : f32 to vector<32x128xf32>
    %200 = arith.mulf %199, %194 : vector<32x128xf32>
    %201 = arith.subf %190, %200 : vector<32x128xf32>
    %cst_71 = arith.constant -1.000000e+00 : f32
    %202 = vector.broadcast %cst_71 : f32 to vector<32x128xf32>
    %203 = arith.mulf %202, %198 : vector<32x128xf32>
    %204 = arith.subf %201, %203 : vector<32x128xf32>
    %cst_72 = arith.constant 0.951229453 : f32
    %205 = vector.broadcast %cst_72 : f32 to vector<32x128xf32>
    %206 = arith.mulf %204, %205 : vector<32x128xf32>
    %207 = vector.extract_strided_slice %185 {offsets = [32, 0], sizes = [32, 128], strides = [1, 1]} : vector<128x128xf32> to vector<32x128xf32>
    %208 = arith.addf %206, %207 : vector<32x128xf32>
    %cst_73 = arith.constant 1.000000e+00 : f32
    %209 = vector.broadcast %cst_73 : f32 to vector<32x128xf32>
    %210 = arith.cmpf oge, %208, %209 : vector<32x128xf32>
    %211 = arith.extui %210 : vector<32x128xi1> to vector<32x128xi32>
    %212 = arith.sitofp %211 : vector<32x128xi32> to vector<32x128xf32>
    %cst_74 = arith.constant -1.000000e+00 : f32
    %213 = vector.broadcast %cst_74 : f32 to vector<32x128xf32>
    %214 = arith.cmpf ole, %208, %213 : vector<32x128xf32>
    %215 = arith.extui %214 : vector<32x128xi1> to vector<32x128xi32>
    %216 = arith.sitofp %215 : vector<32x128xi32> to vector<32x128xf32>
    %cst_75 = arith.constant 1.000000e+00 : f32
    %217 = vector.broadcast %cst_75 : f32 to vector<32x128xf32>
    %218 = arith.mulf %217, %212 : vector<32x128xf32>
    %219 = arith.subf %208, %218 : vector<32x128xf32>
    %cst_76 = arith.constant -1.000000e+00 : f32
    %220 = vector.broadcast %cst_76 : f32 to vector<32x128xf32>
    %221 = arith.mulf %220, %216 : vector<32x128xf32>
    %222 = arith.subf %219, %221 : vector<32x128xf32>
    %cst_77 = arith.constant 0.951229453 : f32
    %223 = vector.broadcast %cst_77 : f32 to vector<32x128xf32>
    %224 = arith.mulf %222, %223 : vector<32x128xf32>
    %225 = vector.extract_strided_slice %185 {offsets = [64, 0], sizes = [32, 128], strides = [1, 1]} : vector<128x128xf32> to vector<32x128xf32>
    %226 = arith.addf %224, %225 : vector<32x128xf32>
    %cst_78 = arith.constant 1.000000e+00 : f32
    %227 = vector.broadcast %cst_78 : f32 to vector<32x128xf32>
    %228 = arith.cmpf oge, %226, %227 : vector<32x128xf32>
    %229 = arith.extui %228 : vector<32x128xi1> to vector<32x128xi32>
    %230 = arith.sitofp %229 : vector<32x128xi32> to vector<32x128xf32>
    %cst_79 = arith.constant -1.000000e+00 : f32
    %231 = vector.broadcast %cst_79 : f32 to vector<32x128xf32>
    %232 = arith.cmpf ole, %226, %231 : vector<32x128xf32>
    %233 = arith.extui %232 : vector<32x128xi1> to vector<32x128xi32>
    %234 = arith.sitofp %233 : vector<32x128xi32> to vector<32x128xf32>
    %cst_80 = arith.constant 1.000000e+00 : f32
    %235 = vector.broadcast %cst_80 : f32 to vector<32x128xf32>
    %236 = arith.mulf %235, %230 : vector<32x128xf32>
    %237 = arith.subf %226, %236 : vector<32x128xf32>
    %cst_81 = arith.constant -1.000000e+00 : f32
    %238 = vector.broadcast %cst_81 : f32 to vector<32x128xf32>
    %239 = arith.mulf %238, %234 : vector<32x128xf32>
    %240 = arith.subf %237, %239 : vector<32x128xf32>
    %cst_82 = arith.constant 0.951229453 : f32
    %241 = vector.broadcast %cst_82 : f32 to vector<32x128xf32>
    %242 = arith.mulf %240, %241 : vector<32x128xf32>
    %243 = vector.extract_strided_slice %185 {offsets = [96, 0], sizes = [32, 128], strides = [1, 1]} : vector<128x128xf32> to vector<32x128xf32>
    %244 = arith.addf %242, %243 : vector<32x128xf32>
    %cst_83 = arith.constant 1.000000e+00 : f32
    %245 = vector.broadcast %cst_83 : f32 to vector<32x128xf32>
    %246 = arith.cmpf oge, %244, %245 : vector<32x128xf32>
    %247 = arith.extui %246 : vector<32x128xi1> to vector<32x128xi32>
    %248 = arith.sitofp %247 : vector<32x128xi32> to vector<32x128xf32>
    %cst_84 = arith.constant -1.000000e+00 : f32
    %249 = vector.broadcast %cst_84 : f32 to vector<32x128xf32>
    %250 = arith.cmpf ole, %244, %249 : vector<32x128xf32>
    %251 = arith.extui %250 : vector<32x128xi1> to vector<32x128xi32>
    %252 = arith.sitofp %251 : vector<32x128xi32> to vector<32x128xf32>
    %253 = tpu.concatenate %194, %212, %230, %248 in 0 : vector<32x128xf32>, vector<32x128xf32>, vector<32x128xf32>, vector<32x128xf32> -> vector<128x128xf32>
    %254 = tpu.concatenate %198, %216, %234, %252 in 0 : vector<32x128xf32>, vector<32x128xf32>, vector<32x128xf32>, vector<32x128xf32> -> vector<128x128xf32>
    %255 = tpu.concatenate %253, %254 in 1 : vector<128x128xf32>, vector<128x128xf32> -> vector<128x256xf32>
    %cst_85 = arith.constant dense<0.000000e+00> : vector<256xf32>
    %256 = vector.multi_reduction <add>, %255, %cst_85 [0] : vector<128x256xf32> to vector<256xf32>
    %257 = vector.shape_cast %256 : vector<256xf32> to vector<1x256xf32>
    %cst_86 = arith.constant 1.280000e+02 : f32
    %258 = vector.broadcast %cst_86 : f32 to vector<1x256xf32>
    %259 = arith.divf %257, %258 : vector<1x256xf32>
    %c0_87 = arith.constant 0 : index
    %c0_88 = arith.constant 0 : index
    %c0_89 = arith.constant 0 : index
    %260 = vector.load %arg9[%c0_87, %c0_88, %c0_89] : memref<1x1x256xf32, #tpu.memory_space<vmem>>, vector<1x1x256xf32>
    %261 = vector.shape_cast %260 : vector<1x1x256xf32> to vector<1x256xf32>
    %262 = vector.shape_cast %259 : vector<1x256xf32> to vector<1x1x256xf32>
    tpu.vector_store %arg9[%c0_87, %c0_88, %c0_89], %262 {strides = array<i32>} : memref<1x1x256xf32, #tpu.memory_space<vmem>>, vector<1x1x256xf32>,
    return
  }
  func.func @transform_0(%arg0: i32) -> (i32, i32, i32) {
    %c0_i32 = arith.constant 0 : i32
    %c0_i32_0 = arith.constant 0 : i32
    %c0_i32_1 = arith.constant 0 : i32
    return %arg0, %c0_i32, %c0_i32_0 : i32, i32, i32
  }
  func.func @transform_1(%arg0: i32) -> (i32, i32, i32) {
    %c0_i32 = arith.constant 0 : i32
    %c0_i32_0 = arith.constant 0 : i32
    %c0_i32_1 = arith.constant 0 : i32
    return %arg0, %c0_i32, %c0_i32_0 : i32, i32, i32
  }
  func.func @transform_2(%arg0: i32) -> (i32, i32) {
    %c0_i32 = arith.constant 0 : i32
    %c0_i32_0 = arith.constant 0 : i32
    %c0_i32_1 = arith.constant 0 : i32
    return %c0_i32, %c0_i32_0 : i32, i32
  }
  func.func @transform_3(%arg0: i32) -> (i32, i32) {
    %c0_i32 = arith.constant 0 : i32
    %c0_i32_0 = arith.constant 0 : i32
    %c0_i32_1 = arith.constant 0 : i32
    return %c0_i32, %c0_i32_0 : i32, i32
  }
  func.func @transform_4(%arg0: i32) -> (i32, i32) {
    %c0_i32 = arith.constant 0 : i32
    %c0_i32_0 = arith.constant 0 : i32
    %c0_i32_1 = arith.constant 0 : i32
    return %c0_i32, %c0_i32_0 : i32, i32
  }
  func.func @transform_5(%arg0: i32) -> (i32, i32) {
    %c0_i32 = arith.constant 0 : i32
    %c0_i32_0 = arith.constant 0 : i32
    %c0_i32_1 = arith.constant 0 : i32
    return %c0_i32, %c0_i32_0 : i32, i32
  }
  func.func @transform_6(%arg0: i32) -> (i32, i32) {
    %c0_i32 = arith.constant 0 : i32
    %c0_i32_0 = arith.constant 0 : i32
    %c0_i32_1 = arith.constant 0 : i32
    return %c0_i32, %c0_i32_0 : i32, i32
  }
  func.func @transform_7(%arg0: i32) -> (i32, i32) {
    %c0_i32 = arith.constant 0 : i32
    %c0_i32_0 = arith.constant 0 : i32
    %c0_i32_1 = arith.constant 0 : i32
    return %c0_i32, %c0_i32_0 : i32, i32
  }
  func.func @transform_8(%arg0: i32) -> (i32, i32, i32) {
    %c0_i32 = arith.constant 0 : i32
    %c0_i32_0 = arith.constant 0 : i32
    %c0_i32_1 = arith.constant 0 : i32
    return %arg0, %c0_i32, %c0_i32_0 : i32, i32, i32
  }
}

</mosaic_0001>

<bundles_post_ra>
// kernel: sgwcn_forward.2
= control target key start
LH: loop header
LB: loop body
LE: loop exit
PB: predicated region body
PF: predicated region fallthrough
CT: control target
= control target key end

     0   :  { %vm30_vm0 = vcmask 64512   ;;  %vm168_vm1 = vcmask 130048   ;;  %s305_s1 = inlined_call_operand.vmem [shape: f32[8,16], index: 1, kind: input, shape index: {}]   ;;  %s306_s0 = inlined_call_operand.vmem [shape: f32[64,8], index: 0, kind: input, shape index: {}]   ;;  %s307_s2 = inlined_call_operand.vmem [shape: f32[1,16], index: 2, kind: input, shape index: {}]   ;;  %s308_s3 = inlined_call_operand.vmem [shape: f32[64,16], index: 3, kind: output, shape index: {}]  }
   0x1   :  { %v22_v0 = vld [vmem:[%s305_s1] sm:$0xff]  ;;  %v15_v3 = vld [vmem:[%s306_s0 + $0x8] sm:$0xff]  ;;  %v16_v5 = vld [vmem:[%s306_s0 + $0x10] sm:$0xff] }
   0x2   :  { %v14_v1 = vld [vmem:[%s306_s0] sm:$0xff]  ;;  %199 = vmatprep.subr.mxu0 %v22_v0  ;;  %213 = vmatprep.subr.mxu1 %v22_v0  ;;  %v19_v4 = vld [vmem:[%s306_s0 + $0x28] sm:$0xff]  ;;  %v20_v6 = vld [vmem:[%s306_s0 + $0x30] sm:$0xff] }
   0x3   :  { %v18_v2 = vld [vmem:[%s306_s0 + $0x20] sm:$0xff]  ;;  %200 = vmatpush3.msra.mxu0 %v22_v0  ;;  %214 = vmatpush3.msra.mxu1 %v22_v0  ;;  %v17_v7 = vld [vmem:[%s306_s0 + $0x18] sm:$0xff] }
   0x4   :  { %201 = vmatprep.mubr.msk.f32.mxu0 %vm30_vm0, %v14_v1  ;;  %207 = vmatprep.mubr.msk.f32.mxu1 %vm30_vm0, %v18_v2  ;;  %v21_v8 = vld [vmem:[%s306_s0 + $0x38] sm:$0xff]  ;;  %v181_v9 = vld [vmem:[%s307_s2] ss:$0 sm:$0xff] }
   0x5   :  { %202 = vmatmul.mubr.msk.f32.vlgmr.msra.gmra.mxu0 %vm30_vm0, %v15_v3  ;;  %208 = vmatmul.mubr.msk.f32.vlgmr.msra.gmra.mxu1 %vm30_vm0, %v19_v4 }
   0x6   :  { %204 = vmatprep.mubr.msk.f32.mxu0 %vm30_vm0, %v16_v5  ;;  %210 = vmatprep.mubr.msk.f32.mxu1 %vm30_vm0, %v20_v6 }
   0x9   :  { %205 = vmatmul.mubr.msk.f32.gmra.mxu0 %vm30_vm0, %v17_v7  ;;  %211 = vmatmul.mubr.msk.f32.gmra.mxu1 %vm30_vm0, %v21_v8 }
  0xc5   :  { %v203_v10 = vpop.f32.mrf.mxu0  ;;  %v209_v11 = vpop.f32.mrf.mxu1 }
  0xc6   :  { %v127_v12 = vadd.f32 %v203_v10, %v181_v9  ;;  %v147_v13 = vadd.f32 %v209_v11, %v181_v9 }
  0xc7   :  { %v121_v14 = vpop.f32.mrf.mxu0  ;;  %v141_v15 = vpop.f32.mrf.mxu1 }
  0xc8   :  { %v161_v16 = vmax.f32 %v127_v12, 0.0  ;;  %v165_v17 = vmax.f32 %v147_v13, 0.0  ;;  %v122_v18 = vadd.f32 %v181_v9, %v121_v14  ;;  %v142_v19 = vadd.f32 %v181_v9, %v141_v15 }
  0xc9   :  { %v206_v20 = vpop.f32.mrf.mxu0  ;;  %v212_v21 = vpop.f32.mrf.mxu1 }
  0xca   :  { %170 = vst.msk [vmem:[%s308_s3 + $0x8] sm:$0xff] %vm168_vm1, %v161_v16  ;;  %174 = vst.msk [vmem:[%s308_s3 + $0x28] sm:$0xff] %vm168_vm1, %v165_v17  ;;  %v160_v22 = vmax.f32 %v122_v18, 0.0  ;;  %v164_v23 = vmax.f32 %v142_v19, 0.0  ;;  %v137_v24 = vadd.f32 %v206_v20, %v181_v9  ;;  %v157_v25 = vadd.f32 %v212_v21, %v181_v9 }
  0xcb   :  { %v131_v26 = vpop.f32.mrf.mxu0  ;;  %v151_v27 = vpop.f32.mrf.mxu1 }
  0xcc   :  { %169 = vst.msk [vmem:[%s308_s3] sm:$0xff] %vm168_vm1, %v160_v22  ;;  %173 = vst.msk [vmem:[%s308_s3 + $0x20] sm:$0xff] %vm168_vm1, %v164_v23  ;;  %v163_v28 = vmax.f32 %v137_v24, 0.0  ;;  %v167_v29 = vmax.f32 %v157_v25, 0.0  ;;  %v132_v30 = vadd.f32 %v181_v9, %v131_v26  ;;  %v152_v31 = vadd.f32 %v181_v9, %v151_v27 }
  0xce   :  { %172 = vst.msk [vmem:[%s308_s3 + $0x18] sm:$0xff] %vm168_vm1, %v163_v28  ;;  %176 = vst.msk [vmem:[%s308_s3 + $0x38] sm:$0xff] %vm168_vm1, %v167_v29  ;;  %v162_v32 = vmax.f32 %v132_v30, 0.0  ;;  %v166_v33 = vmax.f32 %v152_v31, 0.0 }
  0xd0   :  { %171 = vst.msk [vmem:[%s308_s3 + $0x10] sm:$0xff] %vm168_vm1, %v162_v32  ;;  %175 = vst.msk [vmem:[%s308_s3 + $0x30] sm:$0xff] %vm168_vm1, %v166_v33 }

// kernel: sgwcn_forward.3
= control target key start
LH: loop header
LB: loop body
LE: loop exit
PB: predicated region body
PF: predicated region fallthrough
CT: control target
= control target key end

     0   :  { %s4891_s27 = smov 0   ;;  %s6955_s0 = inlined_call_operand.vmem [shape: f32[2,128,128], index: 0, kind: input, shape index: {}]   ;;  %s6956_s1 = inlined_call_operand.vmem [shape: bf16[2,128,128], index: 1, kind: input, shape index: {}]   ;;  %s6957_s2 = inlined_call_operand.vmem [shape: bf16[384,128], index: 2, kind: input, shape index: {}]   ;;  %s6958_s3 = inlined_call_operand.vmem [shape: f32[1,128], index: 3, kind: input, shape index: {}]   ;;  %s6959_s4 = inlined_call_operand.vmem [shape: bf16[768,128], index: 4, kind: input, shape index: {}]   ;;  %s6960_s5 = inlined_call_operand.vmem [shape: f32[1,128], index: 5, kind: input, shape index: {}]   ;;  %s6961_s6 = inlined_call_operand.vmem [shape: bf16[768,128], index: 6, kind: input, shape index: {}]   ;;  %s6962_s7 = inlined_call_operand.vmem [shape: f32[1,128], index: 7, kind: input, shape index: {}]   ;;  %s6963_s8 = inlined_call_operand.vmem [shape: f32[2,1,256], index: 8, kind: output, shape index: {}]  }
   0x1 LB: > { %s3701_s28 = sadd.s32 4294967295, %s4840_s27   ;;  %p3705_p0 = scmp.ge.s32.totalorder %s4840_s27, 1  ;;  %s4840_s27 = sphi %s4891_s27, %s18_s27  }
   0x2   : > { %p272_p1 = scmp.lt.s32.totalorder %s4840_s27, 3 }
   0x4   : > { %p273_p2 = pnand %p3705_p0, %p272_p1 }
   0x6   : > { %276 = sbr.rel (%p273_p2) target bundleno = 2351 (0x92f), region = 52 }
   0xb   : > { %p310_p3 = scmp.lt.s32.totalorder %s3701_s28, 1  ;;  %v4698_v25 = vld [vmem:[%s6957_s2 + $0x78] sm:$0xff]   ;;  %v4700_v29 = vld [vmem:[%s6957_s2 + $0x70] sm:$0xff]   ;;  %v4702_v31 = vld [vmem:[%s6957_s2 + $0x68] sm:$0xff]  }
   0xc   : > { %v4699_v28 = vld [vmem:[%s6957_s2 + $0x38] sm:$0xff]   ;;  %v4701_v30 = vld [vmem:[%s6957_s2 + $0x30] sm:$0xff]   ;;  %v4703_v34 = vld [vmem:[%s6957_s2 + $0x28] sm:$0xff]  }
   0xd   : > { %s7206_s28 = smov (!%p310_p3, %s3701_s28), 1  ;;  %v4704_v35 = vld [vmem:[%s6957_s2 + $0x60] sm:$0xff]   ;;  %v4706_v37 = vld [vmem:[%s6957_s2 + $0x58] sm:$0xff]   ;;  %v4708_v41 = vld [vmem:[%s6957_s2 + $0x50] sm:$0xff]  }
   0xe   : > { %s4068_s29 = sshll.u32 %s7206_s28, 7  ;;  %s4069_s11 = sshll.u32 %s7206_s28, 6  ;;  %v4705_v36 = vld [vmem:[%s6957_s2 + $0x20] sm:$0xff]   ;;  %v4707_v40 = vld [vmem:[%s6957_s2 + $0x18] sm:$0xff]   ;;  %v4709_v42 = vld [vmem:[%s6957_s2 + $0x10] sm:$0xff]  }
   0xf   : > { %s4905_s10 = scalar_lea.vmem %s6955_s0, %s4068_s29  ;;  %s4937_s14 = scalar_lea.vmem %s6956_s1, %s4069_s11  ;;  %v4710_v44 = vld [vmem:[%s6957_s2 + $0x48] sm:$0xff]   ;;  %v4712_v46 = vld [vmem:[%s6957_s2 + $0x40] sm:$0xff]  }
  0x10   : > { %v4909_v0 = vld [vmem:[%s4905_s10 + $0x70] sm:$0xff]  ;;  %v4912_v1 = vld [vmem:[%s4905_s10 + $0x78] sm:$0xff]  ;;  %v4915_v2 = vld [vmem:[%s4905_s10 + $0x60] sm:$0xff]  ;;  %s3710_s9 = sshll.u32 %s7206_s28, 1 }
  0x11   : > { %v4919_v3 = vpack.c.bf16 %v4912_v1, %v4909_v0  ;;  %v4922_v4 = vld [vmem:[%s4905_s10 + $0x68] sm:$0xff]  ;;  %v4929_v6 = vld [vmem:[%s4905_s10 + $0x50] sm:$0xff]  ;;  %v4932_v7 = vld [vmem:[%s4905_s10 + $0x58] sm:$0xff]  ;;  %s323_s12 = scalar_lea.vmem %s6963_s8, %s3710_s9 }
  0x12   : > { %v4926_v5 = vpack.c.bf16 %v4922_v4, %v4915_v2  ;;  %v4942_v8 = vld [vmem:[%s4905_s10 + $0x40] sm:$0xff]  ;;  %v4947_v9 = vpack.c.bf16 %v4932_v7, %v4929_v6  ;;  %v4950_v10 = vld [vmem:[%s4905_s10 + $0x48] sm:$0xff]  ;;  %v4960_v13 = vld [vmem:[%s4905_s10 + $0x30] sm:$0xff] }
  0x13   : > { %4566 = vmatprep.subr.bf16.mxu0 %v4919_v3  ;;  %v4690_v11 = vld [vmem:[%s4937_s14] sm:$0xff]   ;;  %v4957_v12 = vpack.c.bf16 %v4950_v10, %v4942_v8  ;;  %v4963_v14 = vld [vmem:[%s4905_s10 + $0x38] sm:$0xff]  ;;  %v4975_v17 = vld [vmem:[%s4905_s10 + $0x28] sm:$0xff] }
  0x14   : > { %4567 = vmatpush3.bf16.msra.mxu0 %v4919_v3  ;;  %4582 = vmatprep.mubr.bf16.mxu0 %v4690_v11  ;;  %v4969_v15 = vpack.c.bf16 %v4963_v14, %v4960_v13  ;;  %v4972_v16 = vld [vmem:[%s4905_s10 + $0x20] sm:$0xff]  ;;  %v4984_v19 = vld [vmem:[%s4905_s10 + $0x10] sm:$0xff]  ;;  %v4987_v20 = vld [vmem:[%s4905_s10 + $0x18] sm:$0xff] }
  0x15   : > { %4568 = vmatprep.subr.bf16.mxu0 %v4926_v5  ;;  %4614 = vmatprep.mubr.bf16.mxu1 %v4690_v11  ;;  %v4981_v18 = vpack.c.bf16 %v4975_v17, %v4972_v16  ;;  %v4991_v21 = vld [vmem:[%s4905_s10] sm:$0xff]  ;;  %v4994_v22 = vld [vmem:[%s4905_s10 + $0x8] sm:$0xff]  ;;  %v4999_v23 = vpack.c.bf16 %v4987_v20, %v4984_v19  ;;  %v5013_v27 = vld [vmem:[%s4937_s14 + $0x10] sm:$0xff]  }
  0x16   : > { %v406_v24 = vpack.c.bf16 %v4994_v22, %v4991_v21  ;;  %v5010_v26 = vld [vmem:[%s4937_s14 + $0x8] sm:$0xff]   ;;  %v5030_v32 = vld [vmem:[%s4937_s14 + $0x18] sm:$0xff]   ;;  %v5033_v33 = vld [vmem:[%s4937_s14 + $0x20] sm:$0xff]  }
  0x17   : > { %v5050_v38 = vld [vmem:[%s4937_s14 + $0x28] sm:$0xff]   ;;  %v5053_v39 = vld [vmem:[%s4937_s14 + $0x30] sm:$0xff]   ;;  %v5067_v43 = vld [vmem:[%s4937_s14 + $0x38] sm:$0xff]  }
  0x18   : > { %4569 = vmatpush3.bf16.msra.mxu0 %v4926_v5  ;;  %v4711_v45 = vld [vmem:[%s6957_s2 + $0x8] sm:$0xff]   ;;  %v4713_v47 = vld [vmem:[%s6957_s2] sm:$0xff]  }
  0x19   : > { %4570 = vmatprep.subr.bf16.mxu0 %v4947_v9 }
  0x1c   : > { %4571 = vmatpush3.bf16.msra.mxu0 %v4947_v9 }
  0x1d   : > { %4572 = vmatprep.subr.bf16.mxu0 %v4957_v12 }
  0x20   : > { %4573 = vmatpush3.bf16.msra.mxu0 %v4957_v12 }
  0x21   : > { %4574 = vmatprep.subr.bf16.mxu0 %v4969_v15 }
  0x24   : > { %4575 = vmatpush3.bf16.msra.mxu0 %v4969_v15 }
  0x25   : > { %4576 = vmatprep.subr.bf16.mxu0 %v4981_v18 }
  0x28   : > { %4577 = vmatpush3.bf16.msra.mxu0 %v4981_v18 }
  0x29   : > { %4578 = vmatprep.subr.bf16.mxu0 %v4999_v23 }
  0x2c   : > { %4579 = vmatpush3.bf16.msra.mxu0 %v4999_v23 }
  0x2d   : > { %4580 = vmatprep.subr.bf16.mxu0 %v406_v24 }
  0x30   : > { %4581 = vmatpush3.bf16.msra.mxu0 %v406_v24 }
  0x31   : > { %4102 = vmatprep.subr.bf16.mxu0 %v4698_v25 }
  0x33   : > { %4583 = vmatmul.mubr.bf16.vlgmr.msra.gmra.mxu0 %v5010_v26 }
  0x34   : > { %4586 = vmatprep.mubr.bf16.mxu0 %v5013_v27  ;;  %4103 = vmatpush3.bf16.msra.mxu0 %v4699_v28 }
  0x35   : > { %4104 = vmatprep.subr.bf16.mxu0 %v4700_v29 }
  0x38   : > { %4105 = vmatpush3.bf16.msra.mxu0 %v4701_v30 }
  0x39   : > { %4106 = vmatprep.subr.bf16.mxu0 %v4702_v31 }
  0x3b   : > { %4587 = vmatmul.mubr.bf16.gmra.mxu0 %v5030_v32 }
  0x3c   : > { %4590 = vmatprep.mubr.bf16.mxu0 %v5033_v33  ;;  %4107 = vmatpush3.bf16.msra.mxu0 %v4703_v34 }
  0x3d   : > { %4108 = vmatprep.subr.bf16.mxu0 %v4704_v35 }
  0x40   : > { %4109 = vmatpush3.bf16.msra.mxu0 %v4705_v36 }
  0x41   : > { %4110 = vmatprep.subr.bf16.mxu0 %v4706_v37 }
  0x43   : > { %4591 = vmatmul.mubr.bf16.gmra.mxu0 %v5050_v38 }
  0x44   : > { %4594 = vmatprep.mubr.bf16.mxu0 %v5053_v39  ;;  %4111 = vmatpush3.bf16.msra.mxu0 %v4707_v40 }
  0x45   : > { %4112 = vmatprep.subr.bf16.mxu0 %v4708_v41 }
  0x48   : > { %4113 = vmatpush3.bf16.msra.mxu0 %v4709_v42 }
  0x49   : > { %4114 = vmatprep.subr.bf16.mxu0 %v4710_v44 }
  0x4b   : > { %4595 = vmatmul.mubr.bf16.gmra.mxu0 %v5067_v43 }
  0x4c   : > { %4115 = vmatpush3.bf16.msra.mxu0 %v4711_v45 }
  0x4d   : > { %4116 = vmatprep.subr.bf16.mxu0 %v4712_v46 }
  0x50   : > { %4117 = vmatpush3.bf16.msra.mxu0 %v4713_v47 }
  0xf3   : > { %v4584_v48 = vpop.f32.mrf.mxu0 }
  0xf5   : > { %v496_v49 = vpop.f32.mrf.mxu0 }
  0xf7   : > { %v4585_v50 = vpop.f32.mrf.mxu0 }
  0xf8   : > { %v560_v54 = vpack.c.bf16 %v4585_v50, %v4584_v48 }
  0xf9   : > { %v499_v51 = vpop.f32.mrf.mxu0 }
  0xfa   : > { %v559_v52 = vpack.c.bf16 %v499_v51, %v496_v49 }
  0xfb   : > { %v4588_v53 = vpop.f32.mrf.mxu0 }
  0xfc   : > { %886 = vmatprep.mubr.bf16.mxu0 %v559_v52 }
  0xfd   : > { %v512_v55 = vpop.f32.mrf.mxu0  ;;  %887 = vmatmul.mubr.bf16.vlgmr.msra.gmra.mxu0 %v406_v24 }
  0xfe   : > { %894 = vmatprep.mubr.bf16.mxu0 %v560_v54 }
  0xff   : > { %v4589_v56 = vpop.f32.mrf.mxu0 }
 0x100   : > { %v562_v11 = vpack.c.bf16 %v4589_v56, %v4588_v53 }
 0x101   : > { %v515_v57 = vpop.f32.mrf.mxu0 }
 0x102   : > { %v561_v59 = vpack.c.bf16 %v515_v57, %v512_v55 }
 0x103   : > { %v4592_v58 = vpop.f32.mrf.mxu0 }
 0x105   : > { %v528_v60 = vpop.f32.mrf.mxu0  ;;  %895 = vmatmul.mubr.bf16.gmra.mxu0 %v4999_v23 }
 0x106   : > { %902 = vmatprep.mubr.bf16.mxu0 %v561_v59 }
 0x107   : > { %v4593_v61 = vpop.f32.mrf.mxu0 }
 0x108   : > { %v564_v23 = vpack.c.bf16 %v4593_v61, %v4592_v58 }
 0x109   : > { %v531_v62 = vpop.f32.mrf.mxu0 }
 0x10a   : > { %v563_v31 = vpack.c.bf16 %v531_v62, %v528_v60 }
 0x10b   : > { %v4596_v63 = vpop.f32.mrf.mxu0 }
 0x10d   : > { %v544_v25 = vpop.f32.mrf.mxu0  ;;  %903 = vmatmul.mubr.bf16.gmra.mxu0 %v4981_v18  ;;  %v4718_v18 = vld [vmem:[%s6957_s2 + $0x98] sm:$0xff]  }
 0x10e   : > { %910 = vmatprep.mubr.bf16.mxu0 %v562_v11 }
 0x10f   : > { %v4597_v28 = vpop.f32.mrf.mxu0 }
 0x110   : > { %v566_v29 = vpack.c.bf16 %v4597_v28, %v4596_v63 }
 0x111   : > { %v547_v24 = vpop.f32.mrf.mxu0 }
 0x112   : > { %v565_v30 = vpack.c.bf16 %v547_v24, %v544_v25  ;;  %4598 = vmatprep.subr.bf16.mxu1 %v566_v29 }
 0x113   : > { %4599 = vmatpush3.bf16.msra.mxu1 %v566_v29 }
 0x114   : > { %4600 = vmatprep.subr.bf16.mxu1 %v565_v30 }
 0x115   : > { %911 = vmatmul.mubr.bf16.gmra.mxu0 %v4969_v15  ;;  %v4714_v15 = vld [vmem:[%s6957_s2 + $0xb8] sm:$0xff]  }
 0x116   : > { %918 = vmatprep.mubr.bf16.mxu0 %v563_v31 }
 0x117   : > { %4601 = vmatpush3.bf16.msra.mxu1 %v565_v30 }
 0x118   : > { %4602 = vmatprep.subr.bf16.mxu1 %v564_v23 }
 0x11b   : > { %4603 = vmatpush3.bf16.msra.mxu1 %v564_v23 }
 0x11c   : > { %4604 = vmatprep.subr.bf16.mxu1 %v563_v31 }
 0x11d   : > { %919 = vmatmul.mubr.bf16.gmra.mxu0 %v4957_v12  ;;  %v4715_v12 = vld [vmem:[%s6957_s2 + $0xb0] sm:$0xff]  }
 0x11e   : > { %926 = vmatprep.mubr.bf16.mxu0 %v564_v23 }
 0x11f   : > { %4605 = vmatpush3.bf16.msra.mxu1 %v563_v31 }
 0x120   : > { %4606 = vmatprep.subr.bf16.mxu1 %v562_v11 }
 0x123   : > { %4607 = vmatpush3.bf16.msra.mxu1 %v562_v11 }
 0x124   : > { %4608 = vmatprep.subr.bf16.mxu1 %v561_v59 }
 0x125   : > { %927 = vmatmul.mubr.bf16.gmra.mxu0 %v4947_v9  ;;  %v4716_v9 = vld [vmem:[%s6957_s2 + $0xa8] sm:$0xff]  }
 0x126   : > { %934 = vmatprep.mubr.bf16.mxu0 %v565_v30 }
 0x127   : > { %4609 = vmatpush3.bf16.msra.mxu1 %v561_v59 }
 0x128   : > { %4610 = vmatprep.subr.bf16.mxu1 %v560_v54 }
 0x12b   : > { %4611 = vmatpush3.bf16.msra.mxu1 %v560_v54 }
 0x12c   : > { %4612 = vmatprep.subr.bf16.mxu1 %v559_v52 }
 0x12d   : > { %935 = vmatmul.mubr.bf16.gmra.mxu0 %v4926_v5  ;;  %v4717_v5 = vld [vmem:[%s6957_s2 + $0xa0] sm:$0xff]  }
 0x12e   : > { %942 = vmatprep.mubr.bf16.mxu0 %v566_v29 }
 0x12f   : > { %4613 = vmatpush3.bf16.msra.mxu1 %v559_v52 }
 0x130   : > { %4630 = vmatprep.subr.bf16.mxu1 %v4714_v15 }
 0x132   : > { %4615 = vmatmul.mubr.bf16.vlgmr.msra.gmra.mxu1 %v5010_v26  ;;  %v4720_v26 = vld [vmem:[%s6957_s2 + $0x88] sm:$0xff]  }
 0x133   : > { %4618 = vmatprep.mubr.bf16.mxu1 %v5013_v27  ;;  %4631 = vmatpush3.bf16.msra.mxu1 %v4714_v15  ;;  %v4721_v27 = vld [vmem:[%s6957_s2 + $0x80] sm:$0xff]  }
 0x134   : > { %4632 = vmatprep.subr.bf16.mxu1 %v4715_v12 }
 0x135   : > { %943 = vmatmul.mubr.bf16.gmra.mxu0 %v4919_v3  ;;  %v4719_v3 = vld [vmem:[%s6957_s2 + $0x90] sm:$0xff]  }
 0x137   : > { %4633 = vmatpush3.bf16.msra.mxu1 %v4715_v12 }
 0x138   : > { %4634 = vmatprep.subr.bf16.mxu1 %v4716_v9 }
 0x13a   : > { %4619 = vmatmul.mubr.bf16.gmra.mxu1 %v5030_v32 }
 0x13b   : > { %4622 = vmatprep.mubr.bf16.mxu1 %v5033_v33  ;;  %4635 = vmatpush3.bf16.msra.mxu1 %v4716_v9 }
 0x13c   : > { %4636 = vmatprep.subr.bf16.mxu1 %v4717_v5 }
 0x13f   : > { %4637 = vmatpush3.bf16.msra.mxu1 %v4717_v5 }
 0x140   : > { %4638 = vmatprep.subr.bf16.mxu1 %v4718_v18 }
 0x142   : > { %4623 = vmatmul.mubr.bf16.gmra.mxu1 %v5050_v38 }
 0x143   : > { %4626 = vmatprep.mubr.bf16.mxu1 %v5053_v39  ;;  %4639 = vmatpush3.bf16.msra.mxu1 %v4718_v18 }
 0x144   : > { %4640 = vmatprep.subr.bf16.mxu1 %v4719_v3 }
 0x147   : > { %4641 = vmatpush3.bf16.msra.mxu1 %v4719_v3 }
 0x148   : > { %4642 = vmatprep.subr.bf16.mxu1 %v4720_v26 }
 0x14a   : > { %4627 = vmatmul.mubr.bf16.gmra.mxu1 %v5067_v43 }
 0x14b   : > { %4643 = vmatpush3.bf16.msra.mxu1 %v4720_v26 }
 0x14c   : > { %4644 = vmatprep.subr.bf16.mxu1 %v4721_v27 }
 0x14f   : > { %4645 = vmatpush3.bf16.msra.mxu1 %v4721_v27 }
 0x1bd   : > { %v4118_v18 = vpop.f32.mrf.mxu0 }
 0x1bf   : > { %v4119_v3 = vpop.f32.mrf.mxu0 }
 0x1c1   : > { %v4121_v26 = vpop.f32.mrf.mxu0 }
 0x1c3   : > { %v4122_v27 = vpop.f32.mrf.mxu0 }
 0x1f2   : > { %v4616_v32 = vpop.f32.mrf.mxu1 }
 0x1f3   : > { %v666_v37 = vmul.f32 2.0, %v4616_v32  ;;  %v4124_v32 = vpop.f32.mrf.mxu0 }
 0x1f4   : > { %v601_v33 = vpop.f32.mrf.mxu1 }
 0x1f5   : > { %v664_v35 = vmul.f32 2.0, %v601_v33  ;;  %v682_v44 = vsub.f32 %v666_v37, %v4984_v19  ;;  %v4125_v33 = vpop.f32.mrf.mxu0 }
 0x1f6   : > { %v4617_v34 = vpop.f32.mrf.mxu1 }
 0x1f7   : > { %v667_v36 = vmul.f32 2.0, %v4617_v34  ;;  %v680_v42 = vsub.f32 %v664_v35, %v4991_v21  ;;  %v4127_v34 = vpop.f32.mrf.mxu0 }
 0x1f8   : > { %v604_v38 = vpop.f32.mrf.mxu1 }
 0x1f9   : > { %v665_v39 = vmul.f32 2.0, %v604_v38  ;;  %v683_v40 = vsub.f32 %v667_v36, %v4987_v20  ;;  %v4128_v35 = vpop.f32.mrf.mxu0 }
 0x1fa   : > { %v4620_v41 = vpop.f32.mrf.mxu1 }
 0x1fb   : > { %v681_v43 = vsub.f32 %v665_v39, %v4994_v22  ;;  %v697_v47 = vpack.c.bf16 %v683_v40, %v682_v44  ;;  %v670_v51 = vmul.f32 2.0, %v4620_v41  ;;  %v4130_v36 = vpop.f32.mrf.mxu0 }
 0x1fc   : > { %v617_v45 = vpop.f32.mrf.mxu1 }
 0x1fd   : > { %v696_v46 = vpack.c.bf16 %v681_v43, %v680_v42  ;;  %v668_v49 = vmul.f32 2.0, %v617_v45  ;;  %v686_v19 = vsub.f32 %v670_v51, %v4960_v13  ;;  %v4120_v51 = vadd.f32 %v4119_v3, %v4118_v18 }
 0x1fe   : > { %v4621_v48 = vpop.f32.mrf.mxu1 }
 0x1ff   : > { %v671_v50 = vmul.f32 2.0, %v4621_v48  ;;  %4646 = vmatprep.mubr.bf16.mxu1 %v696_v46  ;;  %v684_v21 = vsub.f32 %v668_v49, %v4972_v16 }
 0x200   : > { %v620_v52 = vpop.f32.mrf.mxu1  ;;  %4647 = vmatmul.mubr.bf16.vlgmr.msra.gmra.mxu1 %v697_v47 }
 0x201   : > { %v669_v53 = vmul.f32 2.0, %v620_v52  ;;  %v687_v20 = vsub.f32 %v671_v50, %v4963_v14  ;;  %v4126_v50 = vadd.f32 %v4125_v33, %v4124_v32  ;;  %v4123_v52 = vadd.f32 %v4122_v27, %v4121_v26 }
 0x202   : > { %v4624_v54 = vpop.f32.mrf.mxu1 }
 0x203   : > { %v685_v22 = vsub.f32 %v669_v53, %v4975_v17  ;;  %v699_v58 = vpack.c.bf16 %v687_v20, %v686_v19  ;;  %v674_v61 = vmul.f32 2.0, %v4624_v54  ;;  %v5155_v53 = vld [vmem:[%s6958_s3] ss:$0 sm:$0xff]  ;;  %v4129_v54 = vadd.f32 %v4128_v35, %v4127_v34 }
 0x204   : > { %v633_v55 = vpop.f32.mrf.mxu1 }
 0x205   : > { %v698_v56 = vpack.c.bf16 %v685_v22, %v684_v21  ;;  %v672_v59 = vmul.f32 2.0, %v633_v55  ;;  %v690_v13 = vsub.f32 %v674_v61, %v4929_v6  ;;  %v897_v21 = vadd.f32 %v4126_v50, %v5155_v53 }
 0x206   : > { %v4625_v57 = vpop.f32.mrf.mxu1 }
 0x207   : > { %v675_v60 = vmul.f32 2.0, %v4625_v57  ;;  %4650 = vmatprep.mubr.bf16.mxu1 %v698_v56  ;;  %v688_v16 = vsub.f32 %v672_v59, %v4942_v8  ;;  %v889_v57 = vadd.f32 %v4120_v51, %v5155_v53 }
 0x208   : > { %v636_v62 = vpop.f32.mrf.mxu1  ;;  %4651 = vmatmul.mubr.bf16.gmra.mxu1 %v699_v58 }
 0x209   : > { %v673_v63 = vmul.f32 2.0, %v636_v62  ;;  %v691_v14 = vsub.f32 %v675_v60, %v4932_v7  ;;  %v892_v62 = vadd.f32 %v4123_v52, %v5155_v53 }
 0x20a   : > { %v4628_v11 = vpop.f32.mrf.mxu1 }
 0x20b   : > { %v689_v17 = vsub.f32 %v673_v63, %v4950_v10  ;;  %v678_v29 = vmul.f32 2.0, %v4628_v11  ;;  %v701_v30 = vpack.c.bf16 %v691_v14, %v690_v13  ;;  %v900_v11 = vadd.f32 %v4129_v54, %v5155_v53 }
 0x20c   : > { %v649_v25 = vpop.f32.mrf.mxu1 }
 0x20d   : > { %v700_v28 = vpack.c.bf16 %v689_v17, %v688_v16  ;;  %v676_v31 = vmul.f32 2.0, %v649_v25  ;;  %v694_v7 = vsub.f32 %v678_v29, %v4909_v0  ;;  %v4131_v0 = vpop.f32.mrf.mxu0  ;;  %v6994_v16 = vmov 0.0  }
 0x20e   : > { %v4629_v24 = vpop.f32.mrf.mxu1  ;;  %v4132_v22 = vadd.f32 %v4131_v0, %v4130_v36 }
 0x20f   : > { %v679_v23 = vmul.f32 2.0, %v4629_v24  ;;  %4654 = vmatprep.mubr.bf16.mxu1 %v700_v28  ;;  %v692_v8 = vsub.f32 %v676_v31, %v4915_v2  ;;  %v4133_v37 = vpop.f32.mrf.mxu0  ;;  %v6996_v2 = vmov 0  }
 0x210   : > { %v652_v15 = vpop.f32.mrf.mxu1  ;;  %4655 = vmatmul.mubr.bf16.gmra.mxu1 %v701_v30  ;;  %1482 = vmatprep.mubr.bf16.mxu0 %v6996_v2  ;;  %v905_v29 = vadd.f32 %v4132_v22, %v5155_v53 }
 0x211   : > { %v677_v12 = vmul.f32 2.0, %v652_v15  ;;  %v695_v9 = vsub.f32 %v679_v23, %v4912_v1  ;;  %v4134_v1 = vpop.f32.mrf.mxu0 }
 0x212   : > { %v4135_v58 = vadd.f32 %v4134_v1, %v4133_v37 }
 0x213   : > { %v693_v10 = vsub.f32 %v677_v12, %v4922_v4  ;;  %v703_v5 = vpack.c.bf16 %v695_v9, %v694_v7  ;;  %v4136_v38 = vpop.f32.mrf.mxu0 }
 0x214   : > { %v908_v51 = vadd.f32 %v4135_v58, %v5155_v53 }
 0x215   : > { %v702_v6 = vpack.c.bf16 %v693_v10, %v692_v8  ;;  %v4137_v4 = vpop.f32.mrf.mxu0 }
 0x216   : > { %v4138_v19 = vadd.f32 %v4137_v4, %v4136_v38 }
 0x217   : > { %4658 = vmatprep.mubr.bf16.mxu1 %v702_v6  ;;  %v4139_v39 = vpop.f32.mrf.mxu0 }
 0x218   : > { %4659 = vmatmul.mubr.bf16.gmra.mxu1 %v703_v5  ;;  %v913_v28 = vadd.f32 %v4138_v19, %v5155_v53 }
 0x219   : > { %1353 = vmatprep.mubr.bf16.mxu1 %v6996_v2  ;;  %v4140_v40 = vpop.f32.mrf.mxu0 }
 0x21a   : > { %v4141_v59 = vadd.f32 %v4140_v40, %v4139_v39 }
 0x21b   : > { %v4142_v41 = vpop.f32.mrf.mxu0 }
 0x21c   : > { %v916_v7 = vadd.f32 %v4141_v59, %v5155_v53 }
 0x21d   : > { %v4143_v42 = vpop.f32.mrf.mxu0 }
 0x21e   : > { %v4144_v60 = vadd.f32 %v4143_v42, %v4142_v41 }
 0x21f   : > { %v5138_v43 = vpop.f32.mrf.mxu0 }
 0x220   : > { %v921_v22 = vadd.f32 %v4144_v60, %v5155_v53 }
 0x221   : > { %v5140_v44 = vpop.f32.mrf.mxu0 }
 0x222   : > { %v4147_v40 = vadd.f32 %v5140_v44, %v5138_v43 }
 0x223   : > { %v5142_v45 = vpop.f32.mrf.mxu0 }
 0x225   : > { %v5144_v46 = vpop.f32.mrf.mxu0 }
 0x226   : > { %v4150_v19 = vadd.f32 %v5144_v46, %v5142_v45 }
 0x227   : > { %v5146_v47 = vpop.f32.mrf.mxu0 }
 0x229   : > { %v5148_v48 = vpop.f32.mrf.mxu0 }
 0x22b   : > { %v5150_v49 = vpop.f32.mrf.mxu0 }
 0x22d   : > { %v5157_v20 = vpop.f32.mrf.mxu0 }
 0x22f   : > { %v5164_v63 = vpop.f32.mrf.mxu0 }
 0x231   : > { %v5201_v9 = vpop.f32.mrf.mxu0 }
 0x233   : > { %v4160_v37 = vpop.f32.mrf.mxu0 }
 0x235   : > { %v4161_v44 = vpop.f32.mrf.mxu0 }
 0x2c0   : > { %v4648_v55 = vpop.f32.mrf.mxu1 }
 0x2c1   : > { %v5160_v56 = vadd.f32 %v4648_v55, %v897_v21 }
 0x2c2   : > { %v985_v61 = vpop.f32.mrf.mxu1 }
 0x2c3   : > { %vm6969_vm0 = vcmp.ge.f32.partialorder %v5160_v56, 1.0  ;;  %vm6971_vm1 = vcmp.le.f32.partialorder %v5160_v56, -1.0  ;;  %v5168_v14 = vadd.f32 %v985_v61, %v889_v57 }
 0x2c4   : > { %v5174_v17 = vsel %vm6969_vm0, 1.0, %v6994_v16  ;;  %v5179_v13 = vsel %vm6971_vm1, 1.0, %v6994_v16  ;;  %v4649_v25 = vpop.f32.mrf.mxu1 }
 0x2c5   : > { %v1078_v24 = vsub.f32 %v5160_v56, %v5174_v17  ;;  %vm6965_vm2 = vcmp.ge.f32.partialorder %v5168_v14, 1.0  ;;  %vm6967_vm3 = vcmp.le.f32.partialorder %v5168_v14, -1.0  ;;  %v5187_v30 = vadd.f32 %v4649_v25, %v900_v11 }
 0x2c6   : > { %v5192_v31 = vsel %vm6965_vm2, 1.0, %v6994_v16  ;;  %v5197_v23 = vsel %vm6967_vm3, 1.0, %v6994_v16  ;;  %v988_v15 = vpop.f32.mrf.mxu1  ;;  %v1082_v12 = vmul.f32 -1.0, %v5179_v13 }
 0x2c7   : > { %v1076_v8 = vsub.f32 %v5168_v14, %v5192_v31  ;;  %vm6968_vm4 = vcmp.ge.f32.partialorder %v5187_v30, 1.0  ;;  %vm6970_vm5 = vcmp.le.f32.partialorder %v5187_v30, -1.0  ;;  %v5207_v10 = vadd.f32 %v988_v15, %v892_v62 }
 0x2c8   : > { %v5212_v6 = vsel %vm6968_vm4, 1.0, %v6994_v16  ;;  %v5217_v5 = vsel %vm6970_vm5, 1.0, %v6994_v16  ;;  %v4652_v18 = vpop.f32.mrf.mxu1  ;;  %v1086_v3 = vsub.f32 %v1078_v24, %v1082_v12  ;;  %v1080_v26 = vmul.f32 -1.0, %v5197_v23 }
 0x2c9   : > { %v1079_v27 = vsub.f32 %v5187_v30, %v5212_v6  ;;  %vm6964_vm6 = vcmp.ge.f32.partialorder %v5207_v10, 1.0  ;;  %vm6966_vm7 = vcmp.le.f32.partialorder %v5207_v10, -1.0  ;;  %v1010_v32 = vadd.f32 %v4652_v18, %v913_v28 }
 0x2ca   : > { %v5227_v33 = vsel %vm6964_vm6, 1.0, %v6994_v16  ;;  %v5232_v34 = vsel %vm6966_vm7, 1.0, %v6994_v16  ;;  %v1090_v35 = vmul.f32 0.95122945, %v1086_v3  ;;  %v1001_v36 = vpop.f32.mrf.mxu1  ;;  %v1084_v0 = vsub.f32 %v1076_v8, %v1080_v26  ;;  %v4163_v8 = vpop.f32.mrf.mxu0 }
 0x2cb   : > { %v1077_v1 = vsub.f32 %v5207_v10, %v5227_v33  ;;  %v1002_v38 = vadd.f32 %v1001_v36, %v905_v29  ;;  %v1083_v4 = vmul.f32 -1.0, %v5217_v5  ;;  %v1081_v39 = vmul.f32 -1.0, %v5232_v34 }
 0x2cc   : > { %v5240_v41 = vadd.f32 %v1090_v35, %v1010_v32  ;;  %v1088_v42 = vmul.f32 0.95122945, %v1084_v0  ;;  %v4653_v50 = vpop.f32.mrf.mxu1  ;;  %v924_v28 = vadd.f32 %v4147_v40, %v5155_v53  ;;  %v4153_v29 = vadd.f32 %v5148_v48, %v5146_v47 }
 0x2cd   : > { %v1013_v52 = vadd.f32 %v4653_v50, %v916_v7  ;;  %v1087_v54 = vsub.f32 %v1079_v27, %v1083_v4  ;;  %v1085_v21 = vsub.f32 %v1077_v1, %v1081_v39  ;;  %v929_v24 = vadd.f32 %v4150_v19, %v5155_v53  ;;  %v4164_v4 = vpop.f32.mrf.mxu0 }
 0x2ce   : > { %vm6977_vm8 = vcmp.ge.f32.partialorder %v5240_v41, 1.0  ;;  %vm6979_vm9 = vcmp.le.f32.partialorder %v5240_v41, -1.0  ;;  %v5248_v55 = vadd.f32 %v1088_v42, %v1002_v38  ;;  %v1004_v43 = vpop.f32.mrf.mxu1  ;;  %v4162_v47 = vadd.f32 %v4161_v44, %v4160_v37 }
 0x2cf   : > { %v1091_v57 = vmul.f32 0.95122945, %v1087_v54  ;;  %v1005_v59 = vadd.f32 %v1004_v43, %v908_v51  ;;  %v1089_v61 = vmul.f32 0.95122945, %v1085_v21  ;;  %v5253_v58 = vsel %vm6977_vm8, 1.0, %v6994_v16 }
 0x2d0   : > { %vm6973_vm10 = vcmp.ge.f32.partialorder %v5248_v55, 1.0  ;;  %vm6975_vm11 = vcmp.le.f32.partialorder %v5248_v55, -1.0  ;;  %v4656_v45 = vpop.f32.mrf.mxu1  ;;  %v5260_v46 = vsel %vm6979_vm9, 1.0, %v6994_v16  ;;  %v1122_v60 = vsub.f32 %v5240_v41, %v5253_v58 }
 0x2d1   : > { %v5264_v62 = vadd.f32 %v1091_v57, %v1013_v52  ;;  %v5266_v11 = vadd.f32 %v1089_v61, %v1005_v59  ;;  %v1126_v25 = vmul.f32 -1.0, %v5260_v46  ;;  %v5276_v12 = vsel %vm6973_vm10, 1.0, %v6994_v16 }
 0x2d2   : > { %v1017_v15 = vpop.f32.mrf.mxu1  ;;  %v5281_v7 = vsel %vm6975_vm11, 1.0, %v6994_v16  ;;  %v1120_v18 = vsub.f32 %v5248_v55, %v5276_v12  ;;  %v1026_v27 = vadd.f32 %v4656_v45, %v929_v24  ;;  %v932_v42 = vadd.f32 %v4153_v29, %v5155_v53 }
 0x2d3   : > { %vm6976_vm12 = vcmp.ge.f32.partialorder %v5264_v62, 1.0  ;;  %vm6978_vm13 = vcmp.le.f32.partialorder %v5264_v62, -1.0  ;;  %vm6972_vm14 = vcmp.ge.f32.partialorder %v5266_v11, 1.0  ;;  %vm6974_vm15 = vcmp.le.f32.partialorder %v5266_v11, -1.0 }
 0x2d4   : > { %v1130_v48 = vsub.f32 %v1122_v60, %v1126_v25  ;;  %v1124_v3 = vmul.f32 -1.0, %v5281_v7  ;;  %v4657_v26 = vpop.f32.mrf.mxu1  ;;  %v5293_v32 = vsel %vm6976_vm12, 1.0, %v6994_v16  ;;  %v5298_v35 = vsel %vm6978_vm13, 1.0, %v6994_v16 }
 0x2d5   : > { %v5303_v36 = vsel %vm6972_vm14, 1.0, %v6994_v16  ;;  %v1123_v1 = vsub.f32 %v5264_v62, %v5293_v32  ;;  %v1127_v38 = vmul.f32 -1.0, %v5298_v35  ;;  %v1018_v40 = vadd.f32 %v1017_v15, %v921_v22 }
 0x2d6   : > { %v1134_v0 = vmul.f32 0.95122945, %v1130_v48  ;;  %v1128_v37 = vsub.f32 %v1120_v18, %v1124_v3  ;;  %v1020_v39 = vpop.f32.mrf.mxu1  ;;  %v5312_v50 = vsel %vm6974_vm15, 1.0, %v6994_v16  ;;  %v1121_v51 = vsub.f32 %v5266_v11, %v5303_v36 }
 0x2d7   : > { %v1131_v21 = vsub.f32 %v1123_v1, %v1127_v38  ;;  %v1125_v19 = vmul.f32 -1.0, %v5312_v50  ;;  %v4156_v22 = vadd.f32 %v5157_v20, %v5150_v49  ;;  %v1029_v44 = vadd.f32 %v4657_v26, %v932_v42 }
 0x2d8   : > { %v5316_v52 = vadd.f32 %v1134_v0, %v1026_v27  ;;  %v1132_v54 = vmul.f32 0.95122945, %v1128_v37  ;;  %v4660_v43 = vpop.f32.mrf.mxu1  ;;  %v4165_v57 = vadd.f32 %v4164_v4, %v4163_v8  ;;  %v945_v59 = vadd.f32 %v4162_v47, %v5155_v53 }
 0x2d9   : > { %v1135_v45 = vmul.f32 0.95122945, %v1131_v21  ;;  %v1021_v60 = vadd.f32 %v1020_v39, %v924_v28  ;;  %v1129_v25 = vsub.f32 %v1121_v51, %v1125_v19  ;;  %v4159_v26 = vadd.f32 %v5201_v9, %v5164_v63 }
 0x2da   : > { %vm1142_vm6 = vcmp.ge.f32.partialorder %v5316_v52, 1.0  ;;  %vm1154_vm2 = vcmp.le.f32.partialorder %v5316_v52, -1.0  ;;  %v5324_v61 = vadd.f32 %v1132_v54, %v1018_v40  ;;  %v1033_v24 = vpop.f32.mrf.mxu1  ;;  %v937_v1 = vadd.f32 %v4156_v22, %v5155_v53 }
 0x2db   : > { %v5329_v29 = vsel %vm1142_vm6, 1.0, %v6994_v16  ;;  %v5334_v49 = vsel %vm1154_vm2, 1.0, %v6994_v16  ;;  %v5338_v20 = vadd.f32 %v1135_v45, %v1029_v44  ;;  %v1133_v15 = vmul.f32 0.95122945, %v1129_v25 }
 0x2dc   : > { %7039 = vst [vmem:[#allocation2_spill] sm:$0xff] %v5329_v29  ;;  %7040 = vst [vmem:[#allocation3_spill] sm:$0xff] %v5334_v49  ;;  %vm1140_vm7 = vcmp.ge.f32.partialorder %v5324_v61, 1.0  ;;  %vm1152_vm3 = vcmp.le.f32.partialorder %v5324_v61, -1.0  ;;  %v1166_v28 = vsub.f32 %v5316_v52, %v5329_v29  ;;  %v1170_v8 = vmul.f32 -1.0, %v5334_v49  ;;  %v4661_v4 = vpop.f32.mrf.mxu1 }
 0x2dd   : > { %v5346_v47 = vsel %vm1140_vm7, 1.0, %v6994_v16  ;;  %v5351_v48 = vsel %vm1152_vm3, 1.0, %v6994_v16  ;;  %vm1143_vm4 = vcmp.ge.f32.partialorder %v5338_v20, 1.0  ;;  %vm1155_vm0 = vcmp.le.f32.partialorder %v5338_v20, -1.0 }
 0x2de   : > { %7041 = vst [vmem:[#allocation4_spill] sm:$0xff] %v5346_v47  ;;  %v1164_v18 = vsub.f32 %v5324_v61, %v5346_v47  ;;  %v1168_v3 = vmul.f32 -1.0, %v5351_v48  ;;  %v1137_v27 = vadd.f32 %v1133_v15, %v1021_v60  ;;  %v1174_v0 = vsub.f32 %v1166_v28, %v1170_v8 }
 0x2df   : > { %v5363_v37 = vsel %vm1143_vm4, 1.0, %v6994_v16  ;;  %v5369_v39 = vsel %vm1155_vm0, 1.0, %v6994_v16  ;;  %v1042_v42 = vadd.f32 %v4660_v43, %v945_v59  ;;  %v948_v51 = vadd.f32 %v4165_v57, %v5155_v53  ;;  %v1036_v43 = vpop.f32.mrf.mxu1 }
 0x2e0   : > { %7042 = vst [vmem:[#allocation5_spill] sm:$0xff] %v5363_v37  ;;  %v1172_v38 = vsub.f32 %v1164_v18, %v1168_v3  ;;  %7043 = vst [vmem:[#allocation6_spill] sm:$0xff] %v5369_v39  ;;  %v1167_v40 = vsub.f32 %v5338_v20, %v5363_v37  ;;  %vm1141_vm5 = vcmp.ge.f32.partialorder %v1137_v27, 1.0  ;;  %vm1153_vm1 = vcmp.le.f32.partialorder %v1137_v27, -1.0 }
 0x2e1   : > { %v1178_v63 = vmul.f32 0.95122945, %v1174_v0  ;;  %v1171_v9 = vmul.f32 -1.0, %v5369_v39  ;;  %v5377_v54 = vsel %vm1141_vm5, 1.0, %v6994_v16  ;;  %v5381_v21 = vsel %vm1153_vm1, 1.0, %v6994_v16 }
 0x2e2   : > { %7044 = vst [vmem:[#allocation7_spill] sm:$0xff] %v5381_v21  ;;  %v1176_v19 = vmul.f32 0.95122945, %v1172_v38  ;;  %v1165_v44 = vsub.f32 %v1137_v27, %v5377_v54  ;;  %v1169_v45 = vmul.f32 -1.0, %v5381_v21  ;;  %v1034_v60 = vadd.f32 %v1033_v24, %v937_v1 }
 0x2e3   : > { %v1175_v22 = vsub.f32 %v1167_v40, %v1171_v9  ;;  %v940_v25 = vadd.f32 %v4159_v26, %v5155_v53  ;;  %v5386_v59 = vadd.f32 %v1178_v63, %v1042_v42  ;;  %v1045_v57 = vadd.f32 %v4661_v4, %v948_v51  ;;  %v4723_v42 = vld [vmem:[%s6959_s4 + $0x38] sm:$0xff]   ;;  %v5586_v51 = vld [vmem:[%s4937_s14] sm:$0xff]  }
 0x2e4   : > { %v1173_v15 = vsub.f32 %v1165_v44, %v1169_v45  ;;  %v5388_v8 = vadd.f32 %v1176_v19, %v1034_v60  ;;  %v7049_v53 = vmov 0  ;;  %v7051_v24 = vmov 0  ;;  %v4726_v19 = vld [vmem:[%s6959_s4 + $0x68] sm:$0xff]   ;;  %v4728_v44 = vld [vmem:[%s6959_s4 + $0x60] sm:$0xff]  }
 0x2e5   : > { %7045 = vst [vmem:[#allocation8_spill] sm:$0xff] %v5386_v59  ;;  %v1179_v28 = vmul.f32 0.95122945, %v1175_v22  ;;  %v1037_v3 = vadd.f32 %v1036_v43, %v940_v25  ;;  %vm6983_vm14 = vcmp.ge.f32.partialorder %v5386_v59, 1.0  ;;  %vm6982_vm12 = vcmp.le.f32.partialorder %v5386_v59, -1.0  ;;  %v4727_v22 = vld [vmem:[%s6959_s4 + $0x28] sm:$0xff]  }
 0x2e6   : > { %7046 = vst [vmem:[#allocation9_spill] sm:$0xff] %v5388_v8  ;;  %v1177_v0 = vmul.f32 0.95122945, %v1173_v15  ;;  %vm6985_vm13 = vcmp.le.f32.partialorder %v5388_v8, -1.0  ;;  %v6992_v26 = vmov 1.0|1.0  }
 0x2e7   : > { %v5390_v18 = vadd.f32 %v1179_v28, %v1045_v57  ;;  %v7053_v1 = vmov 0  ;;  %v7055_v4 = vmov 0  ;;  %v5603_v45 = vld [vmem:[%s4937_s14 + $0x8] sm:$0xff]   ;;  %v4729_v60 = vld [vmem:[%s6959_s4 + $0x20] sm:$0xff]   ;;  %v4730_v25 = vld [vmem:[%s6959_s4 + $0x58] sm:$0xff]  }
 0x2e8   : > { %v5394_v38 = vadd.f32 %v1177_v0, %v1037_v3  ;;  %v4731_v43 = vld [vmem:[%s6959_s4 + $0x18] sm:$0xff]   ;;  %v4732_v57 = vld [vmem:[%s6959_s4 + $0x50] sm:$0xff]   ;;  %v4734_v3 = vld [vmem:[%s6959_s4 + $0x48] sm:$0xff]  }
 0x2e9   : > { %7047 = vst [vmem:[#allocation10_spill] sm:$0xff] %v5390_v18  ;;  %vm6980_vm10 = vcmp.ge.f32.partialorder %v5390_v18, 1.0  ;;  %vm6981_vm15 = vcmp.le.f32.partialorder %v5390_v18, -1.0  ;;  %v5620_v28 = vld [vmem:[%s4937_s14 + $0x10] sm:$0xff]   ;;  %v4735_v0 = vld [vmem:[%s6959_s4 + $0x8] sm:$0xff]  }
 0x2ea   : > { %7048 = vst [vmem:[#allocation11_spill] sm:$0xff] %v5394_v38  ;;  %vm5401_vm11 = vmpackc.low %vm6980_vm10, %vm6983_vm14  ;;  %vm6984_vm9 = vcmp.le.f32.partialorder %v5394_v38, -1.0  ;;  %v4733_v15 = vld [vmem:[%s6959_s4 + $0x10] sm:$0xff]  }
 0x2eb   : > { %v7050_v53 = vsel %vm5401_vm11, 4294967295, %v7049_v53  ;;  %vm5410_vm8 = vmpackc.low %vm6981_vm15, %vm6982_vm12  ;;  %vm6986_vm15 = vcmp.ge.f32.partialorder %v5394_v38, 1.0  ;;  %vm6987_vm12 = vcmp.ge.f32.partialorder %v5388_v8, 1.0 }
 0x2ec   : > { %v7052_v24 = vsel %vm5410_vm8, 4294967295, %v7051_v24  ;;  %3777 = vmatprep.subr.msk.bf16.mxu1 %vm5410_vm8, %v6992_v26  ;;  %vm5423_vm10 = vmpackc.low %vm6984_vm9, %vm6985_vm13 }
 0x2ed   : > { %v7054_v1 = vsel %vm5423_vm10, 4294967295, %v7053_v1  ;;  %3779 = vmatpush1.bf16.msk.msra.mxu1 %vm5401_vm11, %v6992_v26  ;;  %vm5439_vm14 = vmpackc.low %vm6986_vm15, %vm6987_vm12 }
 0x2ee   : > { %3781 = vmatprep.subr.msk.bf16.mxu1 %vm5423_vm10, %v6992_v26  ;;  %v7056_v4 = vsel %vm5439_vm14, 4294967295, %v7055_v4  ;;  %vm5450_vm9 = vmpackc.low %vm1155_vm0, %vm1154_vm2 }
 0x2ef   : > { %vm5461_vm13 = vmpackc.low %vm1143_vm4, %vm1142_vm6  ;;  %vm7070_vm6 = vcmp.ge.f32.partialorder %v5264_v62, 1.0 }
 0x2f0   : > { %vm5471_vm0 = vmpackc.low %vm1153_vm1, %vm1152_vm3  ;;  %vm7065_vm1 = vcmp.le.f32.partialorder %v5240_v41, -1.0  ;;  %vm7066_vm3 = vcmp.le.f32.partialorder %v5264_v62, -1.0 }
 0x2f1   : > { %3783 = vmatpush1.bf16.msk.msra.mxu1 %vm5439_vm14, %v6992_v26  ;;  %vm5481_vm2 = vmpackc.low %vm1141_vm5, %vm1140_vm7  ;;  %vm7069_vm5 = vcmp.ge.f32.partialorder %v5240_v41, 1.0 }
 0x2f2   : > { %3785 = vmatprep.subr.msk.bf16.mxu1 %vm5450_vm9, %v6992_v26  ;;  %vm5492_vm4 = vmpackc.low %vm7066_vm3, %vm7065_vm1  ;;  %vm7073_vm1 = vcmp.le.f32.partialorder %v5248_v55, -1.0  ;;  %vm7074_vm3 = vcmp.le.f32.partialorder %v5266_v11, -1.0 }
 0x2f3   : > { %vm5503_vm7 = vmpackc.low %vm7070_vm6, %vm7069_vm5  ;;  %vm7077_vm5 = vcmp.ge.f32.partialorder %v5248_v55, 1.0  ;;  %vm7078_vm6 = vcmp.ge.f32.partialorder %v5266_v11, 1.0 }
 0x2f4   : > { %vm5514_vm15 = vmpackc.low %vm7074_vm3, %vm7073_vm1  ;;  %vm7081_vm1 = vcmp.le.f32.partialorder %v5160_v56, -1.0  ;;  %vm7082_vm3 = vcmp.le.f32.partialorder %v5187_v30, -1.0 }
 0x2f5   : > { %3787 = vmatpush1.bf16.msk.msra.mxu1 %vm5461_vm13, %v6992_v26  ;;  %vm5525_vm12 = vmpackc.low %vm7078_vm6, %vm7077_vm5  ;;  %vm7085_vm5 = vcmp.ge.f32.partialorder %v5160_v56, 1.0  ;;  %vm7086_vm6 = vcmp.ge.f32.partialorder %v5187_v30, 1.0  ;;  %v4722_v56 = vld [vmem:[%s6959_s4 + $0x78] sm:$0xff]  }
 0x2f6   : > { %3789 = vmatprep.subr.msk.bf16.mxu1 %vm5471_vm0, %v6992_v26  ;;  %vm5536_vm11 = vmpackc.low %vm7082_vm3, %vm7081_vm1  ;;  %vm7089_vm1 = vcmp.le.f32.partialorder %v5168_v14, -1.0  ;;  %vm7090_vm3 = vcmp.le.f32.partialorder %v5207_v10, -1.0 }
 0x2f7   : > { %vm5547_vm8 = vmpackc.low %vm7086_vm6, %vm7085_vm5  ;;  %vm7093_vm5 = vcmp.ge.f32.partialorder %v5168_v14, 1.0  ;;  %vm7094_vm6 = vcmp.ge.f32.partialorder %v5207_v10, 1.0  ;;  %v4724_v14 = vld [vmem:[%s6959_s4 + $0x70] sm:$0xff]  }
 0x2f8   : > { %vm5558_vm14 = vmpackc.low %vm7090_vm3, %vm7089_vm1  ;;  %v4725_v10 = vld [vmem:[%s6959_s4 + $0x30] sm:$0xff]  }
 0x2f9   : > { %3791 = vmatpush1.bf16.msk.msra.mxu1 %vm5481_vm2, %v6992_v26  ;;  %vm5572_vm10 = vmpackc.low %vm7094_vm6, %vm7093_vm5 }
 0x2fa   : > { %3793 = vmatprep.subr.msk.bf16.mxu1 %vm5492_vm4, %v6992_v26 }
 0x2fd   : > { %3795 = vmatpush1.bf16.msk.msra.mxu1 %vm5503_vm7, %v6992_v26 }
 0x2fe   : > { %3797 = vmatprep.subr.msk.bf16.mxu1 %vm5514_vm15, %v6992_v26 }
 0x301   : > { %3799 = vmatpush1.bf16.msk.msra.mxu1 %vm5525_vm12, %v6992_v26 }
 0x302   : > { %3801 = vmatprep.subr.msk.bf16.mxu1 %vm5536_vm11, %v6992_v26 }
 0x305   : > { %3803 = vmatpush1.bf16.msk.msra.mxu1 %vm5547_vm8, %v6992_v26 }
 0x306   : > { %3805 = vmatprep.subr.msk.bf16.mxu1 %vm5558_vm14, %v6992_v26 }
 0x309   : > { %3807 = vmatpush1.bf16.msk.msra.mxu1 %vm5572_vm10, %v6992_v26 }
 0x30a   : > { %4182 = vmatprep.subr.bf16.mxu1 %v4722_v56  ;;  %v4736_v56 = vld [vmem:[%s6959_s4 + $0x40] sm:$0xff]  }
 0x30c   : > { %1354 = vmatmul.mubr.bf16.vlgmr.msra.gmra.mxu1 %v5586_v51 }
 0x30d   : > { %1363 = vmatprep.mubr.bf16.mxu1 %v6996_v2  ;;  %4183 = vmatpush3.bf16.msra.mxu1 %v4723_v42  ;;  %v5637_v42 = vld [vmem:[%s4937_s14 + $0x18] sm:$0xff]  }
 0x30e   : > { %4184 = vmatprep.subr.bf16.mxu1 %v4724_v14  ;;  %v4737_v14 = vld [vmem:[%s6959_s4] sm:$0xff]  }
 0x311   : > { %4185 = vmatpush3.bf16.msra.mxu1 %v4725_v10  ;;  %v5645_v10 = vld [vmem:[%s4937_s14 + $0x20] sm:$0xff]  }
 0x312   : > { %4186 = vmatprep.subr.bf16.mxu1 %v4726_v19  ;;  %v5650_v19 = vld [vmem:[%s4937_s14 + $0x28] sm:$0xff]  }
 0x314   : > { %1364 = vmatmul.mubr.bf16.gmra.mxu1 %v5603_v45 }
 0x315   : > { %1373 = vmatprep.mubr.bf16.mxu1 %v6996_v2  ;;  %4187 = vmatpush3.bf16.msra.mxu1 %v4727_v22  ;;  %v5655_v22 = vld [vmem:[%s4937_s14 + $0x30] sm:$0xff]  }
 0x316   : > { %4188 = vmatprep.subr.bf16.mxu1 %v4728_v44  ;;  %v5660_v44 = vld [vmem:[%s4937_s14 + $0x38] sm:$0xff]  }
 0x319   : > { %4189 = vmatpush3.bf16.msra.mxu1 %v4729_v60 }
 0x31a   : > { %4190 = vmatprep.subr.bf16.mxu1 %v4730_v25 }
 0x31c   : > { %1374 = vmatmul.mubr.bf16.gmra.mxu1 %v5620_v28 }
 0x31d   : > { %1383 = vmatprep.mubr.bf16.mxu1 %v6996_v2  ;;  %4191 = vmatpush3.bf16.msra.mxu1 %v4731_v43 }
 0x31e   : > { %4192 = vmatprep.subr.bf16.mxu1 %v4732_v57 }
 0x321   : > { %4193 = vmatpush3.bf16.msra.mxu1 %v4733_v15 }
 0x322   : > { %4194 = vmatprep.subr.bf16.mxu1 %v4734_v3 }
 0x324   : > { %1384 = vmatmul.mubr.bf16.gmra.mxu1 %v5637_v42 }
 0x325   : > { %1393 = vmatprep.mubr.bf16.mxu1 %v6996_v2  ;;  %4195 = vmatpush3.bf16.msra.mxu1 %v4735_v0 }
 0x326   : > { %4196 = vmatprep.subr.bf16.mxu1 %v4736_v56 }
 0x329   : > { %4197 = vmatpush3.bf16.msra.mxu1 %v4737_v14 }
 0x32c   : > { %1394 = vmatmul.mubr.bf16.gmra.mxu1 %v5645_v10 }
 0x32d   : > { %1403 = vmatprep.mubr.bf16.mxu1 %v6996_v2 }
 0x334   : > { %1404 = vmatmul.mubr.bf16.gmra.mxu1 %v5650_v19 }
 0x335   : > { %1413 = vmatprep.mubr.bf16.mxu1 %v6996_v2 }
 0x33c   : > { %1414 = vmatmul.mubr.bf16.gmra.mxu1 %v5655_v22 }
 0x33d   : > { %1423 = vmatprep.mubr.bf16.mxu1 %v6996_v2 }
 0x344   : > { %1424 = vmatmul.mubr.bf16.gmra.mxu1 %v5660_v44 }
 0x345   : > { %3858 = vmatprep.mubr.msk.bf16.mxu1 %vm5558_vm14, %v6992_v26 }
 0x34c   : > { %3860 = vmatmul.mubr.msk.bf16.vlgmr.msra.gmra.mxu1 %vm5572_vm10, %v6992_v26  ;;  %vm7098_vm10 = vnez %v7056_v4 }
 0x34d   : > { %3862 = vmatprep.mubr.msk.bf16.mxu1 %vm5536_vm11, %v6992_v26  ;;  %vm7099_vm11 = vnez %v7052_v24 }
 0x354   : > { %3864 = vmatmul.mubr.msk.bf16.gmra.mxu1 %vm5547_vm8, %v6992_v26  ;;  %vm7097_vm8 = vnez %v7054_v1 }
 0x355   : > { %3866 = vmatprep.mubr.msk.bf16.mxu1 %vm5514_vm15, %v6992_v26 }
 0x35c   : > { %3868 = vmatmul.mubr.msk.bf16.gmra.mxu1 %vm5525_vm12, %v6992_v26  ;;  %vm7100_vm12 = vnez %v7050_v53 }
 0x35d   : > { %3870 = vmatprep.mubr.msk.bf16.mxu1 %vm5492_vm4, %v6992_v26 }
 0x364   : > { %3872 = vmatmul.mubr.msk.bf16.gmra.mxu1 %vm5503_vm7, %v6992_v26 }
 0x365   : > { %3874 = vmatprep.mubr.msk.bf16.mxu1 %vm5471_vm0, %v6992_v26 }
 0x36c   : > { %3876 = vmatmul.mubr.msk.bf16.gmra.mxu1 %vm5481_vm2, %v6992_v26 }
 0x36d   : > { %3878 = vmatprep.mubr.msk.bf16.mxu1 %vm5450_vm9, %v6992_v26 }
 0x374   : > { %3880 = vmatmul.mubr.msk.bf16.gmra.mxu1 %vm5461_vm13, %v6992_v26 }
 0x375   : > { %3882 = vmatprep.mubr.msk.bf16.mxu1 %vm7097_vm8, %v6992_v26 }
 0x37c   : > { %3884 = vmatmul.mubr.msk.bf16.gmra.mxu1 %vm7098_vm10, %v6992_v26 }
 0x37d   : > { %3886 = vmatprep.mubr.msk.bf16.mxu1 %vm7099_vm11, %v6992_v26 }
 0x384   : > { %3888 = vmatmul.mubr.msk.bf16.gmra.mxu1 %vm7100_vm12, %v6992_v26 }
 0x3cc   : > { %v1355_v40 = vpop.f32.mrf.mxu1 }
 0x3ce   : > { %v5711_v9 = vpop.f32.mrf.mxu1 }
 0x3d0   : > { %v1359_v63 = vpop.f32.mrf.mxu1 }
 0x3d1   : > { %v5713_v52 = vpack.c.bf16 %v1359_v63, %v1355_v40 }
 0x3d2   : > { %v5715_v1 = vpop.f32.mrf.mxu1 }
 0x3d4   : > { %v1365_v20 = vpop.f32.mrf.mxu1 }
 0x3d6   : > { %v5717_v61 = vpop.f32.mrf.mxu1 }
 0x3d8   : > { %v1369_v4 = vpop.f32.mrf.mxu1 }
 0x3d9   : > { %v5719_v27 = vpack.c.bf16 %v1369_v4, %v1365_v20 }
 0x3da   : > { %v1371_v24 = vpop.f32.mrf.mxu1 }
 0x3dc   : > { %v1375_v41 = vpop.f32.mrf.mxu1 }
 0x3de   : > { %v1377_v62 = vpop.f32.mrf.mxu1 }
 0x3e0   : > { %v1379_v55 = vpop.f32.mrf.mxu1 }
 0x3e2   : > { %v1381_v53 = vpop.f32.mrf.mxu1 }
 0x3e4   : > { %v1385_v11 = vpop.f32.mrf.mxu1 }
 0x3e6   : > { %v1387_v30 = vpop.f32.mrf.mxu1 }
 0x3e8   : > { %v1389_v60 = vpop.f32.mrf.mxu1 }
 0x3ea   : > { %v1391_v25 = vpop.f32.mrf.mxu1 }
 0x3ec   : > { %v1395_v43 = vpop.f32.mrf.mxu1 }
 0x3ee   : > { %v1397_v57 = vpop.f32.mrf.mxu1 }
 0x3f0   : > { %v1399_v15 = vpop.f32.mrf.mxu1 }
 0x3f2   : > { %v1401_v3 = vpop.f32.mrf.mxu1 }
 0x3f4   : > { %v1405_v0 = vpop.f32.mrf.mxu1 }
 0x3f6   : > { %v1407_v56 = vpop.f32.mrf.mxu1 }
 0x3f8   : > { %v1409_v14 = vpop.f32.mrf.mxu1 }
 0x3fa   : > { %v1411_v40 = vpop.f32.mrf.mxu1 }
 0x3fc   : > { %v1415_v63 = vpop.f32.mrf.mxu1 }
 0x3fe   : > { %v1417_v20 = vpop.f32.mrf.mxu1 }
 0x400   : > { %v1419_v4 = vpop.f32.mrf.mxu1 }
 0x401   : > { %v5732_v47 = vpack.c.bf16 %v1419_v4, %v1415_v63  ;;  %v5754_v63 = vpack.c.bf16 %v1391_v25, %v1387_v30  ;;  %v5768_v30 = vpack.c.bf16 %v1379_v55, %v1375_v41  ;;  %v4754_v41 = vld [vmem:[%s6959_s4 + $0x178] sm:$0xff]   ;;  %v4757_v4 = vld [vmem:[%s6959_s4 + $0x130] sm:$0xff]  }
 0x402   : > { %v1421_v26 = vpop.f32.mrf.mxu1  ;;  %4310 = vmatprep.subr.bf16.mxu1 %v4754_v41  ;;  %v4759_v41 = vld [vmem:[%s6959_s4 + $0x128] sm:$0xff]  }
 0x403   : > { %v5725_v39 = vpack.c.bf16 %v1421_v26, %v1417_v20  ;;  %v5744_v26 = vpack.c.bf16 %v1401_v3, %v1397_v57  ;;  %v5760_v57 = vpack.c.bf16 %v1389_v60, %v1385_v11 }
 0x404   : > { %v1425_v16 = vpop.f32.mrf.mxu1 }
 0x406   : > { %v1427_v2 = vpop.f32.mrf.mxu1 }
 0x408   : > { %v1429_v18 = vpop.f32.mrf.mxu1 }
 0x409   : > { %v5723_v8 = vpack.c.bf16 %v1429_v18, %v1425_v16 }
 0x40a   : > { %v1431_v59 = vpop.f32.mrf.mxu1 }
 0x40b   : > { %v5721_v38 = vpack.c.bf16 %v1431_v59, %v1427_v2  ;;  %v5736_v2 = vpack.c.bf16 %v1411_v40, %v1407_v56  ;;  %v5742_v59 = vpack.c.bf16 %v1409_v14, %v1405_v0  ;;  %v5750_v56 = vpack.c.bf16 %v1399_v15, %v1395_v43 }
 0x40c   : > { %v4198_v29 = vpop.f32.mrf.mxu1  ;;  %v5762_v14 = vpack.c.bf16 %v1381_v53, %v1377_v62  ;;  %v5773_v15 = vpack.c.bf16 %v1371_v24, %v5717_v61  ;;  %v5781_v53 = vpack.c.bf16 %v5715_v1, %v5711_v9  ;;  %v4755_v61 = vld [vmem:[%s6959_s4 + $0x138] sm:$0xff]   ;;  %v4756_v24 = vld [vmem:[%s6959_s4 + $0x170] sm:$0xff]  }
 0x40d   : > { %1450 = vmatprep.subr.bf16.mxu0 %v5721_v38  ;;  %v4738_v9 = vld [vmem:[%s6959_s4 + $0xf8] sm:$0xff]   ;;  %4311 = vmatpush3.bf16.msra.mxu1 %v4755_v61  ;;  %v4760_v61 = vld [vmem:[%s6959_s4 + $0x160] sm:$0xff]  }
 0x40e   : > { %1451 = vmatpush1.bf16.msra.mxu0 %v5723_v8  ;;  %v4199_v49 = vpop.f32.mrf.mxu1  ;;  %4312 = vmatprep.subr.bf16.mxu1 %v4756_v24 }
 0x40f   : > { %v5729_v37 = vadd.f32 %v4199_v49, %v4198_v29  ;;  %1452 = vmatprep.subr.bf16.mxu0 %v5725_v39 }
 0x410   : > { %v5734_v21 = vpop.f32.mrf.mxu1 }
 0x411   : > { %4313 = vmatpush3.bf16.msra.mxu1 %v4757_v4 }
 0x412   : > { %1453 = vmatpush1.bf16.msra.mxu0 %v5732_v47  ;;  %v5739_v16 = vpop.f32.mrf.mxu1 }
 0x413   : > { %1454 = vmatprep.subr.bf16.mxu0 %v5736_v2 }
 0x414   : > { %v4204_v18 = vpop.f32.mrf.mxu1 }
 0x416   : > { %1455 = vmatpush1.bf16.msra.mxu0 %v5742_v59  ;;  %v4205_v29 = vpop.f32.mrf.mxu1 }
 0x417   : > { %v5747_v49 = vadd.f32 %v4205_v29, %v4204_v18  ;;  %1456 = vmatprep.subr.bf16.mxu0 %v5744_v26  ;;  %v4758_v18 = vld [vmem:[%s6959_s4 + $0x168] sm:$0xff]  }
 0x418   : > { %v5752_v40 = vpop.f32.mrf.mxu1  ;;  %4314 = vmatprep.subr.bf16.mxu1 %v4758_v18 }
 0x419   : > { %4315 = vmatpush3.bf16.msra.mxu1 %v4759_v41 }
 0x41a   : > { %1457 = vmatpush1.bf16.msra.mxu0 %v5750_v56  ;;  %v5757_v0 = vpop.f32.mrf.mxu1  ;;  %4316 = vmatprep.subr.bf16.mxu1 %v4760_v61  ;;  %v4763_v61 = vld [vmem:[%s6959_s4 + $0x118] sm:$0xff]  }
 0x41b   : > { %1458 = vmatprep.subr.bf16.mxu0 %v5754_v63 }
 0x41c   : > { %v4210_v3 = vpop.f32.mrf.mxu1 }
 0x41e   : > { %1459 = vmatpush1.bf16.msra.mxu0 %v5760_v57  ;;  %v4211_v20 = vpop.f32.mrf.mxu1 }
 0x41f   : > { %v5765_v43 = vadd.f32 %v4211_v20, %v4210_v3  ;;  %1460 = vmatprep.subr.bf16.mxu0 %v5762_v14  ;;  %v4739_v3 = vld [vmem:[%s6959_s4 + $0xb8] sm:$0xff]   ;;  %v4740_v20 = vld [vmem:[%s6959_s4 + $0xf0] sm:$0xff]  }
 0x420   : > { %v5770_v25 = vpop.f32.mrf.mxu1 }
 0x422   : > { %1461 = vmatpush1.bf16.msra.mxu0 %v5768_v30  ;;  %v5776_v11 = vpop.f32.mrf.mxu1 }
 0x423   : > { %1462 = vmatprep.subr.bf16.mxu0 %v5773_v15 }
 0x424   : > { %v4216_v62 = vpop.f32.mrf.mxu1 }
 0x426   : > { %1463 = vmatpush1.bf16.msra.mxu0 %v5719_v27  ;;  %v4217_v55 = vpop.f32.mrf.mxu1 }
 0x427   : > { %v5793_v60 = vadd.f32 %v4217_v55, %v4216_v62  ;;  %1464 = vmatprep.subr.bf16.mxu0 %v5781_v53  ;;  %v7103_v55 = vmov 0  }
 0x428   : > { %v5799_v1 = vpop.f32.mrf.mxu1 }
 0x429   : > { %7101 = vst [vmem:[#allocation12_spill] sm:$0xff] %v5799_v1 }
 0x42a   : > { %1465 = vmatpush1.bf16.msra.mxu0 %v5713_v52  ;;  %v5808_v29 = vpop.f32.mrf.mxu1 }
 0x42b   : > { %7102 = vst [vmem:[#allocation13_spill] sm:$0xff] %v5808_v29  ;;  %4246 = vmatprep.subr.bf16.mxu0 %v4738_v9  ;;  %v4741_v9 = vld [vmem:[%s6959_s4 + $0xb0] sm:$0xff]   ;;  %v4761_v29 = vld [vmem:[%s6959_s4 + $0x120] sm:$0xff]  }
 0x42c   : > { %v4222_v62 = vpop.f32.mrf.mxu1  ;;  %4317 = vmatpush3.bf16.msra.mxu1 %v4761_v29  ;;  %v4746_v29 = vld [vmem:[%s6959_s4 + $0xd8] sm:$0xff]  }
 0x42d   : > { %1483 = vmatmul.mubr.bf16.vlgmr.msra.gmra.mxu0 %v5586_v51  ;;  %v4742_v51 = vld [vmem:[%s6959_s4 + $0xe8] sm:$0xff]  }
 0x42e   : > { %v4223_v24 = vpop.f32.mrf.mxu1  ;;  %1492 = vmatprep.mubr.bf16.mxu0 %v7103_v55  ;;  %4247 = vmatpush3.bf16.msra.mxu0 %v4739_v3  ;;  %v4762_v3 = vld [vmem:[%s6959_s4 + $0x158] sm:$0xff]  }
 0x42f   : > { %v5827_v4 = vadd.f32 %v4223_v24, %v4222_v62  ;;  %4248 = vmatprep.subr.bf16.mxu0 %v4740_v20  ;;  %v4743_v20 = vld [vmem:[%s6959_s4 + $0xa8] sm:$0xff]   ;;  %v4744_v62 = vld [vmem:[%s6959_s4 + $0xe0] sm:$0xff]   ;;  %4318 = vmatprep.subr.bf16.mxu1 %v4762_v3  ;;  %v4747_v3 = vld [vmem:[%s6959_s4 + $0x98] sm:$0xff]  }
 0x430   : > { %v5832_v18 = vpop.f32.mrf.mxu1  ;;  %4319 = vmatpush3.bf16.msra.mxu1 %v4763_v61  ;;  %v4749_v61 = vld [vmem:[%s6959_s4 + $0x90] sm:$0xff]  }
 0x432   : > { %v5840_v1 = vpop.f32.mrf.mxu1  ;;  %4249 = vmatpush3.bf16.msra.mxu0 %v4741_v9  ;;  %v4745_v9 = vld [vmem:[%s6959_s4 + $0xa0] sm:$0xff]  }
 0x433   : > { %7104 = vst [vmem:[#allocation14_spill] sm:$0xff] %v5840_v1  ;;  %4250 = vmatprep.subr.bf16.mxu0 %v4742_v51 }
 0x434   : > { %v4228_v41 = vpop.f32.mrf.mxu1 }
 0x435   : > { %1493 = vmatmul.mubr.bf16.gmra.mxu0 %v5603_v45 }
 0x436   : > { %v4229_v24 = vpop.f32.mrf.mxu1  ;;  %1502 = vmatprep.mubr.bf16.mxu0 %v7103_v55  ;;  %4251 = vmatpush3.bf16.msra.mxu0 %v4743_v20  ;;  %v4748_v20 = vld [vmem:[%s6959_s4 + $0xd0] sm:$0xff]  }
 0x437   : > { %v5856_v51 = vadd.f32 %v4229_v24, %v4228_v41  ;;  %4252 = vmatprep.subr.bf16.mxu0 %v4744_v62 }
 0x438   : > { %v5861_v1 = vpop.f32.mrf.mxu1 }
 0x439   : > { %7105 = vst [vmem:[#allocation15_spill] sm:$0xff] %v5861_v1 }
 0x43a   : > { %v5863_v45 = vpop.f32.mrf.mxu1  ;;  %4253 = vmatpush3.bf16.msra.mxu0 %v4745_v9  ;;  %v4750_v9 = vld [vmem:[%s6959_s4 + $0xc8] sm:$0xff]  }
 0x43b   : > { %7106 = vst [vmem:[#allocation16_spill] sm:$0xff] %v5863_v45  ;;  %4254 = vmatprep.subr.bf16.mxu0 %v4746_v29 }
 0x43c   : > { %v4234_v62 = vpop.f32.mrf.mxu1 }
 0x43d   : > { %1503 = vmatmul.mubr.bf16.gmra.mxu0 %v5620_v28  ;;  %v4751_v28 = vld [vmem:[%s6959_s4 + $0x88] sm:$0xff]  }
 0x43e   : > { %v4235_v41 = vpop.f32.mrf.mxu1  ;;  %1512 = vmatprep.mubr.bf16.mxu0 %v7103_v55  ;;  %4255 = vmatpush3.bf16.msra.mxu0 %v4747_v3  ;;  %v4752_v3 = vld [vmem:[%s6959_s4 + $0xc0] sm:$0xff]  }
 0x43f   : > { %v5876_v24 = vadd.f32 %v4235_v41, %v4234_v62  ;;  %4256 = vmatprep.subr.bf16.mxu0 %v4748_v20  ;;  %v4753_v41 = vld [vmem:[%s6959_s4 + $0x80] sm:$0xff]  }
 0x440   : > { %v4237_v29 = vpop.f32.mrf.mxu1 }
 0x442   : > { %v4238_v45 = vpop.f32.mrf.mxu1  ;;  %4257 = vmatpush3.bf16.msra.mxu0 %v4749_v61 }
 0x443   : > { %v5884_v1 = vadd.f32 %v4238_v45, %v4237_v29  ;;  %4258 = vmatprep.subr.bf16.mxu0 %v4750_v9 }
 0x444   : > { %v4240_v62 = vpop.f32.mrf.mxu1 }
 0x445   : > { %1513 = vmatmul.mubr.bf16.gmra.mxu0 %v5637_v42  ;;  %v4764_v42 = vld [vmem:[%s6959_s4 + $0x150] sm:$0xff]  }
 0x446   : > { %v4241_v20 = vpop.f32.mrf.mxu1  ;;  %1522 = vmatprep.mubr.bf16.mxu0 %v7103_v55  ;;  %4259 = vmatpush3.bf16.msra.mxu0 %v4751_v28 }
 0x447   : > { %v5894_v61 = vadd.f32 %v4241_v20, %v4240_v62  ;;  %4260 = vmatprep.subr.bf16.mxu0 %v4752_v3  ;;  %4320 = vmatprep.subr.bf16.mxu1 %v4764_v42 }
 0x44a   : > { %4261 = vmatpush3.bf16.msra.mxu0 %v4753_v41 }
 0x44d   : > { %1523 = vmatmul.mubr.bf16.gmra.mxu0 %v5645_v10  ;;  %v4765_v10 = vld [vmem:[%s6959_s4 + $0x110] sm:$0xff]  }
 0x44e   : > { %1532 = vmatprep.mubr.bf16.mxu0 %v7103_v55  ;;  %4321 = vmatpush3.bf16.msra.mxu1 %v4765_v10 }
 0x455   : > { %1533 = vmatmul.mubr.bf16.gmra.mxu0 %v5650_v19  ;;  %v4766_v19 = vld [vmem:[%s6959_s4 + $0x148] sm:$0xff]  }
 0x456   : > { %1542 = vmatprep.mubr.bf16.mxu0 %v7103_v55  ;;  %4322 = vmatprep.subr.bf16.mxu1 %v4766_v19 }
 0x45d   : > { %1543 = vmatmul.mubr.bf16.gmra.mxu0 %v5655_v22  ;;  %v4767_v22 = vld [vmem:[%s6959_s4 + $0x108] sm:$0xff]  }
 0x45e   : > { %1552 = vmatprep.mubr.bf16.mxu0 %v7103_v55  ;;  %4323 = vmatpush3.bf16.msra.mxu1 %v4767_v22 }
 0x465   : > { %1553 = vmatmul.mubr.bf16.gmra.mxu0 %v5660_v44  ;;  %v4768_v44 = vld [vmem:[%s6959_s4 + $0x140] sm:$0xff]  }
 0x466   : > { %2066 = vmatprep.mubr.bf16.mxu0 %v5781_v53  ;;  %4324 = vmatprep.subr.bf16.mxu1 %v4768_v44 }
 0x46d   : > { %2067 = vmatmul.mubr.bf16.vlgmr.msra.gmra.mxu0 %v5713_v52  ;;  %v4769_v52 = vld [vmem:[%s6959_s4 + $0x100] sm:$0xff]  }
 0x46e   : > { %2074 = vmatprep.mubr.bf16.mxu0 %v5773_v15  ;;  %4325 = vmatpush3.bf16.msra.mxu1 %v4769_v52 }
 0x475   : > { %2075 = vmatmul.mubr.bf16.gmra.mxu0 %v5719_v27 }
 0x476   : > { %2082 = vmatprep.mubr.bf16.mxu0 %v5762_v14 }
 0x47d   : > { %2083 = vmatmul.mubr.bf16.gmra.mxu0 %v5768_v30 }
 0x47e   : > { %2090 = vmatprep.mubr.bf16.mxu0 %v5754_v63 }
 0x485   : > { %2091 = vmatmul.mubr.bf16.gmra.mxu0 %v5760_v57 }
 0x486   : > { %2098 = vmatprep.mubr.bf16.mxu0 %v5744_v26 }
 0x48d   : > { %2099 = vmatmul.mubr.bf16.gmra.mxu0 %v5750_v56 }
 0x48e   : > { %2106 = vmatprep.mubr.bf16.mxu0 %v5736_v2 }
 0x495   : > { %2107 = vmatmul.mubr.bf16.gmra.mxu0 %v5742_v59 }
 0x496   : > { %2114 = vmatprep.mubr.bf16.mxu0 %v5725_v39 }
 0x49d   : > { %2115 = vmatmul.mubr.bf16.gmra.mxu0 %v5732_v47 }
 0x49e   : > { %2122 = vmatprep.mubr.bf16.mxu0 %v5721_v38 }
 0x4a5   : > { %2123 = vmatmul.mubr.bf16.gmra.mxu0 %v5723_v8 }
 0x4a6   : > { %2533 = vmatprep.mubr.bf16.mxu0 %v7103_v55 }
 0x4ed   : > { %v1484_v27 = vpop.f32.mrf.mxu0 }
 0x4ee   : > { %v1563_v56 = vmul.f32 2.0, %v1484_v27 }
 0x4ef   : > { %v1486_v63 = vpop.f32.mrf.mxu0 }
 0x4f0   : > { %v1564_v26 = vmul.f32 2.0, %v1486_v63  ;;  %v1595_v38 = vsub.f32 %v1563_v56, %v5192_v31 }
 0x4f1   : > { %v1488_v57 = vpop.f32.mrf.mxu0 }
 0x4f2   : > { %v1565_v14 = vmul.f32 2.0, %v1488_v57  ;;  %v1596_v39 = vsub.f32 %v1564_v26, %v5197_v23 }
 0x4f3   : > { %v1490_v30 = vpop.f32.mrf.mxu0 }
 0x4f4   : > { %v1566_v2 = vmul.f32 2.0, %v1490_v30  ;;  %v1597_v59 = vsub.f32 %v1565_v14, %v5227_v33 }
 0x4f5   : > { %v1494_v15 = vpop.f32.mrf.mxu0 }
 0x4f6   : > { %v1598_v47 = vsub.f32 %v1566_v2, %v5232_v34  ;;  %v1627_v45 = vpack.c.bf16 %v1597_v59, %v1595_v38  ;;  %v1567_v3 = vmul.f32 2.0, %v1494_v15 }
 0x4f7   : > { %v1496_v8 = vpop.f32.mrf.mxu0 }
 0x4f8   : > { %v1628_v53 = vpack.c.bf16 %v1598_v47, %v1596_v39  ;;  %v1568_v29 = vmul.f32 2.0, %v1496_v8  ;;  %v1599_v31 = vsub.f32 %v1567_v3, %v5174_v17 }
 0x4f9   : > { %v1498_v9 = vpop.f32.mrf.mxu0 }
 0x4fa   : > { %v1569_v28 = vmul.f32 2.0, %v1498_v9  ;;  %2163 = vmatprep.mubr.bf16.mxu1 %v1628_v53  ;;  %v1600_v23 = vsub.f32 %v1568_v29, %v5179_v13 }
 0x4fb   : > { %v1500_v62 = vpop.f32.mrf.mxu0  ;;  %2164 = vmatmul.mubr.bf16.vlgmr.msra.gmra.mxu1 %v1627_v45 }
 0x4fc   : > { %v1570_v20 = vmul.f32 2.0, %v1500_v62  ;;  %v1601_v33 = vsub.f32 %v1569_v28, %v5212_v6 }
 0x4fd   : > { %v1504_v41 = vpop.f32.mrf.mxu0 }
 0x4fe   : > { %v1602_v34 = vsub.f32 %v1570_v20, %v5217_v5  ;;  %v1629_v22 = vpack.c.bf16 %v1601_v33, %v1599_v31  ;;  %v1571_v27 = vmul.f32 2.0, %v1504_v41 }
 0x4ff   : > { %v1506_v42 = vpop.f32.mrf.mxu0 }
 0x500   : > { %v1630_v10 = vpack.c.bf16 %v1602_v34, %v1600_v23  ;;  %v1572_v44 = vmul.f32 2.0, %v1506_v42  ;;  %v1603_v17 = vsub.f32 %v1571_v27, %v5276_v12  ;;  %v7107_v23 = vld [vmem:[#allocation7_spill] sm:$0xff]  ;;  %v7108_v34 = vld [vmem:[#allocation4_spill] sm:$0xff] }
 0x501   : > { %v1508_v19 = vpop.f32.mrf.mxu0 }
 0x502   : > { %v1573_v52 = vmul.f32 2.0, %v1508_v19  ;;  %2171 = vmatprep.mubr.bf16.mxu1 %v1630_v10  ;;  %v1604_v13 = vsub.f32 %v1572_v44, %v5281_v7 }
 0x503   : > { %v1510_v63 = vpop.f32.mrf.mxu0  ;;  %2172 = vmatmul.mubr.bf16.gmra.mxu1 %v1629_v22 }
 0x504   : > { %v1574_v57 = vmul.f32 2.0, %v1510_v63  ;;  %v1605_v6 = vsub.f32 %v1573_v52, %v5303_v36 }
 0x505   : > { %v1514_v26 = vpop.f32.mrf.mxu0 }
 0x506   : > { %v1606_v5 = vsub.f32 %v1574_v57, %v5312_v50  ;;  %v1631_v2 = vpack.c.bf16 %v1605_v6, %v1603_v17  ;;  %v1575_v39 = vmul.f32 2.0, %v1514_v26  ;;  %v7109_v57 = vld [vmem:[#allocation5_spill] sm:$0xff]  ;;  %v7110_v26 = vld [vmem:[#allocation3_spill] sm:$0xff]  ;;  %v7112_v17 = vld [vmem:[#allocation2_spill] sm:$0xff] }
 0x507   : > { %v1516_v14 = vpop.f32.mrf.mxu0 }
 0x508   : > { %v1632_v56 = vpack.c.bf16 %v1606_v5, %v1604_v13  ;;  %v1576_v59 = vmul.f32 2.0, %v1516_v14  ;;  %v1607_v12 = vsub.f32 %v1575_v39, %v5253_v58  ;;  %v7111_v13 = vld [vmem:[#allocation6_spill] sm:$0xff] }
 0x509   : > { %v1518_v30 = vpop.f32.mrf.mxu0 }
 0x50a   : > { %v1577_v15 = vmul.f32 2.0, %v1518_v30  ;;  %2179 = vmatprep.mubr.bf16.mxu1 %v1632_v56  ;;  %v1608_v7 = vsub.f32 %v1576_v59, %v5260_v46 }
 0x50b   : > { %v1520_v47 = vpop.f32.mrf.mxu0  ;;  %2180 = vmatmul.mubr.bf16.gmra.mxu1 %v1631_v2 }
 0x50c   : > { %v1578_v38 = vmul.f32 2.0, %v1520_v47  ;;  %v1609_v36 = vsub.f32 %v1577_v15, %v5293_v32 }
 0x50d   : > { %v1524_v8 = vpop.f32.mrf.mxu0 }
 0x50e   : > { %v1610_v50 = vsub.f32 %v1578_v38, %v5298_v35  ;;  %v1633_v29 = vpack.c.bf16 %v1609_v36, %v1607_v12  ;;  %v1579_v62 = vmul.f32 2.0, %v1524_v8  ;;  %v7113_v38 = vmov 0.0   ;;  %v7114_v36 = vld [vmem:[#allocation9_spill] sm:$0xff] }
 0x50f   : > { %v1526_v53 = vpop.f32.mrf.mxu0  ;;  %vm7115_vm9 = vcmp.ge.f32.partialorder %v7114_v36, 1.0  ;;  %vm7118_vm14 = vcmp.le.f32.partialorder %v7114_v36, -1.0 }
 0x510   : > { %v1634_v45 = vpack.c.bf16 %v1610_v50, %v1608_v7  ;;  %v1580_v28 = vmul.f32 2.0, %v1526_v53  ;;  %v1611_v58 = vsub.f32 %v1579_v62, %v7108_v34  ;;  %v3768_v8 = vsel %vm7115_vm9, 1.0, %v7113_v38  ;;  %v7116_v7 = vld [vmem:[#allocation11_spill] sm:$0xff] }
 0x511   : > { %v1528_v9 = vpop.f32.mrf.mxu0  ;;  %vm7117_vm13 = vcmp.ge.f32.partialorder %v7116_v7, 1.0  ;;  %vm7119_vm15 = vcmp.le.f32.partialorder %v7116_v7, -1.0 }
 0x512   : > { %v1581_v3 = vmul.f32 2.0, %v1528_v9  ;;  %2187 = vmatprep.mubr.bf16.mxu1 %v1634_v45  ;;  %v1612_v46 = vsub.f32 %v1580_v28, %v5351_v48  ;;  %v3769_v50 = vsel %vm7117_vm13, 1.0, %v7113_v38  ;;  %v3773_v28 = vsel %vm7119_vm15, 1.0, %v7113_v38 }
 0x513   : > { %v1530_v20 = vpop.f32.mrf.mxu0  ;;  %2188 = vmatmul.mubr.bf16.gmra.mxu1 %v1633_v29  ;;  %v3772_v29 = vsel %vm7118_vm14, 1.0, %v7113_v38 }
 0x514   : > { %v1582_v33 = vmul.f32 2.0, %v1530_v20  ;;  %v1613_v32 = vsub.f32 %v1581_v3, %v5377_v54 }
 0x515   : > { %v1534_v41 = vpop.f32.mrf.mxu0 }
 0x516   : > { %v1614_v35 = vsub.f32 %v1582_v33, %v7107_v23  ;;  %v1635_v10 = vpack.c.bf16 %v1613_v32, %v1611_v58  ;;  %v1583_v52 = vmul.f32 2.0, %v1534_v41  ;;  %v7120_v58 = vld [vmem:[#allocation8_spill] sm:$0xff] }
 0x517   : > { %v1536_v31 = vpop.f32.mrf.mxu0  ;;  %vm7121_vm0 = vcmp.ge.f32.partialorder %v7120_v58, 1.0  ;;  %vm7124_vm4 = vcmp.le.f32.partialorder %v7120_v58, -1.0 }
 0x518   : > { %v1636_v42 = vpack.c.bf16 %v1614_v35, %v1612_v46  ;;  %v1584_v22 = vmul.f32 2.0, %v1536_v31  ;;  %v1615_v14 = vsub.f32 %v1583_v52, %v7112_v17  ;;  %v3770_v31 = vsel %vm7121_vm0, 1.0, %v7113_v38 }
 0x519   : > { %v1538_v19 = vpop.f32.mrf.mxu0 }
 0x51a   : > { %v1585_v44 = vmul.f32 2.0, %v1538_v19  ;;  %2195 = vmatprep.mubr.bf16.mxu1 %v1636_v42  ;;  %v1616_v48 = vsub.f32 %v1584_v22, %v7110_v26  ;;  %v7122_v42 = vld [vmem:[#allocation10_spill] sm:$0xff] }
 0x51b   : > { %v1540_v27 = vpop.f32.mrf.mxu0  ;;  %2196 = vmatmul.mubr.bf16.gmra.mxu1 %v1635_v10  ;;  %vm7123_vm2 = vcmp.ge.f32.partialorder %v7122_v42, 1.0  ;;  %vm7125_vm7 = vcmp.le.f32.partialorder %v7122_v42, -1.0 }
 0x51c   : > { %v1586_v63 = vmul.f32 2.0, %v1540_v27  ;;  %v1617_v54 = vsub.f32 %v1585_v44, %v7109_v57  ;;  %v3771_v10 = vsel %vm7123_vm2, 1.0, %v7113_v38  ;;  %v3774_v27 = vsel %vm7124_vm4, 1.0, %v7113_v38 }
 0x51d   : > { %v1544_v6 = vpop.f32.mrf.mxu0 }
 0x51e   : > { %v1618_v5 = vsub.f32 %v1586_v63, %v7111_v13  ;;  %v1587_v30 = vmul.f32 2.0, %v1544_v6  ;;  %v1637_v59 = vpack.c.bf16 %v1617_v54, %v1615_v14  ;;  %v3775_v63 = vsel %vm7125_vm7, 1.0, %v7113_v38 }
 0x51f   : > { %v1546_v56 = vpop.f32.mrf.mxu0 }
 0x520   : > { %v1638_v2 = vpack.c.bf16 %v1618_v5, %v1616_v48  ;;  %v1588_v39 = vmul.f32 2.0, %v1546_v56  ;;  %v1619_v53 = vsub.f32 %v1587_v30, %v3768_v8 }
 0x521   : > { %v1548_v15 = vpop.f32.mrf.mxu0 }
 0x522   : > { %v1589_v47 = vmul.f32 2.0, %v1548_v15  ;;  %2203 = vmatprep.mubr.bf16.mxu1 %v1638_v2  ;;  %v1620_v62 = vsub.f32 %v1588_v39, %v3772_v29 }
 0x523   : > { %v1550_v12 = vpop.f32.mrf.mxu0  ;;  %2204 = vmatmul.mubr.bf16.gmra.mxu1 %v1637_v59 }
 0x524   : > { %v1621_v45 = vsub.f32 %v1589_v47, %v3769_v50  ;;  %v1590_v9 = vmul.f32 2.0, %v1550_v12  ;;  %v5999_v12 = vpop.f32.mrf.mxu1 }
 0x525   : > { %v1554_v3 = vpop.f32.mrf.mxu0 }
 0x526   : > { %v1639_v20 = vpack.c.bf16 %v1621_v45, %v1619_v53  ;;  %v1622_v33 = vsub.f32 %v1590_v9, %v3773_v28  ;;  %v1591_v41 = vmul.f32 2.0, %v1554_v3  ;;  %v6006_v45 = vld [vmem:[%s6960_s5] ss:$0 sm:$0xff]  ;;  %v6008_v9 = vpop.f32.mrf.mxu1 }
 0x527   : > { %v1556_v32 = vpop.f32.mrf.mxu0 }
 0x528   : > { %v1640_v46 = vpack.c.bf16 %v1622_v33, %v1620_v62  ;;  %v1592_v35 = vmul.f32 2.0, %v1556_v32  ;;  %v1623_v22 = vsub.f32 %v1591_v41, %v3770_v31  ;;  %v1972_v62 = vadd.f32 %v5729_v37, %v6006_v45 }
 0x529   : > { %v1558_v23 = vpop.f32.mrf.mxu0  ;;  %v1980_v37 = vadd.f32 %v5747_v49, %v6006_v45 }
 0x52a   : > { %v1593_v34 = vmul.f32 2.0, %v1558_v23  ;;  %2211 = vmatprep.mubr.bf16.mxu1 %v1640_v46  ;;  %v1624_v57 = vsub.f32 %v1592_v35, %v3774_v27 }
 0x52b   : > { %v1560_v19 = vpop.f32.mrf.mxu0  ;;  %2212 = vmatmul.mubr.bf16.gmra.mxu1 %v1639_v20  ;;  %v4203_v20 = vadd.f32 %v5739_v16, %v5734_v21  ;;  %v4209_v21 = vadd.f32 %v5757_v0, %v5752_v40 }
 0x52c   : > { %v1625_v44 = vsub.f32 %v1593_v34, %v3771_v10  ;;  %v1594_v52 = vmul.f32 2.0, %v1560_v19 }
 0x52d   : > { %v4262_v48 = vpop.f32.mrf.mxu0  ;;  %v1975_v34 = vadd.f32 %v4203_v20, %v6006_v45  ;;  %v1983_v40 = vadd.f32 %v4209_v21, %v6006_v45  ;;  %v4215_v20 = vadd.f32 %v5776_v11, %v5770_v25  ;;  %v7130_v21 = vmov 0 }
 0x52e   : > { %v1641_v54 = vpack.c.bf16 %v1625_v44, %v1623_v22  ;;  %v1626_v6 = vsub.f32 %v1594_v52, %v3775_v63 }
 0x52f   : > { %v4263_v13 = vpop.f32.mrf.mxu0 }
 0x530   : > { %v1642_v26 = vpack.c.bf16 %v1626_v6, %v1624_v57  ;;  %v4264_v29 = vadd.f32 %v4263_v13, %v4262_v48  ;;  %v7126_v48 = vmov 0 }
 0x531   : > { %v4265_v5 = vpop.f32.mrf.mxu0 }
 0x532   : > { %2219 = vmatprep.mubr.bf16.mxu1 %v1642_v26  ;;  %v2069_v32 = vadd.f32 %v4264_v29, %v1972_v62  ;;  %v1988_v62 = vadd.f32 %v5765_v43, %v6006_v45 }
 0x533   : > { %2220 = vmatmul.mubr.bf16.gmra.mxu1 %v1641_v54  ;;  %v4266_v17 = vpop.f32.mrf.mxu0 }
 0x534   : > { %2662 = vmatprep.mubr.bf16.mxu1 %v7103_v55  ;;  %v4267_v41 = vadd.f32 %v4266_v17, %v4265_v5 }
 0x535   : > { %v4268_v14 = vpop.f32.mrf.mxu0 }
 0x536   : > { %v2072_v10 = vadd.f32 %v4267_v41, %v1975_v34 }
 0x537   : > { %v4269_v56 = vpop.f32.mrf.mxu0 }
 0x538   : > { %v4270_v31 = vadd.f32 %v4269_v56, %v4268_v14  ;;  %v7128_v56 = vmov 0 }
 0x539   : > { %v4271_v30 = vpop.f32.mrf.mxu0 }
 0x53a   : > { %v2077_v27 = vadd.f32 %v4270_v31, %v1980_v37 }
 0x53b   : > { %v4272_v2 = vpop.f32.mrf.mxu0 }
 0x53c   : > { %v4273_v54 = vadd.f32 %v4272_v2, %v4271_v30 }
 0x53d   : > { %v4274_v59 = vpop.f32.mrf.mxu0 }
 0x53e   : > { %v2080_v29 = vadd.f32 %v4273_v54, %v1983_v40 }
 0x53f   : > { %v4275_v15 = vpop.f32.mrf.mxu0 }
 0x540   : > { %v4276_v30 = vadd.f32 %v4275_v15, %v4274_v59 }
 0x541   : > { %v5987_v39 = vpop.f32.mrf.mxu0 }
 0x542   : > { %v2085_v34 = vadd.f32 %v4276_v30, %v1988_v62  ;;  %v7134_v30 = vld [vmem:[#allocation12_spill] sm:$0xff] }
 0x543   : > { %v5989_v47 = vpop.f32.mrf.mxu0 }
 0x544   : > { %v4279_v25 = vadd.f32 %v5989_v47, %v5987_v39 }
 0x545   : > { %v5991_v36 = vpop.f32.mrf.mxu0 }
 0x547   : > { %v5993_v8 = vpop.f32.mrf.mxu0 }
 0x549   : > { %v5995_v7 = vpop.f32.mrf.mxu0 }
 0x54b   : > { %v5997_v50 = vpop.f32.mrf.mxu0 }
 0x54d   : > { %v6001_v53 = vpop.f32.mrf.mxu0 }
 0x54f   : > { %v6010_v28 = vpop.f32.mrf.mxu0 }
 0x551   : > { %v6016_v23 = vpop.f32.mrf.mxu0 }
 0x553   : > { %v6023_v16 = vpop.f32.mrf.mxu0 }
 0x555   : > { %v6034_v0 = vpop.f32.mrf.mxu0 }
 0x5bb   : > { %v4326_v3 = vpop.f32.mrf.mxu1 }
 0x5bd   : > { %v4327_v33 = vpop.f32.mrf.mxu1 }
 0x5be   : > { %v4328_v46 = vadd.f32 %v4327_v33, %v4326_v3  ;;  %v6058_v33 = vpop.f32.mrf.mxu0 }
 0x5bf   : > { %v4329_v35 = vpop.f32.mrf.mxu1 }
 0x5c0   : > { %v2166_v58 = vadd.f32 %v4328_v46, %v2069_v32  ;;  %v6072_v31 = vpop.f32.mrf.mxu0 }
 0x5c1   : > { %v4330_v42 = vpop.f32.mrf.mxu1 }
 0x5c2   : > { %vm2232_vm1 = vcmp.ge.f32.partialorder %v2166_v58, 1.0  ;;  %vm2244_vm3 = vcmp.le.f32.partialorder %v2166_v58, -1.0  ;;  %v4331_v19 = vadd.f32 %v4330_v42, %v4329_v35 }
 0x5c3   : > { %v4332_v22 = vpop.f32.mrf.mxu1  ;;  %v6027_v44 = vsel %vm2232_vm1, 1.0, %v7113_v38  ;;  %v6031_v63 = vsel %vm2244_vm3, 1.0, %v7113_v38 }
 0x5c4   : > { %v2169_v52 = vadd.f32 %v4331_v19, %v2072_v10  ;;  %v2256_v6 = vsub.f32 %v2166_v58, %v6027_v44  ;;  %v2260_v14 = vmul.f32 -1.0, %v6031_v63 }
 0x5c5   : > { %v4333_v57 = vpop.f32.mrf.mxu1 }
 0x5c6   : > { %vm2233_vm5 = vcmp.ge.f32.partialorder %v2169_v52, 1.0  ;;  %vm2245_vm6 = vcmp.le.f32.partialorder %v2169_v52, -1.0  ;;  %v4334_v49 = vadd.f32 %v4333_v57, %v4332_v22  ;;  %v2264_v43 = vsub.f32 %v2256_v6, %v2260_v14 }
 0x5c7   : > { %v4335_v26 = vpop.f32.mrf.mxu1  ;;  %vm6038_vm8 = vmpackc.low %vm2245_vm6, %vm2244_vm3  ;;  %v6043_v13 = vsel %vm2233_vm5, 1.0, %v7113_v38  ;;  %v6046_v5 = vsel %vm2245_vm6, 1.0, %v7113_v38  ;;  %v1991_v22 = vadd.f32 %v4215_v20, %v6006_v45  ;;  %v1996_v57 = vadd.f32 %v5793_v60, %v6006_v45 }
 0x5c8   : > { %v7127_v48 = vsel %vm6038_vm8, 4294967295, %v7126_v48  ;;  %v2174_v17 = vadd.f32 %v4334_v49, %v2077_v27  ;;  %vm6050_vm10 = vmpackc.low %vm2233_vm5, %vm2232_vm1  ;;  %v2257_v32 = vsub.f32 %v2169_v52, %v6043_v13  ;;  %v2261_v46 = vmul.f32 -1.0, %v6046_v5 }
 0x5c9   : > { %v7129_v56 = vsel %vm6050_vm10, 4294967295, %v7128_v56  ;;  %v4336_v2 = vpop.f32.mrf.mxu1  ;;  %v2268_v52 = vmul.f32 0.95122945, %v2264_v43  ;;  %v7132_v27 = vmov 0  ;;  %v2088_v40 = vadd.f32 %v4279_v25, %v1991_v22 }
 0x5ca   : > { %vm2234_vm11 = vcmp.ge.f32.partialorder %v2174_v17, 1.0  ;;  %vm2246_vm12 = vcmp.le.f32.partialorder %v2174_v17, -1.0  ;;  %v4337_v3 = vadd.f32 %v4336_v2, %v4335_v26  ;;  %v2265_v19 = vsub.f32 %v2257_v32, %v2261_v46  ;;  %v7135_v2 = vld [vmem:[#allocation13_spill] sm:$0xff] }
 0x5cb   : > { %v4338_v41 = vpop.f32.mrf.mxu1  ;;  %v6064_v59 = vsel %vm2234_vm11, 1.0, %v7113_v38  ;;  %v6068_v15 = vsel %vm2246_vm12, 1.0, %v7113_v38  ;;  %v4282_v6 = vadd.f32 %v5993_v8, %v5991_v36 }
 0x5cc   : > { %v2177_v35 = vadd.f32 %v4337_v3, %v2080_v29  ;;  %v2258_v42 = vsub.f32 %v2174_v17, %v6064_v59  ;;  %v2262_v37 = vmul.f32 -1.0, %v6068_v15  ;;  %v4221_v17 = vadd.f32 %v7135_v2, %v7134_v30  ;;  %v6099_v29 = vpop.f32.mrf.mxu0  ;;  %v7140_v2 = vld [vmem:[#allocation14_spill] sm:$0xff] }
 0x5cd   : > { %v4339_v58 = vpop.f32.mrf.mxu1  ;;  %v2269_v62 = vmul.f32 0.95122945, %v2265_v19  ;;  %v2093_v43 = vadd.f32 %v4282_v6, %v1996_v57  ;;  %v4288_v6 = vadd.f32 %v6010_v28, %v6001_v53 }
 0x5ce   : > { %vm2235_vm9 = vcmp.ge.f32.partialorder %v2177_v35, 1.0  ;;  %vm2247_vm13 = vcmp.le.f32.partialorder %v2177_v35, -1.0  ;;  %v4340_v11 = vadd.f32 %v4339_v58, %v4338_v41  ;;  %v2266_v60 = vsub.f32 %v2258_v42, %v2262_v37 }
 0x5cf   : > { %v4341_v10 = vpop.f32.mrf.mxu1  ;;  %vm6077_vm14 = vmpackc.low %vm2247_vm13, %vm2246_vm12  ;;  %v6083_v39 = vsel %vm2235_vm9, 1.0, %v7113_v38  ;;  %v6093_v54 = vsel %vm2247_vm13, 1.0, %v7113_v38  ;;  %v1999_v25 = vadd.f32 %v4221_v17, %v6006_v45  ;;  %v4227_v17 = vadd.f32 %v7140_v2, %v5832_v18 }
 0x5d0   : > { %v7131_v21 = vsel %vm6077_vm14, 4294967295, %v7130_v21  ;;  %v2182_v47 = vadd.f32 %v4340_v11, %v2085_v34  ;;  %vm6086_vm15 = vmpackc.low %vm2235_vm9, %vm2234_vm11  ;;  %v2259_v3 = vsub.f32 %v2177_v35, %v6083_v39  ;;  %v2263_v41 = vmul.f32 -1.0, %v6093_v54  ;;  %v6114_v11 = vpop.f32.mrf.mxu0 }
 0x5d1   : > { %v7133_v27 = vsel %vm6086_vm15, 4294967295, %v7132_v27  ;;  %v4342_v49 = vpop.f32.mrf.mxu1  ;;  %v4285_v35 = vadd.f32 %v5997_v50, %v5995_v7  ;;  %v2270_v42 = vmul.f32 0.95122945, %v2266_v60 }
 0x5d2   : > { %v2272_v26 = vadd.f32 %v2268_v52, %v2182_v47  ;;  %v4343_v14 = vadd.f32 %v4342_v49, %v4341_v10  ;;  %v2267_v47 = vsub.f32 %v2259_v3, %v2263_v41  ;;  %v2004_v52 = vadd.f32 %v5827_v4, %v6006_v45  ;;  %v6140_v3 = vpop.f32.mrf.mxu0 }
 0x5d3   : > { %v4344_v20 = vpop.f32.mrf.mxu1 }
 0x5d4   : > { %vm2276_vm0 = vcmp.ge.f32.partialorder %v2272_v26, 1.0  ;;  %vm2288_vm2 = vcmp.le.f32.partialorder %v2272_v26, -1.0  ;;  %v2185_v32 = vadd.f32 %v4343_v14, %v2088_v40  ;;  %v2096_v40 = vadd.f32 %v4285_v35, %v1999_v25  ;;  %v6155_v25 = vpop.f32.mrf.mxu0 }
 0x5d5   : > { %v4345_v46 = vpop.f32.mrf.mxu1  ;;  %v6105_v36 = vsel %vm2276_vm0, 1.0, %v7113_v38  ;;  %v6109_v8 = vsel %vm2288_vm2, 1.0, %v7113_v38  ;;  %v2271_v28 = vmul.f32 0.95122945, %v2267_v47 }
 0x5d6   : > { %v2273_v34 = vadd.f32 %v2269_v62, %v2185_v32  ;;  %v4346_v58 = vadd.f32 %v4345_v46, %v4344_v20  ;;  %v2300_v19 = vsub.f32 %v2272_v26, %v6105_v36  ;;  %v2304_v37 = vmul.f32 -1.0, %v6109_v8 }
 0x5d7   : > { %v4347_v10 = vpop.f32.mrf.mxu1  ;;  %v2101_v46 = vadd.f32 %v4288_v6, %v2004_v52  ;;  %v2012_v52 = vadd.f32 %v5856_v51, %v6006_v45 }
 0x5d8   : > { %vm2277_vm4 = vcmp.ge.f32.partialorder %v2273_v34, 1.0  ;;  %vm2289_vm7 = vcmp.le.f32.partialorder %v2273_v34, -1.0  ;;  %v2190_v22 = vadd.f32 %v4346_v58, %v2093_v43  ;;  %v2308_v20 = vsub.f32 %v2300_v19, %v2304_v37 }
 0x5d9   : > { %v4348_v7 = vpop.f32.mrf.mxu1  ;;  %v6121_v50 = vsel %vm2277_vm4, 1.0, %v7113_v38  ;;  %v6124_v57 = vsel %vm2289_vm7, 1.0, %v7113_v38  ;;  %vm6127_vm1 = vmpackc.low %vm2289_vm7, %vm2288_vm2  ;;  %v4291_v43 = vadd.f32 %v6023_v16, %v6016_v23  ;;  %v2007_v58 = vadd.f32 %v4227_v17, %v6006_v45 }
 0x5da   : > { %v2274_v14 = vadd.f32 %v2270_v42, %v2190_v22  ;;  %v4349_v30 = vadd.f32 %v4348_v7, %v4347_v10  ;;  %vm6134_vm3 = vmpackc.low %vm2277_vm4, %vm2276_vm0  ;;  %v2301_v60 = vsub.f32 %v2273_v34, %v6121_v50  ;;  %v2305_v32 = vmul.f32 -1.0, %v6124_v57 }
 0x5db   : > { %v4350_v62 = vpop.f32.mrf.mxu1  ;;  %v2312_v42 = vmul.f32 0.95122945, %v2308_v20  ;;  %v2104_v6 = vadd.f32 %v4291_v43, %v2007_v58  ;;  %v7146_v20 = vld [vmem:[#allocation16_spill] sm:$0xff] }
 0x5dc   : > { %vm2278_vm5 = vcmp.ge.f32.partialorder %v2274_v14, 1.0  ;;  %vm2290_vm6 = vcmp.le.f32.partialorder %v2274_v14, -1.0  ;;  %v2193_v53 = vadd.f32 %v4349_v30, %v2096_v40  ;;  %v2309_v19 = vsub.f32 %v2301_v60, %v2305_v32  ;;  %v4302_v32 = vpop.f32.mrf.mxu0 }
 0x5dd   : > { %v4351_v26 = vpop.f32.mrf.mxu1  ;;  %v6146_v41 = vsel %vm2278_vm5, 1.0, %v7113_v38  ;;  %v6150_v18 = vsel %vm2290_vm6, 1.0, %v7113_v38  ;;  %v4294_v30 = vadd.f32 %v6058_v33, %v6034_v0 }
 0x5de   : > { %v2275_v35 = vadd.f32 %v2271_v28, %v2193_v53  ;;  %v4352_v34 = vadd.f32 %v4351_v26, %v4350_v62  ;;  %v2302_v37 = vsub.f32 %v2274_v14, %v6146_v41  ;;  %v2306_v47 = vmul.f32 -1.0, %v6150_v18  ;;  %v7145_v62 = vld [vmem:[#allocation15_spill] sm:$0xff] }
 0x5df   : > { %v4353_v10 = vpop.f32.mrf.mxu1  ;;  %v4233_v60 = vadd.f32 %v7146_v20, %v7145_v62  ;;  %v2313_v53 = vmul.f32 0.95122945, %v2309_v19  ;;  %v2109_v58 = vadd.f32 %v4294_v30, %v2012_v52 }
 0x5e0   : > { %vm2279_vm11 = vcmp.ge.f32.partialorder %v2275_v35, 1.0  ;;  %vm2291_vm12 = vcmp.le.f32.partialorder %v2275_v35, -1.0  ;;  %v2198_v22 = vadd.f32 %v4352_v34, %v2101_v46  ;;  %v2310_v33 = vsub.f32 %v2302_v37, %v2306_v47 }
 0x5e1   : > { %v4354_v23 = vpop.f32.mrf.mxu1  ;;  %v6162_v16 = vsel %vm2279_vm11, 1.0, %v7113_v38  ;;  %v6165_v7 = vsel %vm2291_vm12, 1.0, %v7113_v38  ;;  %vm6168_vm9 = vmpackc.low %vm2291_vm12, %vm2290_vm6  ;;  %v2015_v19 = vadd.f32 %v4233_v60, %v6006_v45  ;;  %v4300_v60 = vadd.f32 %v6140_v3, %v6114_v11 }
 0x5e2   : > { %v2316_v2 = vadd.f32 %v2312_v42, %v2198_v22  ;;  %v4355_v17 = vadd.f32 %v4354_v23, %v4353_v10  ;;  %vm6175_vm13 = vmpackc.low %vm2279_vm11, %vm2278_vm5  ;;  %v2303_v26 = vsub.f32 %v2275_v35, %v6162_v16  ;;  %v2307_v46 = vmul.f32 -1.0, %v6165_v7  ;;  %v4304_v22 = vpop.f32.mrf.mxu0 }
 0x5e3   : > { %v4356_v28 = vpop.f32.mrf.mxu1  ;;  %v4297_v42 = vadd.f32 %v6099_v29, %v6072_v31  ;;  %v2314_v62 = vmul.f32 0.95122945, %v2310_v33 }
 0x5e4   : > { %vm2320_vm0 = vcmp.ge.f32.partialorder %v2316_v2, 1.0  ;;  %vm2332_vm2 = vcmp.le.f32.partialorder %v2316_v2, -1.0  ;;  %v2201_v0 = vadd.f32 %v4355_v17, %v2104_v6  ;;  %v2311_v37 = vsub.f32 %v2303_v26, %v2307_v46 }
 0x5e5   : > { %v4357_v43 = vpop.f32.mrf.mxu1  ;;  %v6185_v14 = vsel %vm2320_vm0, 1.0, %v7113_v38  ;;  %v6189_v34 = vsel %vm2332_vm2, 1.0, %v7113_v38  ;;  %v2112_v30 = vadd.f32 %v4297_v42, %v2015_v19  ;;  %v2020_v46 = vadd.f32 %v5876_v24, %v6006_v45 }
 0x5e6   : > { %7147 = vst [vmem:[#allocation7_spill] sm:$0xff] %v6185_v14  ;;  %v2317_v35 = vadd.f32 %v2313_v53, %v2201_v0  ;;  %v4358_v10 = vadd.f32 %v4357_v43, %v4356_v28  ;;  %v2344_v47 = vsub.f32 %v2316_v2, %v6185_v14  ;;  %v2348_v6 = vmul.f32 -1.0, %v6189_v34  ;;  %v4305_v0 = vpop.f32.mrf.mxu0 }
 0x5e7   : > { %v4359_v23 = vpop.f32.mrf.mxu1  ;;  %v2315_v33 = vmul.f32 0.95122945, %v2311_v37  ;;  %v2117_v24 = vadd.f32 %v4300_v60, %v2020_v46  ;;  %v4306_v46 = vadd.f32 %v4305_v0, %v4304_v22 }
 0x5e8   : > { %vm2321_vm4 = vcmp.ge.f32.partialorder %v2317_v35, 1.0  ;;  %vm2333_vm7 = vcmp.le.f32.partialorder %v2317_v35, -1.0  ;;  %v2206_v17 = vadd.f32 %v4358_v10, %v2109_v58  ;;  %v2352_v58 = vsub.f32 %v2344_v47, %v2348_v6  ;;  %v4307_v6 = vpop.f32.mrf.mxu0 }
 0x5e9   : > { %v4360_v20 = vpop.f32.mrf.mxu1  ;;  %v6197_v52 = vsel %vm2321_vm4, 1.0, %v7113_v38  ;;  %v6200_v31 = vsel %vm2333_vm7, 1.0, %v7113_v38  ;;  %vm6203_vm5 = vmpackc.low %vm2333_vm7, %vm2332_vm2 }
 0x5ea   : > { %7148 = vst [vmem:[#allocation4_spill] sm:$0xff] %v6200_v31  ;;  %v2318_v53 = vadd.f32 %v2314_v62, %v2206_v17  ;;  %v4361_v28 = vadd.f32 %v4360_v20, %v4359_v23  ;;  %vm6210_vm6 = vmpackc.low %vm2321_vm4, %vm2320_vm0  ;;  %v2345_v10 = vsub.f32 %v2317_v35, %v6197_v52  ;;  %v2349_v11 = vmul.f32 -1.0, %v6200_v31 }
 0x5eb   : > { %v4362_v43 = vpop.f32.mrf.mxu1  ;;  %v4303_v23 = vadd.f32 %v4302_v32, %v6155_v25  ;;  %v2023_v35 = vadd.f32 %v5884_v1, %v6006_v45  ;;  %v2356_v17 = vmul.f32 0.95122945, %v2352_v58 }
 0x5ec   : > { %vm2322_vm11 = vcmp.ge.f32.partialorder %v2318_v53, 1.0  ;;  %vm2334_vm12 = vcmp.le.f32.partialorder %v2318_v53, -1.0  ;;  %v2209_v42 = vadd.f32 %v4361_v28, %v2112_v30  ;;  %v2353_v14 = vsub.f32 %v2345_v10, %v2349_v11  ;;  %v4308_v11 = vpop.f32.mrf.mxu0 }
 0x5ed   : > { %v4363_v3 = vpop.f32.mrf.mxu1  ;;  %v6220_v2 = vsel %vm2322_vm11, 1.0, %v7113_v38  ;;  %v6224_v19 = vsel %vm2334_vm12, 1.0, %v7113_v38  ;;  %v2120_v32 = vadd.f32 %v4303_v23, %v2023_v35  ;;  %v2028_v10 = vadd.f32 %v5894_v61, %v6006_v45 }
 0x5ee   : > { %7153 = vst [vmem:[#allocation5_spill] sm:$0xff] %v6220_v2  ;;  %7154 = vst [vmem:[#allocation3_spill] sm:$0xff] %v6224_v19  ;;  %v2319_v37 = vadd.f32 %v2315_v33, %v2209_v42  ;;  %v4364_v47 = vadd.f32 %v4363_v3, %v4362_v43  ;;  %v2346_v20 = vsub.f32 %v2318_v53, %v6220_v2  ;;  %v2350_v30 = vmul.f32 -1.0, %v6224_v19 }
 0x5ef   : > { %v4365_v62 = vpop.f32.mrf.mxu1  ;;  %v4245_v42 = vadd.f32 %v6008_v9, %v5999_v12  ;;  %v2357_v23 = vmul.f32 0.95122945, %v2353_v14  ;;  %v2125_v0 = vadd.f32 %v4306_v46, %v2028_v10  ;;  %v4309_v35 = vadd.f32 %v4308_v11, %v4307_v6  ;;  %v4770_v11 = vld [vmem:[%s6961_s6 + $0x78] sm:$0xff]  }
 0x5f0   : > { %vm2323_vm0 = vcmp.ge.f32.partialorder %v2319_v37, 1.0  ;;  %vm2335_vm2 = vcmp.le.f32.partialorder %v2319_v37, -1.0  ;;  %v2214_v28 = vadd.f32 %v4364_v47, %v2117_v24  ;;  %v2354_v24 = vsub.f32 %v2346_v20, %v2350_v30 }
 0x5f1   : > { %v4366_v31 = vpop.f32.mrf.mxu1  ;;  %v6232_v60 = vsel %vm2323_vm0, 1.0, %v7113_v38  ;;  %v6235_v25 = vsel %vm2335_vm2, 1.0, %v7113_v38  ;;  %vm6238_vm4 = vmpackc.low %vm2335_vm2, %vm2334_vm12  ;;  %v2031_v61 = vadd.f32 %v4245_v42, %v6006_v45  ;;  %v7171_v10 = vmov 1.0|1.0  }
 0x5f2   : > { %7155 = vst [vmem:[#allocation6_spill] sm:$0xff] %v6232_v60  ;;  %7156 = vst [vmem:[#allocation2_spill] sm:$0xff] %v6235_v25  ;;  %v6242_v33 = vadd.f32 %v2356_v17, %v2214_v28  ;;  %v4367_v43 = vadd.f32 %v4366_v31, %v4365_v62  ;;  %v2347_v22 = vsub.f32 %v2319_v37, %v6232_v60  ;;  %v2351_v31 = vmul.f32 -1.0, %v6235_v25 }
 0x5f3   : > { %vm6245_vm7 = vmpackc.low %vm2323_vm0, %vm2322_vm11  ;;  %v4368_v3 = vpop.f32.mrf.mxu1  ;;  %v2358_v28 = vmul.f32 0.95122945, %v2354_v24  ;;  %v2128_v45 = vadd.f32 %v4309_v35, %v2031_v61  ;;  %v4772_v24 = vld [vmem:[%s6961_s6 + $0x70] sm:$0xff]   ;;  %v4777_v35 = vld [vmem:[%s6961_s6 + $0x20] sm:$0xff]  }
 0x5f4   : > { %7159 = vst [vmem:[#allocation9_spill] sm:$0xff] %v6242_v33  ;;  %v2217_v47 = vadd.f32 %v4367_v43, %v2120_v32  ;;  %vm7018_vm11 = vcmp.le.f32.partialorder %v6242_v33, -1.0  ;;  %v2355_v9 = vsub.f32 %v2347_v22, %v2351_v31  ;;  %vm7022_vm2 = vcmp.ge.f32.partialorder %v6242_v33, 1.0  ;;  %v4774_v22 = vld [vmem:[%s6961_s6 + $0x68] sm:$0xff]   ;;  %v4779_v61 = vld [vmem:[%s6961_s6 + $0x18] sm:$0xff]  }
 0x5f5   : > { %v4369_v53 = vpop.f32.mrf.mxu1  ;;  %v4775_v31 = vld [vmem:[%s6961_s6 + $0x28] sm:$0xff]  }
 0x5f6   : > { %v6255_v17 = vadd.f32 %v2357_v23, %v2217_v47  ;;  %v4370_v62 = vadd.f32 %v4369_v53, %v4368_v3  ;;  %v2359_v46 = vmul.f32 0.95122945, %v2355_v9  ;;  %v4771_v3 = vld [vmem:[%s6961_s6 + $0x38] sm:$0xff]   ;;  %v6360_v47 = vld [vmem:[%s4937_s14] sm:$0xff]   ;;  %v4773_v23 = vld [vmem:[%s6961_s6 + $0x30] sm:$0xff]  }
 0x5f7   : > { %v4371_v38 = vpop.f32.mrf.mxu1  ;;  %v4776_v53 = vld [vmem:[%s6961_s6 + $0x60] sm:$0xff]   ;;  %v4781_v9 = vld [vmem:[%s6961_s6 + $0x10] sm:$0xff]  }
 0x5f8   : > { %7162 = vst [vmem:[#allocation11_spill] sm:$0xff] %v6255_v17  ;;  %vm7021_vm12 = vcmp.ge.f32.partialorder %v6255_v17, 1.0  ;;  %v2222_v12 = vadd.f32 %v4370_v62, %v2125_v0  ;;  %vm7017_vm0 = vcmp.le.f32.partialorder %v6255_v17, -1.0  ;;  %v6377_v0 = vld [vmem:[%s4937_s14 + $0x8] sm:$0xff]   ;;  %v4778_v62 = vld [vmem:[%s6961_s6 + $0x58] sm:$0xff]  }
 0x5f9   : > { %v4372_v14 = vpop.f32.mrf.mxu1  ;;  %vm6266_vm10 = vmpackc.low %vm7017_vm0, %vm7018_vm11 }
 0x5fa   : > { %v6270_v6 = vadd.f32 %v2358_v28, %v2222_v12  ;;  %v4373_v20 = vadd.f32 %v4372_v14, %v4371_v38  ;;  %vm6276_vm8 = vmpackc.low %vm7021_vm12, %vm7022_vm2  ;;  %v4780_v28 = vld [vmem:[%s6961_s6 + $0x50] sm:$0xff]   ;;  %v4782_v14 = vld [vmem:[%s6961_s6 + $0x48] sm:$0xff]  }
 0x5fb   : > { %v6394_v12 = vld [vmem:[%s4937_s14 + $0x10] sm:$0xff]  }
 0x5fc   : > { %7165 = vst [vmem:[#allocation8_spill] sm:$0xff] %v6270_v6  ;;  %v2225_v32 = vadd.f32 %v4373_v20, %v2128_v45  ;;  %vm7024_vm11 = vcmp.le.f32.partialorder %v6270_v6, -1.0  ;;  %vm7026_vm14 = vcmp.ge.f32.partialorder %v6270_v6, 1.0  ;;  %v4783_v45 = vld [vmem:[%s6961_s6 + $0x8] sm:$0xff]   ;;  %v4784_v20 = vld [vmem:[%s6961_s6 + $0x40] sm:$0xff]  }
 0x5fe   : > { %v6280_v43 = vadd.f32 %v2359_v46, %v2225_v32  ;;  %v6411_v32 = vld [vmem:[%s4937_s14 + $0x18] sm:$0xff]   ;;  %v4785_v46 = vld [vmem:[%s6961_s6] sm:$0xff]  }
 0x600   : > { %7168 = vst [vmem:[#allocation10_spill] sm:$0xff] %v6280_v43  ;;  %vm7025_vm0 = vcmp.ge.f32.partialorder %v6280_v43, 1.0  ;;  %vm7023_vm15 = vcmp.le.f32.partialorder %v6280_v43, -1.0 }
 0x601   : > { %vm6290_vm12 = vmpackc.low %vm7023_vm15, %vm7024_vm11  ;;  %vm7174_vm15 = vnez %v7131_v21  ;;  %vm7175_vm11 = vnez %v7133_v27 }
 0x602   : > { %3922 = vmatprep.subr.msk.bf16.mxu0 %vm6290_vm12, %v7171_v10  ;;  %vm6301_vm2 = vmpackc.low %vm7025_vm0, %vm7026_vm14  ;;  %vm7176_vm0 = vnez %v7127_v48  ;;  %vm7177_vm14 = vnez %v7129_v56 }
 0x603   : > { %3924 = vmatpush1.bf16.msk.msra.mxu0 %vm6301_vm2, %v7171_v10 }
 0x604   : > { %3926 = vmatprep.subr.msk.bf16.mxu0 %vm6266_vm10, %v7171_v10 }
 0x607   : > { %3928 = vmatpush1.bf16.msk.msra.mxu0 %vm6276_vm8, %v7171_v10 }
 0x608   : > { %3930 = vmatprep.subr.msk.bf16.mxu0 %vm6238_vm4, %v7171_v10 }
 0x60b   : > { %3932 = vmatpush1.bf16.msk.msra.mxu0 %vm6245_vm7, %v7171_v10 }
 0x60c   : > { %3934 = vmatprep.subr.msk.bf16.mxu0 %vm6203_vm5, %v7171_v10 }
 0x60f   : > { %3936 = vmatpush1.bf16.msk.msra.mxu0 %vm6210_vm6, %v7171_v10 }
 0x610   : > { %3938 = vmatprep.subr.msk.bf16.mxu0 %vm6168_vm9, %v7171_v10 }
 0x613   : > { %3940 = vmatpush1.bf16.msk.msra.mxu0 %vm6175_vm13, %v7171_v10 }
 0x614   : > { %3942 = vmatprep.subr.msk.bf16.mxu0 %vm6127_vm1, %v7171_v10 }
 0x617   : > { %3944 = vmatpush1.bf16.msk.msra.mxu0 %vm6134_vm3, %v7171_v10 }
 0x618   : > { %3946 = vmatprep.subr.msk.bf16.mxu0 %vm7174_vm15, %v7171_v10 }
 0x61b   : > { %3948 = vmatpush1.bf16.msk.msra.mxu0 %vm7175_vm11, %v7171_v10 }
 0x61c   : > { %3950 = vmatprep.subr.msk.bf16.mxu0 %vm7176_vm0, %v7171_v10 }
 0x61f   : > { %3952 = vmatpush1.bf16.msk.msra.mxu0 %vm7177_vm14, %v7171_v10 }
 0x620   : > { %4374 = vmatprep.subr.bf16.mxu0 %v4770_v11  ;;  %v6419_v11 = vld [vmem:[%s4937_s14 + $0x20] sm:$0xff]  }
 0x622   : > { %2534 = vmatmul.mubr.bf16.vlgmr.msra.gmra.mxu0 %v6360_v47 }
 0x623   : > { %2543 = vmatprep.mubr.bf16.mxu0 %v7103_v55  ;;  %4375 = vmatpush3.bf16.msra.mxu0 %v4771_v3  ;;  %v6424_v3 = vld [vmem:[%s4937_s14 + $0x28] sm:$0xff]  }
 0x624   : > { %4376 = vmatprep.subr.bf16.mxu0 %v4772_v24  ;;  %v6429_v24 = vld [vmem:[%s4937_s14 + $0x30] sm:$0xff]  }
 0x627   : > { %4377 = vmatpush3.bf16.msra.mxu0 %v4773_v23  ;;  %v6434_v23 = vld [vmem:[%s4937_s14 + $0x38] sm:$0xff]  }
 0x628   : > { %4378 = vmatprep.subr.bf16.mxu0 %v4774_v22 }
 0x62a   : > { %2544 = vmatmul.mubr.bf16.gmra.mxu0 %v6377_v0 }
 0x62b   : > { %2553 = vmatprep.mubr.bf16.mxu0 %v7103_v55  ;;  %4379 = vmatpush3.bf16.msra.mxu0 %v4775_v31 }
 0x62c   : > { %4380 = vmatprep.subr.bf16.mxu0 %v4776_v53 }
 0x62f   : > { %4381 = vmatpush3.bf16.msra.mxu0 %v4777_v35 }
 0x630   : > { %4382 = vmatprep.subr.bf16.mxu0 %v4778_v62 }
 0x632   : > { %2554 = vmatmul.mubr.bf16.gmra.mxu0 %v6394_v12 }
 0x633   : > { %2563 = vmatprep.mubr.bf16.mxu0 %v7103_v55  ;;  %4383 = vmatpush3.bf16.msra.mxu0 %v4779_v61 }
 0x634   : > { %4384 = vmatprep.subr.bf16.mxu0 %v4780_v28 }
 0x637   : > { %4385 = vmatpush3.bf16.msra.mxu0 %v4781_v9 }
 0x638   : > { %4386 = vmatprep.subr.bf16.mxu0 %v4782_v14 }
 0x63a   : > { %2564 = vmatmul.mubr.bf16.gmra.mxu0 %v6411_v32 }
 0x63b   : > { %2573 = vmatprep.mubr.bf16.mxu0 %v7103_v55  ;;  %4387 = vmatpush3.bf16.msra.mxu0 %v4783_v45 }
 0x63c   : > { %4388 = vmatprep.subr.bf16.mxu0 %v4784_v20 }
 0x63f   : > { %4389 = vmatpush3.bf16.msra.mxu0 %v4785_v46 }
 0x642   : > { %2574 = vmatmul.mubr.bf16.gmra.mxu0 %v6419_v11 }
 0x643   : > { %2583 = vmatprep.mubr.bf16.mxu0 %v7103_v55 }
 0x64a   : > { %2584 = vmatmul.mubr.bf16.gmra.mxu0 %v6424_v3 }
 0x64b   : > { %2593 = vmatprep.mubr.bf16.mxu0 %v7103_v55 }
 0x652   : > { %2594 = vmatmul.mubr.bf16.gmra.mxu0 %v6429_v24 }
 0x653   : > { %2603 = vmatprep.mubr.bf16.mxu0 %v7103_v55 }
 0x65a   : > { %2604 = vmatmul.mubr.bf16.gmra.mxu0 %v6434_v23 }
 0x65b   : > { %4003 = vmatprep.mubr.msk.bf16.mxu0 %vm7176_vm0, %v7171_v10 }
 0x662   : > { %4005 = vmatmul.mubr.msk.bf16.vlgmr.msra.gmra.mxu0 %vm7177_vm14, %v7171_v10 }
 0x663   : > { %4007 = vmatprep.mubr.msk.bf16.mxu0 %vm7174_vm15, %v7171_v10 }
 0x66a   : > { %4009 = vmatmul.mubr.msk.bf16.gmra.mxu0 %vm7175_vm11, %v7171_v10 }
 0x66b   : > { %4011 = vmatprep.mubr.msk.bf16.mxu0 %vm6127_vm1, %v7171_v10 }
 0x672   : > { %4013 = vmatmul.mubr.msk.bf16.gmra.mxu0 %vm6134_vm3, %v7171_v10 }
 0x673   : > { %4015 = vmatprep.mubr.msk.bf16.mxu0 %vm6168_vm9, %v7171_v10 }
 0x67a   : > { %4017 = vmatmul.mubr.msk.bf16.gmra.mxu0 %vm6175_vm13, %v7171_v10 }
 0x67b   : > { %4019 = vmatprep.mubr.msk.bf16.mxu0 %vm6203_vm5, %v7171_v10 }
 0x682   : > { %4021 = vmatmul.mubr.msk.bf16.gmra.mxu0 %vm6210_vm6, %v7171_v10 }
 0x683   : > { %4023 = vmatprep.mubr.msk.bf16.mxu0 %vm6238_vm4, %v7171_v10 }
 0x68a   : > { %4025 = vmatmul.mubr.msk.bf16.gmra.mxu0 %vm6245_vm7, %v7171_v10 }
 0x68b   : > { %4027 = vmatprep.mubr.msk.bf16.mxu0 %vm6266_vm10, %v7171_v10 }
 0x692   : > { %4029 = vmatmul.mubr.msk.bf16.gmra.mxu0 %vm6276_vm8, %v7171_v10 }
 0x693   : > { %4031 = vmatprep.mubr.msk.bf16.mxu0 %vm6290_vm12, %v7171_v10 }
 0x69a   : > { %4033 = vmatmul.mubr.msk.bf16.gmra.mxu0 %vm6301_vm2, %v7171_v10 }
 0x6e2   : > { %v2535_v48 = vpop.f32.mrf.mxu0 }
 0x6e4   : > { %v2537_v56 = vpop.f32.mrf.mxu0 }
 0x6e6   : > { %v2539_v21 = vpop.f32.mrf.mxu0 }
 0x6e7   : > { %v6485_v27 = vpack.c.bf16 %v2539_v21, %v2535_v48 }
 0x6e8   : > { %v2541_v49 = vpop.f32.mrf.mxu0 }
 0x6e9   : > { %v6487_v4 = vpack.c.bf16 %v2541_v49, %v2537_v56 }
 0x6ea   : > { %v2545_v40 = vpop.f32.mrf.mxu0 }
 0x6ec   : > { %v2547_v51 = vpop.f32.mrf.mxu0 }
 0x6ee   : > { %v2549_v29 = vpop.f32.mrf.mxu0 }
 0x6ef   : > { %v6489_v26 = vpack.c.bf16 %v2549_v29, %v2545_v40 }
 0x6f0   : > { %v2551_v1 = vpop.f32.mrf.mxu0 }
 0x6f1   : > { %v6491_v58 = vpack.c.bf16 %v2551_v1, %v2547_v51 }
 0x6f2   : > { %v2555_v37 = vpop.f32.mrf.mxu0 }
 0x6f4   : > { %v2557_v30 = vpop.f32.mrf.mxu0 }
 0x6f6   : > { %v2559_v38 = vpop.f32.mrf.mxu0 }
 0x6f8   : > { %v2561_v10 = vpop.f32.mrf.mxu0 }
 0x6fa   : > { %v2565_v42 = vpop.f32.mrf.mxu0 }
 0x6fc   : > { %v2567_v22 = vpop.f32.mrf.mxu0 }
 0x6fe   : > { %v2569_v31 = vpop.f32.mrf.mxu0 }
 0x700   : > { %v2571_v53 = vpop.f32.mrf.mxu0 }
 0x702   : > { %v2575_v35 = vpop.f32.mrf.mxu0 }
 0x704   : > { %v2577_v62 = vpop.f32.mrf.mxu0 }
 0x706   : > { %v2579_v61 = vpop.f32.mrf.mxu0 }
 0x708   : > { %v2581_v28 = vpop.f32.mrf.mxu0 }
 0x70a   : > { %v2585_v9 = vpop.f32.mrf.mxu0 }
 0x70c   : > { %v2587_v14 = vpop.f32.mrf.mxu0 }
 0x70e   : > { %v2589_v45 = vpop.f32.mrf.mxu0 }
 0x710   : > { %v2591_v20 = vpop.f32.mrf.mxu0 }
 0x711   : > { %v6506_v60 = vpack.c.bf16 %v2591_v20, %v2587_v14  ;;  %v6520_v14 = vpack.c.bf16 %v2579_v61, %v2575_v35 }
 0x712   : > { %v2595_v46 = vpop.f32.mrf.mxu0 }
 0x714   : > { %v2597_v48 = vpop.f32.mrf.mxu0 }
 0x716   : > { %v2599_v56 = vpop.f32.mrf.mxu0 }
 0x717   : > { %v6504_v25 = vpack.c.bf16 %v2599_v56, %v2595_v46  ;;  %v6522_v46 = vpack.c.bf16 %v2571_v53, %v2567_v22  ;;  %v6536_v22 = vpack.c.bf16 %v2559_v38, %v2555_v37  ;;  %v6555_v37 = vld [vmem:[%s6961_s6 + $0x170] sm:$0xff]  }
 0x718   : > { %v2601_v21 = vpop.f32.mrf.mxu0 }
 0x719   : > { %v6497_v17 = vpack.c.bf16 %v2601_v21, %v2597_v48  ;;  %v6512_v48 = vpack.c.bf16 %v2589_v45, %v2585_v9  ;;  %v6530_v45 = vpack.c.bf16 %v2561_v10, %v2557_v30  ;;  %v6545_v30 = vld [vmem:[%s6961_s6 + $0x178] sm:$0xff]  }
 0x71a   : > { %v2605_v49 = vpop.f32.mrf.mxu0  ;;  %v6550_v10 = vld [vmem:[%s6961_s6 + $0x138] sm:$0xff]   ;;  %4502 = vmatprep.subr.bf16.mxu0 %v6545_v30 }
 0x71b   : > { %4503 = vmatpush3.bf16.msra.mxu0 %v6550_v10 }
 0x71c   : > { %v2607_v40 = vpop.f32.mrf.mxu0  ;;  %4504 = vmatprep.subr.bf16.mxu0 %v6555_v37 }
 0x71e   : > { %v2609_v51 = vpop.f32.mrf.mxu0 }
 0x71f   : > { %v6495_v43 = vpack.c.bf16 %v2609_v51, %v2605_v49  ;;  %v6514_v51 = vpack.c.bf16 %v2581_v28, %v2577_v62  ;;  %v6528_v62 = vpack.c.bf16 %v2569_v31, %v2565_v42 }
 0x720   : > { %v2611_v29 = vpop.f32.mrf.mxu0 }
 0x721   : > { %v6493_v1 = vpack.c.bf16 %v2611_v29, %v2607_v40 }
 0x722   : > { %v4390_v6 = vpop.f32.mrf.mxu0 }
 0x723   : > { %2630 = vmatprep.subr.bf16.mxu1 %v6493_v1 }
 0x724   : > { %2631 = vmatpush1.bf16.msra.mxu1 %v6495_v43  ;;  %v4391_v33 = vpop.f32.mrf.mxu0 }
 0x725   : > { %v6501_v2 = vadd.f32 %v4391_v33, %v4390_v6  ;;  %2632 = vmatprep.subr.bf16.mxu1 %v6497_v17 }
 0x726   : > { %v4393_v19 = vpop.f32.mrf.mxu0 }
 0x728   : > { %2633 = vmatpush1.bf16.msra.mxu1 %v6504_v25  ;;  %v4394_v49 = vpop.f32.mrf.mxu0 }
 0x729   : > { %v6509_v40 = vadd.f32 %v4394_v49, %v4393_v19  ;;  %2634 = vmatprep.subr.bf16.mxu1 %v6506_v60  ;;  %v4786_v49 = vld [vmem:[%s6961_s6 + $0xf8] sm:$0xff]  }
 0x72a   : > { %v4396_v21 = vpop.f32.mrf.mxu0 }
 0x72c   : > { %2635 = vmatpush1.bf16.msra.mxu1 %v6512_v48  ;;  %v4397_v33 = vpop.f32.mrf.mxu0 }
 0x72d   : > { %v6517_v6 = vadd.f32 %v4397_v33, %v4396_v21  ;;  %2636 = vmatprep.subr.bf16.mxu1 %v6514_v51  ;;  %v6569_v33 = vld [vmem:[%s6961_s6 + $0x130] sm:$0xff]  }
 0x72e   : > { %v4399_v20 = vpop.f32.mrf.mxu0  ;;  %4505 = vmatpush3.bf16.msra.mxu0 %v6569_v33 }
 0x730   : > { %2637 = vmatpush1.bf16.msra.mxu1 %v6520_v14  ;;  %v4400_v19 = vpop.f32.mrf.mxu0 }
 0x731   : > { %v6525_v9 = vadd.f32 %v4400_v19, %v4399_v20  ;;  %2638 = vmatprep.subr.bf16.mxu1 %v6522_v46  ;;  %v6575_v20 = vld [vmem:[%s6961_s6 + $0x168] sm:$0xff]  }
 0x732   : > { %v4402_v28 = vpop.f32.mrf.mxu0  ;;  %4506 = vmatprep.subr.bf16.mxu0 %v6575_v20 }
 0x734   : > { %2639 = vmatpush1.bf16.msra.mxu1 %v6528_v62  ;;  %v4403_v56 = vpop.f32.mrf.mxu0 }
 0x735   : > { %v6533_v35 = vadd.f32 %v4403_v56, %v4402_v28  ;;  %2640 = vmatprep.subr.bf16.mxu1 %v6530_v45  ;;  %v4787_v28 = vld [vmem:[%s6961_s6 + $0xb8] sm:$0xff]  }
 0x736   : > { %v4405_v53 = vpop.f32.mrf.mxu0 }
 0x738   : > { %2641 = vmatpush1.bf16.msra.mxu1 %v6536_v22  ;;  %v4406_v61 = vpop.f32.mrf.mxu0 }
 0x739   : > { %v6539_v29 = vadd.f32 %v4406_v61, %v4405_v53  ;;  %2642 = vmatprep.subr.bf16.mxu1 %v6491_v58  ;;  %v4788_v53 = vld [vmem:[%s6961_s6 + $0xf0] sm:$0xff]  }
 0x73a   : > { %v4408_v42 = vpop.f32.mrf.mxu0 }
 0x73b   : > { %7178 = vst [vmem:[#allocation12_spill] sm:$0xff] %v6539_v29  ;;  %v6632_v29 = vld [vmem:[%s6961_s6 + $0x118] sm:$0xff]  }
 0x73c   : > { %2643 = vmatpush1.bf16.msra.mxu1 %v6489_v26  ;;  %v4409_v38 = vpop.f32.mrf.mxu0 }
 0x73d   : > { %v6558_v31 = vadd.f32 %v4409_v38, %v4408_v42  ;;  %2644 = vmatprep.subr.bf16.mxu1 %v6487_v4  ;;  %v6590_v42 = vld [vmem:[%s6961_s6 + $0x128] sm:$0xff]   ;;  %v6597_v38 = vld [vmem:[%s6961_s6 + $0x160] sm:$0xff]  }
 0x73e   : > { %v4411_v21 = vpop.f32.mrf.mxu0  ;;  %4507 = vmatpush3.bf16.msra.mxu0 %v6590_v42 }
 0x73f   : > { %7179 = vst [vmem:[#allocation13_spill] sm:$0xff] %v6558_v31  ;;  %v6612_v31 = vld [vmem:[%s6961_s6 + $0x120] sm:$0xff]   ;;  %4508 = vmatprep.subr.bf16.mxu0 %v6597_v38 }
 0x740   : > { %2645 = vmatpush1.bf16.msra.mxu1 %v6485_v27  ;;  %v4412_v19 = vpop.f32.mrf.mxu0 }
 0x741   : > { %v6581_v56 = vadd.f32 %v4412_v19, %v4411_v21  ;;  %4438 = vmatprep.subr.bf16.mxu1 %v4786_v49  ;;  %v4789_v21 = vld [vmem:[%s6961_s6 + $0xb0] sm:$0xff]  }
 0x742   : > { %v4414_v61 = vpop.f32.mrf.mxu0  ;;  %4509 = vmatpush3.bf16.msra.mxu0 %v6612_v31 }
 0x743   : > { %7180 = vst [vmem:[#allocation14_spill] sm:$0xff] %v6581_v56  ;;  %2663 = vmatmul.mubr.bf16.vlgmr.msra.gmra.mxu1 %v6360_v47  ;;  %v4790_v47 = vld [vmem:[%s6961_s6 + $0xe8] sm:$0xff]  }
 0x744   : > { %v4415_v49 = vpop.f32.mrf.mxu0  ;;  %2672 = vmatprep.mubr.bf16.mxu1 %v7103_v55  ;;  %4439 = vmatpush3.bf16.msra.mxu1 %v4787_v28  ;;  %v6618_v28 = vld [vmem:[%s6961_s6 + $0x158] sm:$0xff]  }
 0x745   : > { %v6603_v19 = vadd.f32 %v4415_v49, %v4414_v61  ;;  %4440 = vmatprep.subr.bf16.mxu1 %v4788_v53  ;;  %v4791_v61 = vld [vmem:[%s6961_s6 + $0xa8] sm:$0xff]   ;;  %4510 = vmatprep.subr.bf16.mxu0 %v6618_v28 }
 0x746   : > { %v4417_v56 = vpop.f32.mrf.mxu0  ;;  %4511 = vmatpush3.bf16.msra.mxu0 %v6632_v29 }
 0x747   : > { %7181 = vst [vmem:[#allocation15_spill] sm:$0xff] %v6603_v19  ;;  %v4792_v19 = vld [vmem:[%s6961_s6 + $0xe0] sm:$0xff]  }
 0x748   : > { %v4418_v53 = vpop.f32.mrf.mxu0  ;;  %4441 = vmatpush3.bf16.msra.mxu1 %v4789_v21  ;;  %v4794_v21 = vld [vmem:[%s6961_s6 + $0xd8] sm:$0xff]  }
 0x749   : > { %v6623_v49 = vadd.f32 %v4418_v53, %v4417_v56  ;;  %4442 = vmatprep.subr.bf16.mxu1 %v4790_v47  ;;  %v4793_v56 = vld [vmem:[%s6961_s6 + $0xa0] sm:$0xff]   ;;  %v4796_v47 = vld [vmem:[%s6961_s6 + $0xd0] sm:$0xff]   ;;  %v4798_v53 = vld [vmem:[%s6961_s6 + $0xc8] sm:$0xff]  }
 0x74b   : > { %2673 = vmatmul.mubr.bf16.gmra.mxu1 %v6377_v0  ;;  %v4795_v0 = vld [vmem:[%s6961_s6 + $0x98] sm:$0xff]  }
 0x74c   : > { %2682 = vmatprep.mubr.bf16.mxu1 %v7103_v55  ;;  %4443 = vmatpush3.bf16.msra.mxu1 %v4791_v61  ;;  %v4799_v61 = vld [vmem:[%s6961_s6 + $0x88] sm:$0xff]  }
 0x74d   : > { %4444 = vmatprep.subr.bf16.mxu1 %v4792_v19  ;;  %v4797_v19 = vld [vmem:[%s6961_s6 + $0x90] sm:$0xff]  }
 0x750   : > { %4445 = vmatpush3.bf16.msra.mxu1 %v4793_v56  ;;  %v4801_v56 = vld [vmem:[%s6961_s6 + $0x80] sm:$0xff]  }
 0x751   : > { %4446 = vmatprep.subr.bf16.mxu1 %v4794_v21 }
 0x753   : > { %2683 = vmatmul.mubr.bf16.gmra.mxu1 %v6394_v12  ;;  %v4800_v12 = vld [vmem:[%s6961_s6 + $0xc0] sm:$0xff]  }
 0x754   : > { %2692 = vmatprep.mubr.bf16.mxu1 %v7103_v55  ;;  %4447 = vmatpush3.bf16.msra.mxu1 %v4795_v0 }
 0x755   : > { %4448 = vmatprep.subr.bf16.mxu1 %v4796_v47 }
 0x758   : > { %4449 = vmatpush3.bf16.msra.mxu1 %v4797_v19 }
 0x759   : > { %4450 = vmatprep.subr.bf16.mxu1 %v4798_v53 }
 0x75b   : > { %2693 = vmatmul.mubr.bf16.gmra.mxu1 %v6411_v32  ;;  %v4812_v32 = vld [vmem:[%s6961_s6 + $0x150] sm:$0xff]  }
 0x75c   : > { %2702 = vmatprep.mubr.bf16.mxu1 %v7103_v55  ;;  %4451 = vmatpush3.bf16.msra.mxu1 %v4799_v61 }
 0x75d   : > { %4452 = vmatprep.subr.bf16.mxu1 %v4800_v12  ;;  %4512 = vmatprep.subr.bf16.mxu0 %v4812_v32 }
 0x760   : > { %4453 = vmatpush3.bf16.msra.mxu1 %v4801_v56 }
 0x761   : > { %4662 = vmatprep.subr.bf16.mxu1 %v6545_v30 }
 0x763   : > { %2703 = vmatmul.mubr.bf16.gmra.mxu1 %v6419_v11  ;;  %v4813_v11 = vld [vmem:[%s6961_s6 + $0x110] sm:$0xff]  }
 0x764   : > { %2712 = vmatprep.mubr.bf16.mxu1 %v7103_v55  ;;  %4513 = vmatpush3.bf16.msra.mxu0 %v4813_v11 }
 0x76b   : > { %2713 = vmatmul.mubr.bf16.gmra.mxu1 %v6424_v3  ;;  %v4815_v3 = vld [vmem:[%s6961_s6 + $0x108] sm:$0xff]  }
 0x76c   : > { %2722 = vmatprep.mubr.bf16.mxu1 %v7103_v55 }
 0x773   : > { %2723 = vmatmul.mubr.bf16.gmra.mxu1 %v6429_v24  ;;  %v4816_v24 = vld [vmem:[%s6961_s6 + $0x140] sm:$0xff]  }
 0x774   : > { %2732 = vmatprep.mubr.bf16.mxu1 %v7103_v55  ;;  %v4814_v55 = vld [vmem:[%s6961_s6 + $0x148] sm:$0xff]  }
 0x775   : > { %4514 = vmatprep.subr.bf16.mxu0 %v4814_v55 }
 0x776   : > { %4515 = vmatpush3.bf16.msra.mxu0 %v4815_v3 }
 0x777   : > { %4516 = vmatprep.subr.bf16.mxu0 %v4816_v24 }
 0x77b   : > { %2733 = vmatmul.mubr.bf16.gmra.mxu1 %v6434_v23  ;;  %v4817_v23 = vld [vmem:[%s6961_s6 + $0x100] sm:$0xff]  }
 0x77c   : > { %3246 = vmatprep.mubr.bf16.mxu1 %v6487_v4  ;;  %4517 = vmatpush3.bf16.msra.mxu0 %v4817_v23 }
 0x783   : > { %3247 = vmatmul.mubr.bf16.vlgmr.msra.gmra.mxu1 %v6485_v27 }
 0x784   : > { %3254 = vmatprep.mubr.bf16.mxu1 %v6491_v58  ;;  %4670 = vmatpush3.bf16.msra.mxu1 %v6550_v10 }
 0x785   : > { %4663 = vmatprep.subr.bf16.mxu1 %v6555_v37 }
 0x788   : > { %4671 = vmatpush3.bf16.msra.mxu1 %v6569_v33 }
 0x789   : > { %4664 = vmatprep.subr.bf16.mxu1 %v6575_v20 }
 0x78b   : > { %3255 = vmatmul.mubr.bf16.gmra.mxu1 %v6489_v26 }
 0x78c   : > { %3262 = vmatprep.mubr.bf16.mxu1 %v6530_v45  ;;  %4672 = vmatpush3.bf16.msra.mxu1 %v6590_v42 }
 0x78d   : > { %4665 = vmatprep.subr.bf16.mxu1 %v6597_v38 }
 0x790   : > { %4673 = vmatpush3.bf16.msra.mxu1 %v6612_v31 }
 0x791   : > { %4666 = vmatprep.subr.bf16.mxu1 %v6618_v28 }
 0x793   : > { %3263 = vmatmul.mubr.bf16.gmra.mxu1 %v6536_v22 }
 0x794   : > { %3270 = vmatprep.mubr.bf16.mxu1 %v6522_v46  ;;  %4674 = vmatpush3.bf16.msra.mxu1 %v6632_v29 }
 0x795   : > { %4667 = vmatprep.subr.bf16.mxu1 %v4812_v32 }
 0x798   : > { %4675 = vmatpush3.bf16.msra.mxu1 %v4813_v11 }
 0x799   : > { %4668 = vmatprep.subr.bf16.mxu1 %v4814_v55 }
 0x79b   : > { %3271 = vmatmul.mubr.bf16.gmra.mxu1 %v6528_v62 }
 0x79c   : > { %3278 = vmatprep.mubr.bf16.mxu1 %v6514_v51  ;;  %4676 = vmatpush3.bf16.msra.mxu1 %v4815_v3 }
 0x79d   : > { %4669 = vmatprep.subr.bf16.mxu1 %v4816_v24 }
 0x7a0   : > { %4677 = vmatpush3.bf16.msra.mxu1 %v4817_v23 }
 0x7a3   : > { %3279 = vmatmul.mubr.bf16.gmra.mxu1 %v6520_v14 }
 0x7a4   : > { %3286 = vmatprep.mubr.bf16.mxu1 %v6506_v60 }
 0x7ab   : > { %3287 = vmatmul.mubr.bf16.gmra.mxu1 %v6512_v48 }
 0x7ac   : > { %3294 = vmatprep.mubr.bf16.mxu1 %v6497_v17 }
 0x7b3   : > { %3295 = vmatmul.mubr.bf16.gmra.mxu1 %v6504_v25 }
 0x7b4   : > { %3302 = vmatprep.mubr.bf16.mxu1 %v6493_v1 }
 0x7bb   : > { %3303 = vmatmul.mubr.bf16.gmra.mxu1 %v6495_v43 }
 0x803   : > { %v2664_v27 = vpop.f32.mrf.mxu1 }
 0x804   : > { %v2743_v46 = vmul.f32 2.0, %v2664_v27 }
 0x805   : > { %v2666_v4 = vpop.f32.mrf.mxu1 }
 0x806   : > { %v2744_v58 = vmul.f32 2.0, %v2666_v4  ;;  %v2775_v25 = vsub.f32 %v2743_v46, %v6027_v44 }
 0x807   : > { %v2668_v26 = vpop.f32.mrf.mxu1 }
 0x808   : > { %v2745_v51 = vmul.f32 2.0, %v2668_v26  ;;  %v2776_v48 = vsub.f32 %v2744_v58, %v6031_v63 }
 0x809   : > { %v2670_v62 = vpop.f32.mrf.mxu1 }
 0x80a   : > { %v2746_v14 = vmul.f32 2.0, %v2670_v62  ;;  %v2777_v60 = vsub.f32 %v2745_v51, %v6043_v13 }
 0x80b   : > { %v2674_v45 = vpop.f32.mrf.mxu1 }
 0x80c   : > { %v2778_v17 = vsub.f32 %v2746_v14, %v6046_v5  ;;  %v2807_v43 = vpack.c.bf16 %v2777_v60, %v2775_v25  ;;  %v2747_v37 = vmul.f32 2.0, %v2674_v45 }
 0x80d   : > { %v2676_v1 = vpop.f32.mrf.mxu1 }
 0x80e   : > { %v2808_v22 = vpack.c.bf16 %v2778_v17, %v2776_v48  ;;  %v2748_v30 = vmul.f32 2.0, %v2676_v1  ;;  %v2779_v44 = vsub.f32 %v2747_v37, %v6064_v59  ;;  %v7182_v1 = vld [vmem:[#allocation4_spill] sm:$0xff] }
 0x80f   : > { %v2678_v29 = vpop.f32.mrf.mxu1 }
 0x810   : > { %v2749_v10 = vmul.f32 2.0, %v2678_v29  ;;  %3343 = vmatprep.mubr.bf16.mxu0 %v2808_v22  ;;  %v2780_v63 = vsub.f32 %v2748_v30, %v6068_v15  ;;  %v7183_v22 = vld [vmem:[#allocation7_spill] sm:$0xff] }
 0x811   : > { %v2680_v31 = vpop.f32.mrf.mxu1  ;;  %3344 = vmatmul.mubr.bf16.vlgmr.msra.gmra.mxu0 %v2807_v43 }
 0x812   : > { %v2750_v33 = vmul.f32 2.0, %v2680_v31  ;;  %v2781_v13 = vsub.f32 %v2749_v10, %v6083_v39 }
 0x813   : > { %v2684_v20 = vpop.f32.mrf.mxu1 }
 0x814   : > { %v2782_v5 = vsub.f32 %v2750_v33, %v6093_v54  ;;  %v2809_v28 = vpack.c.bf16 %v2781_v13, %v2779_v44  ;;  %v2751_v19 = vmul.f32 2.0, %v2684_v20  ;;  %v7185_v44 = vld [vmem:[#allocation3_spill] sm:$0xff] }
 0x815   : > { %v2686_v42 = vpop.f32.mrf.mxu1 }
 0x816   : > { %v2810_v38 = vpack.c.bf16 %v2782_v5, %v2780_v63  ;;  %v2752_v0 = vmul.f32 2.0, %v2686_v42  ;;  %v2783_v59 = vsub.f32 %v2751_v19, %v6105_v36  ;;  %v7184_v63 = vld [vmem:[#allocation6_spill] sm:$0xff] }
 0x817   : > { %v2688_v21 = vpop.f32.mrf.mxu1  ;;  %v7186_v42 = vld [vmem:[#allocation2_spill] sm:$0xff] }
 0x818   : > { %v2753_v47 = vmul.f32 2.0, %v2688_v21  ;;  %3351 = vmatprep.mubr.bf16.mxu0 %v2810_v38  ;;  %v2784_v15 = vsub.f32 %v2752_v0, %v6109_v8 }
 0x819   : > { %v2690_v53 = vpop.f32.mrf.mxu1  ;;  %3352 = vmatmul.mubr.bf16.gmra.mxu0 %v2809_v28  ;;  %v7187_v28 = vld [vmem:[#allocation5_spill] sm:$0xff] }
 0x81a   : > { %v2754_v61 = vmul.f32 2.0, %v2690_v53  ;;  %v2785_v39 = vsub.f32 %v2753_v47, %v6121_v50 }
 0x81b   : > { %v2694_v12 = vpop.f32.mrf.mxu1 }
 0x81c   : > { %v2786_v54 = vsub.f32 %v2754_v61, %v6124_v57  ;;  %v2811_v11 = vpack.c.bf16 %v2785_v39, %v2783_v59  ;;  %v2755_v23 = vmul.f32 2.0, %v2694_v12 }
 0x81d   : > { %v2696_v56 = vpop.f32.mrf.mxu1 }
 0x81e   : > { %v2812_v32 = vpack.c.bf16 %v2786_v54, %v2784_v15  ;;  %v2756_v3 = vmul.f32 2.0, %v2696_v56  ;;  %v2787_v36 = vsub.f32 %v2755_v23, %v6146_v41  ;;  %v7188_v15 = vmov 0.0   ;;  %v7189_v54 = vld [vmem:[#allocation9_spill] sm:$0xff]  ;;  %v7191_v56 = vld [vmem:[#allocation11_spill] sm:$0xff] }
 0x81f   : > { %v2698_v55 = vpop.f32.mrf.mxu1  ;;  %vm7190_vm8 = vcmp.ge.f32.partialorder %v7189_v54, 1.0  ;;  %vm7192_vm10 = vcmp.ge.f32.partialorder %v7191_v56, 1.0  ;;  %vm7193_vm14 = vcmp.le.f32.partialorder %v7189_v54, -1.0  ;;  %vm7194_vm15 = vcmp.le.f32.partialorder %v7191_v56, -1.0 }
 0x820   : > { %v2757_v24 = vmul.f32 2.0, %v2698_v55  ;;  %3359 = vmatprep.mubr.bf16.mxu0 %v2812_v32  ;;  %v2788_v8 = vsub.f32 %v2756_v3, %v6150_v18  ;;  %v3913_v59 = vsel %vm7190_vm8, 1.0, %v7188_v15  ;;  %v3914_v32 = vsel %vm7192_vm10, 1.0, %v7188_v15 }
 0x821   : > { %v2700_v27 = vpop.f32.mrf.mxu1  ;;  %3360 = vmatmul.mubr.bf16.gmra.mxu0 %v2811_v11  ;;  %v3917_v23 = vsel %vm7193_vm14, 1.0, %v7188_v15 }
 0x822   : > { %v2758_v4 = vmul.f32 2.0, %v2700_v27  ;;  %v2789_v50 = vsub.f32 %v2757_v24, %v6162_v16  ;;  %v3918_v27 = vsel %vm7194_vm15, 1.0, %v7188_v15 }
 0x823   : > { %v2704_v26 = vpop.f32.mrf.mxu1 }
 0x824   : > { %v2790_v57 = vsub.f32 %v2758_v4, %v6165_v7  ;;  %v2813_v46 = vpack.c.bf16 %v2789_v50, %v2787_v36  ;;  %v2759_v45 = vmul.f32 2.0, %v2704_v26 }
 0x825   : > { %v2706_v58 = vpop.f32.mrf.mxu1 }
 0x826   : > { %v2814_v51 = vpack.c.bf16 %v2790_v57, %v2788_v8  ;;  %v2760_v14 = vmul.f32 2.0, %v2706_v58  ;;  %v2791_v41 = vsub.f32 %v2759_v45, %v7183_v22  ;;  %v7197_v45 = vld [vmem:[#allocation10_spill] sm:$0xff] }
 0x827   : > { %v2708_v62 = vpop.f32.mrf.mxu1  ;;  %vm7198_vm3 = vcmp.ge.f32.partialorder %v7197_v45, 1.0  ;;  %vm7200_vm13 = vcmp.le.f32.partialorder %v7197_v45, -1.0 }
 0x828   : > { %v2761_v60 = vmul.f32 2.0, %v2708_v62  ;;  %3367 = vmatprep.mubr.bf16.mxu0 %v2814_v51  ;;  %v2792_v18 = vsub.f32 %v2760_v14, %v6189_v34  ;;  %v7195_v14 = vld [vmem:[#allocation8_spill] sm:$0xff] }
 0x829   : > { %v2710_v48 = vpop.f32.mrf.mxu1  ;;  %3368 = vmatmul.mubr.bf16.gmra.mxu0 %v2813_v46  ;;  %vm7196_vm1 = vcmp.ge.f32.partialorder %v7195_v14, 1.0  ;;  %vm7199_vm9 = vcmp.le.f32.partialorder %v7195_v14, -1.0 }
 0x82a   : > { %v2762_v17 = vmul.f32 2.0, %v2710_v48  ;;  %v2793_v16 = vsub.f32 %v2761_v60, %v6197_v52  ;;  %v3915_v60 = vsel %vm7196_vm1, 1.0, %v7188_v15  ;;  %v3916_v48 = vsel %vm7198_vm3, 1.0, %v7188_v15 }
 0x82b   : > { %v2714_v25 = vpop.f32.mrf.mxu1 }
 0x82c   : > { %v2794_v7 = vsub.f32 %v2762_v17, %v7182_v1  ;;  %v2815_v30 = vpack.c.bf16 %v2793_v16, %v2791_v41  ;;  %v2763_v33 = vmul.f32 2.0, %v2714_v25  ;;  %v3919_v1 = vsel %vm7199_vm9, 1.0, %v7188_v15 }
 0x82d   : > { %v2716_v43 = vpop.f32.mrf.mxu1 }
 0x82e   : > { %v2816_v29 = vpack.c.bf16 %v2794_v7, %v2792_v18  ;;  %v2764_v37 = vmul.f32 2.0, %v2716_v43  ;;  %v2795_v21 = vsub.f32 %v2763_v33, %v7187_v28  ;;  %v3920_v7 = vsel %vm7200_vm13, 1.0, %v7188_v15 }
 0x82f   : > { %v2718_v10 = vpop.f32.mrf.mxu1 }
 0x830   : > { %v2765_v31 = vmul.f32 2.0, %v2718_v10  ;;  %3375 = vmatprep.mubr.bf16.mxu0 %v2816_v29  ;;  %v2796_v34 = vsub.f32 %v2764_v37, %v7185_v44 }
 0x831   : > { %v2720_v13 = vpop.f32.mrf.mxu1  ;;  %3376 = vmatmul.mubr.bf16.gmra.mxu0 %v2815_v30 }
 0x832   : > { %v2766_v20 = vmul.f32 2.0, %v2720_v13  ;;  %v2797_v52 = vsub.f32 %v2765_v31, %v7184_v63 }
 0x833   : > { %v2724_v5 = vpop.f32.mrf.mxu1 }
 0x834   : > { %v2798_v38 = vsub.f32 %v2766_v20, %v7186_v42  ;;  %v2767_v47 = vmul.f32 2.0, %v2724_v5  ;;  %v2817_v53 = vpack.c.bf16 %v2797_v52, %v2795_v21  ;;  %v6768_v52 = vpop.f32.mrf.mxu0 }
 0x835   : > { %v2726_v0 = vpop.f32.mrf.mxu1 }
 0x836   : > { %v2818_v19 = vpack.c.bf16 %v2798_v38, %v2796_v34  ;;  %v2768_v39 = vmul.f32 2.0, %v2726_v0  ;;  %v2799_v55 = vsub.f32 %v2767_v47, %v3913_v59  ;;  %v6772_v44 = vpop.f32.mrf.mxu0 }
 0x837   : > { %v2728_v61 = vpop.f32.mrf.mxu1 }
 0x838   : > { %v2769_v12 = vmul.f32 2.0, %v2728_v61  ;;  %3383 = vmatprep.mubr.bf16.mxu0 %v2818_v19  ;;  %v2800_v50 = vsub.f32 %v2768_v39, %v3917_v23  ;;  %v6776_v42 = vpop.f32.mrf.mxu0 }
 0x839   : > { %v2730_v11 = vpop.f32.mrf.mxu1  ;;  %3384 = vmatmul.mubr.bf16.gmra.mxu0 %v2817_v53 }
 0x83a   : > { %v2801_v3 = vsub.f32 %v2769_v12, %v3914_v32  ;;  %v2770_v24 = vmul.f32 2.0, %v2730_v11  ;;  %v6780_v28 = vpop.f32.mrf.mxu0 }
 0x83b   : > { %v2734_v4 = vpop.f32.mrf.mxu1 }
 0x83c   : > { %v2819_v26 = vpack.c.bf16 %v2801_v3, %v2799_v55  ;;  %v2802_v8 = vsub.f32 %v2770_v24, %v3918_v27  ;;  %v2771_v36 = vmul.f32 2.0, %v2734_v4  ;;  %v6784_v0 = vpop.f32.mrf.mxu0  ;;  %v6815_v24 = vld [vmem:[%s6962_s7] ss:$0 sm:$0xff] }
 0x83d   : > { %v2736_v57 = vpop.f32.mrf.mxu1 }
 0x83e   : > { %v2820_v58 = vpack.c.bf16 %v2802_v8, %v2800_v50  ;;  %v2772_v46 = vmul.f32 2.0, %v2736_v57  ;;  %v2803_v16 = vsub.f32 %v2771_v36, %v3915_v60  ;;  %v6788_v19 = vpop.f32.mrf.mxu0 }
 0x83f   : > { %v2738_v51 = vpop.f32.mrf.mxu1 }
 0x840   : > { %v2773_v62 = vmul.f32 2.0, %v2738_v51  ;;  %3391 = vmatprep.mubr.bf16.mxu1 %v2820_v58  ;;  %v2804_v22 = vsub.f32 %v2772_v46, %v3919_v1  ;;  %v6792_v61 = vpop.f32.mrf.mxu0 }
 0x841   : > { %v2740_v17 = vpop.f32.mrf.mxu1  ;;  %3392 = vmatmul.mubr.bf16.vlgmr.msra.gmra.mxu1 %v2819_v26  ;;  %v3152_v26 = vadd.f32 %v6501_v2, %v6815_v24  ;;  %v3160_v2 = vadd.f32 %v6517_v6, %v6815_v24 }
 0x842   : > { %v2805_v25 = vsub.f32 %v2773_v62, %v3916_v48  ;;  %v2774_v18 = vmul.f32 2.0, %v2740_v17  ;;  %v6796_v12 = vpop.f32.mrf.mxu0  ;;  %v3155_v62 = vadd.f32 %v6509_v40, %v6815_v24 }
 0x843   : > { %v4454_v30 = vpop.f32.mrf.mxu1 }
 0x844   : > { %v2821_v41 = vpack.c.bf16 %v2805_v25, %v2803_v16  ;;  %v2806_v43 = vsub.f32 %v2774_v18, %v3920_v7  ;;  %v6800_v59 = vpop.f32.mrf.mxu0 }
 0x845   : > { %v4455_v10 = vpop.f32.mrf.mxu1 }
 0x846   : > { %v2822_v29 = vpack.c.bf16 %v2806_v43, %v2804_v22  ;;  %v6804_v32 = vpop.f32.mrf.mxu0  ;;  %v4456_v4 = vadd.f32 %v4455_v10, %v4454_v30 }
 0x847   : > { %v4457_v37 = vpop.f32.mrf.mxu1 }
 0x848   : > { %3399 = vmatprep.mubr.bf16.mxu1 %v2822_v29  ;;  %v6808_v55 = vpop.f32.mrf.mxu0  ;;  %v3249_v36 = vadd.f32 %v4456_v4, %v3152_v26 }
 0x849   : > { %3400 = vmatmul.mubr.bf16.gmra.mxu1 %v2821_v41  ;;  %v4458_v31 = vpop.f32.mrf.mxu1 }
 0x84a   : > { %v6817_v23 = vpop.f32.mrf.mxu0  ;;  %v4459_v58 = vadd.f32 %v4458_v31, %v4457_v37  ;;  %v3163_v37 = vadd.f32 %v6525_v9, %v6815_v24 }
 0x84b   : > { %v4460_v33 = vpop.f32.mrf.mxu1 }
 0x84c   : > { %v3252_v17 = vadd.f32 %v4459_v58, %v3155_v62 }
 0x84d   : > { %v4461_v13 = vpop.f32.mrf.mxu1 }
 0x84e   : > { %v4462_v60 = vadd.f32 %v4461_v13, %v4460_v33 }
 0x84f   : > { %v4463_v20 = vpop.f32.mrf.mxu1 }
 0x850   : > { %v3257_v22 = vadd.f32 %v4462_v60, %v3160_v2 }
 0x851   : > { %v4464_v63 = vpop.f32.mrf.mxu1 }
 0x852   : > { %v4465_v40 = vadd.f32 %v4464_v63, %v4463_v20  ;;  %v3168_v20 = vadd.f32 %v6533_v35, %v6815_v24  ;;  %v7201_v35 = vld [vmem:[#allocation12_spill] sm:$0xff] }
 0x853   : > { %v6770_v5 = vpop.f32.mrf.mxu1 }
 0x854   : > { %v3260_v63 = vadd.f32 %v4465_v40, %v3163_v37 }
 0x855   : > { %v6774_v34 = vpop.f32.mrf.mxu1 }
 0x856   : > { %v4468_v26 = vadd.f32 %v6774_v34, %v6770_v5  ;;  %v7202_v34 = vld [vmem:[#allocation13_spill] sm:$0xff] }
 0x857   : > { %v6778_v38 = vpop.f32.mrf.mxu1  ;;  %v3176_v2 = vadd.f32 %v7202_v34, %v6815_v24 }
 0x859   : > { %v6782_v21 = vpop.f32.mrf.mxu1 }
 0x85b   : > { %v6786_v47 = vpop.f32.mrf.mxu1 }
 0x85d   : > { %v6790_v53 = vpop.f32.mrf.mxu1 }
 0x85f   : > { %v6794_v39 = vpop.f32.mrf.mxu1 }
 0x861   : > { %v6798_v54 = vpop.f32.mrf.mxu1 }
 0x863   : > { %v6802_v56 = vpop.f32.mrf.mxu1 }
 0x865   : > { %v6806_v11 = vpop.f32.mrf.mxu1 }
 0x867   : > { %v6810_v3 = vpop.f32.mrf.mxu1 }
 0x869   : > { %v6819_v27 = vpop.f32.mrf.mxu1 }
 0x86b   : > { %v6823_v8 = vpop.f32.mrf.mxu1 }
 0x86d   : > { %v6827_v45 = vpop.f32.mrf.mxu1 }
 0x86f   : > { %v6833_v41 = vpop.f32.mrf.mxu1 }
 0x8d1   : > { %v4518_v50 = vpop.f32.mrf.mxu0 }
 0x8d3   : > { %v4519_v57 = vpop.f32.mrf.mxu0 }
 0x8d4   : > { %v4520_v51 = vadd.f32 %v4519_v57, %v4518_v50  ;;  %v6843_v57 = vpop.f32.mrf.mxu1 }
 0x8d5   : > { %v4521_v46 = vpop.f32.mrf.mxu0 }
 0x8d6   : > { %v3346_v14 = vadd.f32 %v4520_v51, %v3249_v36 }
 0x8d7   : > { %v4522_v48 = vpop.f32.mrf.mxu0 }
 0x8d8   : > { %vm3412_vm5 = vcmp.ge.f32.partialorder %v3346_v14, 1.0  ;;  %vm3424_vm6 = vcmp.le.f32.partialorder %v3346_v14, -1.0  ;;  %v4523_v16 = vadd.f32 %v4522_v48, %v4521_v46  ;;  %v3171_v48 = vadd.f32 %v7201_v35, %v6815_v24 }
 0x8d9   : > { %v4034_v25 = vsel %vm3412_vm5, 1.0, %v7188_v15  ;;  %v4038_v18 = vsel %vm3424_vm6, 1.0, %v7188_v15  ;;  %v4524_v1 = vpop.f32.mrf.mxu0 }
 0x8da   : > { %v3349_v7 = vadd.f32 %v4523_v16, %v3252_v17  ;;  %v3436_v43 = vsub.f32 %v3346_v14, %v4034_v25  ;;  %v3440_v10 = vmul.f32 -1.0, %v4038_v18 }
 0x8db   : > { %v4525_v29 = vpop.f32.mrf.mxu0 }
 0x8dc   : > { %vm3413_vm4 = vcmp.ge.f32.partialorder %v3349_v7, 1.0  ;;  %vm3425_vm7 = vcmp.le.f32.partialorder %v3349_v7, -1.0  ;;  %v4526_v30 = vadd.f32 %v4525_v29, %v4524_v1  ;;  %v3444_v58 = vsub.f32 %v3436_v43, %v3440_v10 }
 0x8dd   : > { %v4035_v6 = vsel %vm3413_vm4, 1.0, %v7188_v15  ;;  %v4039_v31 = vsel %vm3425_vm7, 1.0, %v7188_v15  ;;  %v4527_v33 = vpop.f32.mrf.mxu0  ;;  %v4471_v1 = vadd.f32 %v6782_v21, %v6778_v38  ;;  %v7203_v38 = vld [vmem:[#allocation14_spill] sm:$0xff] }
 0x8de   : > { %v3568_v13 = vadd.f32 %v4035_v6, %v4034_v25  ;;  %v3589_v4 = vadd.f32 %v4039_v31, %v4038_v18  ;;  %v3354_v50 = vadd.f32 %v4526_v30, %v3257_v22  ;;  %v3437_v51 = vsub.f32 %v3349_v7, %v4035_v6  ;;  %v6855_v7 = vpop.f32.mrf.mxu1 }
 0x8df   : > { %v4528_v36 = vpop.f32.mrf.mxu0  ;;  %v3441_v60 = vmul.f32 -1.0, %v4039_v31  ;;  %v4422_v25 = vadd.f32 %v6772_v44, %v6768_v52  ;;  %v3265_v18 = vadd.f32 %v4468_v26, %v3168_v20  ;;  %v3448_v43 = vmul.f32 0.95122945, %v3444_v58 }
 0x8e0   : > { %vm3414_vm11 = vcmp.ge.f32.partialorder %v3354_v50, 1.0  ;;  %vm3426_vm12 = vcmp.le.f32.partialorder %v3354_v50, -1.0  ;;  %v4529_v9 = vadd.f32 %v4528_v36, %v4527_v33  ;;  %v3179_v21 = vadd.f32 %v7203_v38, %v6815_v24  ;;  %v6865_v20 = vpop.f32.mrf.mxu1 }
 0x8e1   : > { %v4036_v46 = vsel %vm3414_vm11, 1.0, %v7188_v15  ;;  %v4040_v62 = vsel %vm3426_vm12, 1.0, %v7188_v15  ;;  %v4530_v14 = vpop.f32.mrf.mxu0  ;;  %v3445_v6 = vsub.f32 %v3437_v51, %v3441_v60  ;;  %v7204_v51 = vld [vmem:[#allocation15_spill] sm:$0xff] }
 0x8e2   : > { %v3569_v17 = vadd.f32 %v4036_v46, %v3568_v13  ;;  %v3590_v16 = vadd.f32 %v4040_v62, %v3589_v4  ;;  %v3357_v5 = vadd.f32 %v4529_v9, %v3260_v63  ;;  %v3438_v29 = vsub.f32 %v3354_v50, %v4036_v46 }
 0x8e3   : > { %v4531_v22 = vpop.f32.mrf.mxu0  ;;  %v3442_v33 = vmul.f32 -1.0, %v4040_v62  ;;  %v4425_v13 = vadd.f32 %v6780_v28, %v6776_v42  ;;  %v3268_v4 = vadd.f32 %v4471_v1, %v3171_v48  ;;  %v4474_v50 = vadd.f32 %v6790_v53, %v6786_v47  ;;  %v6879_v48 = vpop.f32.mrf.mxu1 }
 0x8e4   : > { %vm3415_vm0 = vcmp.ge.f32.partialorder %v3357_v5, 1.0  ;;  %vm3427_vm2 = vcmp.le.f32.partialorder %v3357_v5, -1.0  ;;  %v4532_v40 = vadd.f32 %v4531_v22, %v4530_v14  ;;  %v3184_v46 = vadd.f32 %v7204_v51, %v6815_v24 }
 0x8e5   : > { %v4037_v30 = vsel %vm3415_vm0, 1.0, %v7188_v15  ;;  %v4041_v10 = vsel %vm3427_vm2, 1.0, %v7188_v15  ;;  %v4533_v37 = vpop.f32.mrf.mxu0  ;;  %v6871_v62 = vadd.f32 %v6623_v49, %v6815_v24  ;;  %v6874_v42 = vadd.f32 %v4422_v25, %v6815_v24 }
 0x8e6   : > { %v3570_v31 = vadd.f32 %v4037_v30, %v3569_v17  ;;  %v3591_v52 = vadd.f32 %v4041_v10, %v3590_v16  ;;  %v3362_v44 = vadd.f32 %v4532_v40, %v3265_v18  ;;  %v3439_v26 = vsub.f32 %v3357_v5, %v4037_v30 }
 0x8e7   : > { %v4534_v63 = vpop.f32.mrf.mxu0  ;;  %v3443_v58 = vmul.f32 -1.0, %v4041_v10  ;;  %v3449_v28 = vmul.f32 0.95122945, %v3445_v6  ;;  %v3446_v53 = vsub.f32 %v3438_v29, %v3442_v33  ;;  %v6877_v60 = vadd.f32 %v4425_v13, %v6815_v24  ;;  %v6889_v6 = vpop.f32.mrf.mxu1 }
 0x8e8   : > { %v3452_v36 = vadd.f32 %v3448_v43, %v3362_v44  ;;  %v4535_v9 = vadd.f32 %v4534_v63, %v4533_v37  ;;  %v3273_v35 = vadd.f32 %v4474_v50, %v3176_v2  ;;  %v4477_v5 = vadd.f32 %v6798_v54, %v6794_v39 }
 0x8e9   : > { %v4536_v14 = vpop.f32.mrf.mxu0  ;;  %v3447_v18 = vsub.f32 %v3439_v26, %v3443_v58  ;;  %v3450_v30 = vmul.f32 0.95122945, %v3446_v53  ;;  %v4428_v10 = vadd.f32 %v6788_v19, %v6784_v0  ;;  %v4480_v37 = vadd.f32 %v6806_v11, %v6802_v56 }
 0x8ea   : > { %vm3456_vm8 = vcmp.ge.f32.partialorder %v3452_v36, 1.0  ;;  %vm3468_vm10 = vcmp.le.f32.partialorder %v3452_v36, -1.0  ;;  %v3365_v47 = vadd.f32 %v4535_v9, %v3268_v4  ;;  %v3276_v33 = vadd.f32 %v4477_v5, %v3179_v21 }
 0x8eb   : > { %v4537_v17 = vpop.f32.mrf.mxu0  ;;  %v4042_v16 = vsel %vm3456_vm8, 1.0, %v7188_v15  ;;  %v4046_v49 = vsel %vm3468_vm10, 1.0, %v7188_v15  ;;  %v3451_v38 = vmul.f32 0.95122945, %v3447_v18  ;;  %v3281_v56 = vadd.f32 %v4480_v37, %v3184_v46 }
 0x8ec   : > { %v3453_v34 = vadd.f32 %v3449_v28, %v3365_v47  ;;  %v4538_v25 = vadd.f32 %v4537_v17, %v4536_v14  ;;  %v3480_v22 = vsub.f32 %v3452_v36, %v4042_v16  ;;  %v3484_v40 = vmul.f32 -1.0, %v4046_v49  ;;  %v6895_v36 = vpop.f32.mrf.mxu1 }
 0x8ed   : > { %v4539_v1 = vpop.f32.mrf.mxu0  ;;  %v3571_v43 = vadd.f32 %v4042_v16, %v3570_v31  ;;  %v3592_v29 = vadd.f32 %v4046_v49, %v3591_v52  ;;  %v4483_v11 = vadd.f32 %v6819_v27, %v6810_v3  ;;  %v6900_v53 = vadd.f32 %v4428_v10, %v6815_v24 }
 0x8ee   : > { %vm3457_vm14 = vcmp.ge.f32.partialorder %v3453_v34, 1.0  ;;  %vm3469_vm15 = vcmp.le.f32.partialorder %v3453_v34, -1.0  ;;  %v3370_v2 = vadd.f32 %v4538_v25, %v3273_v35  ;;  %v3488_v4 = vsub.f32 %v3480_v22, %v3484_v40 }
 0x8ef   : > { %v4540_v39 = vpop.f32.mrf.mxu0  ;;  %v4043_v54 = vsel %vm3457_vm14, 1.0, %v7188_v15  ;;  %v4047_v44 = vsel %vm3469_vm15, 1.0, %v7188_v15  ;;  %v4431_v49 = vadd.f32 %v6796_v12, %v6792_v61  ;;  %v4486_v5 = vadd.f32 %v6827_v45, %v6823_v8 }
 0x8f0   : > { %v3454_v31 = vadd.f32 %v3450_v30, %v3370_v2  ;;  %v4541_v52 = vadd.f32 %v4540_v39, %v4539_v1  ;;  %v3481_v50 = vsub.f32 %v3453_v34, %v4043_v54  ;;  %v3572_v63 = vadd.f32 %v4043_v54, %v3571_v43  ;;  %v6906_v34 = vpop.f32.mrf.mxu1 }
 0x8f1   : > { %v4542_v13 = vpop.f32.mrf.mxu0  ;;  %v3593_v26 = vadd.f32 %v4047_v44, %v3592_v29  ;;  %v3485_v19 = vmul.f32 -1.0, %v4047_v44  ;;  %v3492_v35 = vmul.f32 0.95122945, %v3488_v4  ;;  %v3284_v22 = vadd.f32 %v4483_v11, %v6871_v62 }
 0x8f2   : > { %vm3458_vm1 = vcmp.ge.f32.partialorder %v3454_v31, 1.0  ;;  %vm3470_vm3 = vcmp.le.f32.partialorder %v3454_v31, -1.0  ;;  %v3373_v0 = vadd.f32 %v4541_v52, %v3276_v33  ;;  %v3203_v45 = vadd.f32 %v4431_v49, %v6815_v24  ;;  %v6913_v54 = vpop.f32.mrf.mxu1 }
 0x8f3   : > { %v4543_v9 = vpop.f32.mrf.mxu0  ;;  %v4044_v21 = vsel %vm3458_vm1, 1.0, %v7188_v15  ;;  %v4048_v58 = vsel %vm3470_vm3, 1.0, %v7188_v15  ;;  %v3489_v27 = vsub.f32 %v3481_v50, %v3485_v19  ;;  %v3289_v39 = vadd.f32 %v4486_v5, %v6874_v42 }
 0x8f4   : > { %v3455_v51 = vadd.f32 %v3451_v38, %v3373_v0  ;;  %v4544_v28 = vadd.f32 %v4543_v9, %v4542_v13  ;;  %v3482_v14 = vsub.f32 %v3454_v31, %v4044_v21  ;;  %v3486_v47 = vmul.f32 -1.0, %v4048_v58  ;;  %v4500_v9 = vpop.f32.mrf.mxu1 }
 0x8f5   : > { %v4545_v17 = vpop.f32.mrf.mxu0  ;;  %v3573_v46 = vadd.f32 %v4044_v21, %v3572_v63  ;;  %v3594_v16 = vadd.f32 %v4048_v58, %v3593_v26  ;;  %v3493_v8 = vmul.f32 0.95122945, %v3489_v27  ;;  %v4489_v31 = vadd.f32 %v6843_v57, %v6833_v41 }
 0x8f6   : > { %vm3459_vm9 = vcmp.ge.f32.partialorder %v3455_v51, 1.0  ;;  %vm3471_vm13 = vcmp.le.f32.partialorder %v3455_v51, -1.0  ;;  %v3378_v3 = vadd.f32 %v4544_v28, %v3281_v56  ;;  %v3490_v29 = vsub.f32 %v3482_v14, %v3486_v47 }
 0x8f7   : > { %v4546_v25 = vpop.f32.mrf.mxu0  ;;  %v4045_v18 = vsel %vm3459_vm9, 1.0, %v7188_v15  ;;  %v4049_v1 = vsel %vm3471_vm13, 1.0, %v7188_v15  ;;  %v4434_v56 = vadd.f32 %v6804_v32, %v6800_v59  ;;  %v4492_v11 = vadd.f32 %v6865_v20, %v6855_v7 }
 0x8f8   : > { %v3496_v40 = vadd.f32 %v3492_v35, %v3378_v3  ;;  %v4547_v43 = vadd.f32 %v4546_v25, %v4545_v17  ;;  %v3483_v30 = vsub.f32 %v3455_v51, %v4045_v18  ;;  %v3487_v10 = vmul.f32 -1.0, %v4049_v1 }
 0x8f9   : > { %v4548_v2 = vpop.f32.mrf.mxu0  ;;  %v3574_v37 = vadd.f32 %v4045_v18, %v3573_v46  ;;  %v3595_v61 = vadd.f32 %v4049_v1, %v3594_v16  ;;  %v3494_v13 = vmul.f32 0.95122945, %v3490_v29  ;;  %v3292_v58 = vadd.f32 %v4489_v31, %v6877_v60 }
 0x8fa   : > { %vm3500_vm5 = vcmp.ge.f32.partialorder %v3496_v40, 1.0  ;;  %vm3512_vm6 = vcmp.le.f32.partialorder %v3496_v40, -1.0  ;;  %v3381_v12 = vadd.f32 %v4547_v43, %v3284_v22  ;;  %v3491_v50 = vsub.f32 %v3483_v30, %v3487_v10 }
 0x8fb   : > { %v4549_v44 = vpop.f32.mrf.mxu0  ;;  %v4050_v62 = vsel %vm3500_vm5, 1.0, %v7188_v15  ;;  %v4054_v33 = vsel %vm3512_vm6, 1.0, %v7188_v15  ;;  %v3297_v7 = vadd.f32 %v4492_v11, %v6900_v53  ;;  %v4495_v20 = vadd.f32 %v6889_v6, %v6879_v48 }
 0x8fc   : > { %v3497_v52 = vadd.f32 %v3493_v8, %v3381_v12  ;;  %v4550_v38 = vadd.f32 %v4549_v44, %v4548_v2  ;;  %v3524_v63 = vsub.f32 %v3496_v40, %v4050_v62  ;;  %v3575_v26 = vadd.f32 %v4050_v62, %v3574_v37 }
 0x8fd   : > { %v4551_v4 = vpop.f32.mrf.mxu0  ;;  %v3596_v0 = vadd.f32 %v4054_v33, %v3595_v61  ;;  %v3528_v19 = vmul.f32 -1.0, %v4054_v33  ;;  %v3495_v47 = vmul.f32 0.95122945, %v3491_v50  ;;  %v3208_v1 = vadd.f32 %v4434_v56, %v6815_v24 }
 0x8fe   : > { %vm3501_vm4 = vcmp.ge.f32.partialorder %v3497_v52, 1.0  ;;  %vm3513_vm7 = vcmp.le.f32.partialorder %v3497_v52, -1.0  ;;  %v3386_v42 = vadd.f32 %v4550_v38, %v3289_v39  ;;  %v3300_v48 = vadd.f32 %v4495_v20, %v3203_v45 }
 0x8ff   : > { %v4051_v41 = vsel %vm3501_vm4, 1.0, %v7188_v15  ;;  %v4055_v57 = vsel %vm3513_vm7, 1.0, %v7188_v15  ;;  %v4552_v21 = vpop.f32.mrf.mxu0  ;;  %v3532_v32 = vsub.f32 %v3524_v63, %v3528_v19  ;;  %v4498_v6 = vadd.f32 %v6906_v34, %v6895_v36 }
 0x900   : > { %v3498_v51 = vadd.f32 %v3494_v13, %v3386_v42  ;;  %v4553_v28 = vadd.f32 %v4552_v21, %v4551_v4  ;;  %v3576_v14 = vadd.f32 %v4051_v41, %v3575_v26  ;;  %v3597_v17 = vadd.f32 %v4055_v57, %v3596_v0 }
 0x901   : > { %v4554_v35 = vpop.f32.mrf.mxu1  ;;  %v3525_v46 = vsub.f32 %v3497_v52, %v4051_v41  ;;  %v3529_v16 = vmul.f32 -1.0, %v4055_v57  ;;  %v3536_v2 = vmul.f32 0.95122945, %v3532_v32  ;;  %v4437_v44 = vadd.f32 %v6817_v23, %v6808_v55 }
 0x902   : > { %vm3502_vm11 = vcmp.ge.f32.partialorder %v3498_v51, 1.0  ;;  %vm3514_vm12 = vcmp.le.f32.partialorder %v3498_v51, -1.0  ;;  %v3389_v59 = vadd.f32 %v4553_v28, %v3292_v58  ;;  %v3305_v34 = vadd.f32 %v4498_v6, %v3208_v1 }
 0x903   : > { %v4052_v3 = vsel %vm3502_vm11, 1.0, %v7188_v15  ;;  %v4056_v60 = vsel %vm3514_vm12, 1.0, %v7188_v15  ;;  %v4555_v27 = vpop.f32.mrf.mxu1  ;;  %v3533_v40 = vsub.f32 %v3525_v46, %v3529_v16  ;;  %v4501_v38 = vadd.f32 %v4500_v9, %v6913_v54 }
 0x904   : > { %v3499_v49 = vadd.f32 %v3495_v47, %v3389_v59  ;;  %v4556_v5 = vadd.f32 %v4555_v27, %v4554_v35  ;;  %v3577_v25 = vadd.f32 %v4052_v3, %v3576_v14  ;;  %v3598_v18 = vadd.f32 %v4056_v60, %v3597_v17 }
 0x905   : > { %v4557_v22 = vpop.f32.mrf.mxu1  ;;  %v3526_v43 = vsub.f32 %v3498_v51, %v4052_v3  ;;  %v3530_v29 = vmul.f32 -1.0, %v4056_v60  ;;  %v3537_v62 = vmul.f32 0.95122945, %v3533_v40  ;;  %v3211_v23 = vadd.f32 %v4437_v44, %v6815_v24 }
 0x906   : > { %vm3503_vm0 = vcmp.ge.f32.partialorder %v3499_v49, 1.0  ;;  %vm3515_vm2 = vcmp.le.f32.partialorder %v3499_v49, -1.0  ;;  %v3394_v53 = vadd.f32 %v4556_v5, %v3297_v7 }
 0x907   : > { %v4053_v30 = vsel %vm3503_vm0, 1.0, %v7188_v15  ;;  %v4057_v10 = vsel %vm3515_vm2, 1.0, %v7188_v15  ;;  %v4558_v37 = vpop.f32.mrf.mxu1  ;;  %v3534_v31 = vsub.f32 %v3526_v43, %v3530_v29  ;;  %v3308_v41 = vadd.f32 %v4501_v38, %v3211_v23 }
 0x908   : > { %v3540_v61 = vadd.f32 %v3536_v2, %v3394_v53  ;;  %v3578_v12 = vadd.f32 %v4053_v30, %v3577_v25  ;;  %v3599_v8 = vadd.f32 %v4057_v10, %v3598_v18  ;;  %v4559_v39 = vadd.f32 %v4558_v37, %v4557_v22 }
 0x909   : > { %v4560_v33 = vpop.f32.mrf.mxu1  ;;  %v3527_v52 = vsub.f32 %v3499_v49, %v4053_v30  ;;  %v3531_v36 = vmul.f32 -1.0, %v4057_v10  ;;  %v3538_v42 = vmul.f32 0.95122945, %v3534_v31  ;;  %v4845_v18 = vmov 1966171168  }
 0x90a   : > { %vm3544_vm8 = vcmp.ge.f32.partialorder %v3540_v61, 1.0  ;;  %vm3556_vm10 = vcmp.le.f32.partialorder %v3540_v61, -1.0  ;;  %v3397_v45 = vadd.f32 %v4559_v39, %v3300_v48  ;;  %v3617_v1 = vunpack.c.l.s4 %v4845_v18 }
 0x90b   : > { %v4058_v13 = vsel %vm3544_vm8, 1.0, %v7188_v15  ;;  %v4062_v4 = vsel %vm3556_vm10, 1.0, %v7188_v15  ;;  %v4561_v50 = vpop.f32.mrf.mxu1  ;;  %v3535_v11 = vsub.f32 %v3527_v52, %v3531_v36  ;;  %v3619_v22 = vlaneseq }
 0x90c   : > { %v3579_v63 = vadd.f32 %v4058_v13, %v3578_v12  ;;  %v3600_v26 = vadd.f32 %v4062_v4, %v3599_v8  ;;  %v3541_v0 = vadd.f32 %v3537_v62, %v3397_v45  ;;  %v4562_v55 = vadd.f32 %v4561_v50, %v4560_v33 }
 0x90d   : > { %v4563_v19 = vpop.f32.mrf.mxu1  ;;  %v3539_v24 = vmul.f32 0.95122945, %v3535_v11  ;;  %v3618_v2 = vunpack.c.0.s8 %v3617_v1  ;;  %v3620_v48 = vshrl.u32 %v3619_v22, 7  ;;  %vm3633_vm5 = vcmp.lt.s32.totalorder %v3619_v22, 256 }
 0x90e   : > { %vm3545_vm14 = vcmp.ge.f32.partialorder %v3541_v0, 1.0  ;;  %vm3557_vm15 = vcmp.le.f32.partialorder %v3541_v0, -1.0  ;;  %v3402_v56 = vadd.f32 %v4562_v55, %v3305_v34 }
 0x90f   : > { %v4059_v54 = vsel %vm3545_vm14, 1.0, %v7188_v15  ;;  %v4063_v9 = vsel %vm3557_vm15, 1.0, %v7188_v15  ;;  %v4564_v57 = vpop.f32.mrf.mxu1  ;;  %v3621_v37 = vsub.s32 %v3618_v2, %v3620_v48 }
 0x910   : > { %v3580_v21 = vadd.f32 %v4059_v54, %v3579_v63  ;;  %v3601_v58 = vadd.f32 %v4063_v9, %v3600_v26  ;;  %v3542_v51 = vadd.f32 %v3538_v42, %v3402_v56  ;;  %v4565_v28 = vadd.f32 %v4564_v57, %v4563_v19 }
 0x912   : > { %vm3546_vm1 = vcmp.ge.f32.partialorder %v3542_v51, 1.0  ;;  %vm3558_vm3 = vcmp.le.f32.partialorder %v3542_v51, -1.0  ;;  %v3405_v14 = vadd.f32 %v4565_v28, %v3308_v41 }
 0x913   : > { %v4060_v47 = vsel %vm3546_vm1, 1.0, %v7188_v15  ;;  %v4064_v35 = vsel %vm3558_vm3, 1.0, %v7188_v15 }
 0x914   : > { %v3581_v17 = vadd.f32 %v4060_v47, %v3580_v21  ;;  %v3602_v46 = vadd.f32 %v4064_v35, %v3601_v58  ;;  %v3543_v16 = vadd.f32 %v3539_v24, %v3405_v14 }
 0x916   : > { %vm3547_vm9 = vcmp.ge.f32.partialorder %v3543_v16, 1.0  ;;  %vm3559_vm13 = vcmp.le.f32.partialorder %v3543_v16, -1.0 }
 0x917   : > { %v4061_v59 = vsel %vm3547_vm9, 1.0, %v7188_v15  ;;  %v4065_v32 = vsel %vm3559_vm13, 1.0, %v7188_v15 }
 0x918   : > { %v3582_v7 = vadd.f32 %v4061_v59, %v3581_v17  ;;  %v3603_v20 = vadd.f32 %v4065_v32, %v3602_v46 }
 0x91a   : > { %v3583_v3 = vrot.slane %v3582_v7, 4  ;;  %v3604_v60 = vrot.slane %v3603_v20, 4 }
 0x91c   : > { %v3584_v27 = vadd.f32 %v3583_v3, %v3582_v7  ;;  %v3605_v49 = vadd.f32 %v3604_v60, %v3603_v20 }
 0x91e   : > { %v3585_v5 = vrot.slane %v3584_v27, 2  ;;  %v3606_v25 = vrot.slane %v3605_v49, 2 }
 0x920   : > { %v3586_v40 = vadd.f32 %v3585_v5, %v3584_v27  ;;  %v3607_v43 = vadd.f32 %v3606_v25, %v3605_v49 }
 0x922   : > { %v3587_v29 = vrot.slane %v3586_v40, 1  ;;  %v3608_v53 = vrot.slane %v3607_v43, 1 }
 0x924   : > { %v3588_v6 = vadd.f32 %v3587_v29, %v3586_v40  ;;  %v3609_v15 = vadd.f32 %v3608_v53, %v3607_v43 }
 0x926   : > { %v3611_v30 = vmul.f32 0.0078125, %v3588_v6  ;;  %v3612_v10 = vmul.f32 0.0078125, %v3609_v15 }
 0x928   : > { %v3615_v61 = vcombine.low %v3611_v30, %v3612_v10 }
 0x92a   : > { %v3622_v12 = vrot.slane %v3615_v61, %v3621_v37 }
 0x92c   : > { %v3629_v8 = vrot.slane %v3622_v12, %v3621_v37 }
 0x92e   : > { %3635 = vst.msk [vmem:[%s323_s12] sm:$0x3] %vm3633_vm5, %v3629_v8 }
 0x92f PF: > { %s18_s27 = sadd.s32 1, %s4840_s27  }
 0x930   : > { %p15_p4 = scmp.ge.s32.totalorder %s18_s27, 4  }
 0x932   :  { %17 = sbr.rel (!%p15_p4) target bundleno = 1 (0x1), region = 85 }

</bundles_post_ra>
